<compile_context>
chip_gen: v5e
topology: v5e:2x2
jax: 0.10.0
libtpu: 0.0.40
codegen_flags: <defaults>
</compile_context>

<pallas_src>
import functools

import jax
import jax.numpy as jnp
import numpy as np
from jax import lax
from jax.experimental import pallas as pl
from jax.experimental.pallas import tpu as pltpu

EPS = 1e-5        # torch nn.LayerNorm default eps
_NEG = -1e30      # masked-key score (exp underflows to exactly 0)


def _round_up(x, m):
    return (x + m - 1) // m * m


def _layer_norm(x, w, b):
    mean = jnp.mean(x, axis=-1, keepdims=True)
    var = jnp.mean(jnp.square(x - mean), axis=-1, keepdims=True)  # biased, like torch
    return (x - mean) * lax.rsqrt(var + EPS) * w + b


def r2(v):
    return v.reshape(1, -1)


# ---------------------------- VMEM-aware batch tiling ----------------------------

def _vmem_capacity_bytes():
    try:
        info = pltpu.get_tpu_info()
        cap = getattr(info, "vmem_capacity_bytes", None)
        if cap:
            return int(cap)
    except Exception:
        pass
    return 64 << 20  # conservative default (v7x per-TensorCore VMEM)


def _block_vmem_bytes(Bt, *, N, Np, patch_dim, dim, heads, dim_head, mlp_dim,
                      num_classes):
    """Rough per-batch-block VMEM footprint of the fused kernel."""
    f4, b2 = 4, 2
    inner = heads * dim_head
    M = Bt * Np
    # depth-streamed per-layer weights (bf16), double-buffered by the pipeline
    layer = (dim * inner * 3 + inner * dim + dim * mlp_dim + mlp_dim * dim) * b2 \
        + (6 * dim + mlp_dim) * f4
    total = 2 * layer
    # once-fetched params (patch proj, pos, head, LNs)
    total += (patch_dim * dim + dim * num_classes) * b2
    total += (2 * patch_dim + 9 * dim + (Np + 1) * dim + mlp_dim + num_classes) * f4
    # patch-pixel input block (double-buffered) + resident activation + logits block
    total += 2 * Bt * N * patch_dim * f4
    total += M * dim * f4
    total += 2 * Bt * num_classes * f4
    # live temporaries: xn, ff hidden, per-head q/k/v, one score block, attn accum
    total += M * (3 * dim + mlp_dim + 3 * dim_head) * f4 + Bt * Np * Np * f4
    return total


def _pick_batch_tile(B, N, Np, vmem_budget, block_bytes_fn):
    # Valid tiles: divide B, and keep the (Bt*N, patch_dim) block sublane-aligned.
    cands = [bt for bt in range(1, B + 1)
             if B % bt == 0 and (bt == B or (bt * N) % 8 == 0)]
    fitting = [bt for bt in cands if block_bytes_fn(bt) <= vmem_budget]
    if not fitting:
        fitting = [min(cands)]
    # Smallest tile with M = Bt*Np >= 256 keeps the MXU fed while leaving nb as large
    # as possible (so the "parallel" batch axis can shard across TensorCores on v7x);
    # otherwise take the largest fitting tile (small-B case; minimizes how often the
    # depth-streamed weights are re-fetched -> best for bandwidth-bound v5e).
    good = [bt for bt in fitting if bt * Np >= 256]
    return min(good) if good else max(fitting)


# ---------------------------- fused ViT kernel ----------------------------

def make_vit_kernel(Bt, N, N1, Np, patch_dim, dim, heads, dim_head, mlp_dim,
                    num_classes):
    M = Bt * Np
    scale = np.float32(dim_head ** (-0.5))
    inv_sqrt2 = np.float32(1.0 / np.sqrt(2.0))
    bf16 = jnp.bfloat16
    f32 = jnp.float32

    def kernel(xp_ref,
               p1w, p1b, pw, pb, p2w, p2b, cls_ref, pos_ref,
               aln_w, aln_b, wq, wk, wv, wo, bo,
               fln_w, fln_b, w1, b1, w2, b2,
               hln_w, hln_b, head_w, head_b,
               o_ref, x_sc):
        d = pl.program_id(1)

        # ---- d == 0: patch embedding + cls token + pos embedding -> resident x_sc ----
        @pl.when(d == 0)
        def _():
            xp = xp_ref[...].astype(f32)                       # (Bt*N, patch_dim)
            pe = _layer_norm(xp, p1w[...], p1b[...])
            pe = jnp.dot(pe.astype(bf16), pw[...],
                         preferred_element_type=f32) + pb[...]
            pe = _layer_norm(pe, p2w[...], p2b[...])           # (Bt*N, dim)
            pe3 = pe.reshape(Bt, N, dim)
            cls_row = cls_ref[...] + pos_ref[0:1, :]           # (1, dim)
            # 3-D slab stores into the padded (Bt, Np, dim) activation scratch.
            x_sc[:, 0:1, :] = jnp.broadcast_to(cls_row[None], (Bt, 1, dim))
            x_sc[:, 1:N1, :] = pe3 + pos_ref[1:N1, :][None]
            if Np > N1:                                        # zero the padded tokens
                x_sc[:, N1:, :] = jnp.zeros((Bt, Np - N1, dim), f32)

        x = x_sc[...].reshape(M, dim)                          # (Bt*Np, dim) f32

        # ---- attention sublayer: x = x + Wo . softmax(QK^T * scale) . V (pre-LN) ----
        xn = _layer_norm(x, aln_w[...], aln_b[...])
        xn_b = xn.astype(bf16)
        if Np > N1:
            key_ok = lax.broadcasted_iota(jnp.int32, (Bt, Np, Np), 2) < N1
        attn_out = jnp.zeros((M, dim), f32)
        for h in range(heads):                                 # small static unroll
            q = jnp.dot(xn_b, wq[h],
                        preferred_element_type=f32).reshape(Bt, Np, dim_head)
            k = jnp.dot(xn_b, wk[h],
                        preferred_element_type=f32).reshape(Bt, Np, dim_head)
            v = jnp.dot(xn_b, wv[h],
                        preferred_element_type=f32).reshape(Bt, Np, dim_head)
            # contract last axes -> no explicit transpose of K
            dots = jnp.einsum("bqd,bkd->bqk", q, k,
                              preferred_element_type=f32) * scale
            if Np > N1:
                dots = jnp.where(key_ok, dots, _NEG)           # mask padded keys
            m = jnp.max(dots, axis=-1, keepdims=True)
            p = jnp.exp(dots - m)
            attn = p * pl.reciprocal(jnp.sum(p, axis=-1, keepdims=True), approx=True)
            o_h = jnp.einsum("bqk,bkd->bqd", attn, v, preferred_element_type=f32)
            # per-head output projection accumulate == concat(heads) @ Wo
            attn_out = attn_out + jnp.dot(
                o_h.reshape(M, dim_head).astype(bf16), wo[h],
                preferred_element_type=f32)
        x = x + attn_out + bo[...]

        # ---- feed-forward sublayer: x = x + W2 . gelu(W1 . LN(x)) ----
        hn = _layer_norm(x, fln_w[...], fln_b[...])
        hm = jnp.dot(hn.astype(bf16), w1[...], preferred_element_type=f32) + b1[...]
        hm = 0.5 * hm * (1.0 + lax.erf(hm * inv_sqrt2))        # exact GELU (torch)
        x = x + jnp.dot(hm.astype(bf16), w2[...], preferred_element_type=f32) + b2[...]

        x_sc[...] = x.reshape(Bt, Np, dim)

        # ---- last layer: final LN + cls pooling + classification head ----
        @pl.when(d == pl.num_programs(1) - 1)
        def _():
            cls_tok = x.reshape(Bt, Np, dim)[:, 0, :]          # (Bt, dim)
            cn = _layer_norm(cls_tok, hln_w[...], hln_b[...])
            o_ref[...] = (jnp.dot(cn.astype(bf16), head_w[...],
                                  preferred_element_type=f32)
                          + head_b[...]).astype(o_ref.dtype)

    return kernel


# ---------------------------- params / forward ----------------------------

def init_vit_params(key, *, image_size, patch_size, channels, num_classes,
                    dim, depth, heads, dim_head, mlp_dim):
    hp = image_size // patch_size
    num_patches = hp * hp
    patch_dim = channels * patch_size * patch_size
    inner = heads * dim_head
    keys = iter(jax.random.split(key, 16 + depth * 16))

    def nrm(shape, scale=0.02):
        return jax.random.normal(next(keys), shape, jnp.float32) * scale

    params = {
        "patch_ln1_w": jnp.ones((patch_dim,), jnp.float32),
        "patch_ln1_b": jnp.zeros((patch_dim,), jnp.float32),
        "patch_w": nrm((patch_dim, dim)),
        "patch_b": nrm((dim,)),
        "patch_ln2_w": jnp.ones((dim,), jnp.float32),
        "patch_ln2_b": jnp.zeros((dim,), jnp.float32),
        "pos_embedding": nrm((1, num_patches + 1, dim), 1.0),  # torch.randn
        "cls_token": nrm((1, 1, dim), 1.0),                    # torch.randn
        "final_ln_w": jnp.ones((dim,), jnp.float32),
        "final_ln_b": jnp.zeros((dim,), jnp.float32),
        "head_w": nrm((dim, num_classes)),
        "head_b": nrm((num_classes,)),
        "layers": [],
    }
    for _ in range(depth):
        params["layers"].append({
            "attn_ln_w": jnp.ones((dim,), jnp.float32),
            "attn_ln_b": jnp.zeros((dim,), jnp.float32),
            "wqkv": nrm((dim, inner * 3)),     # to_qkv (no bias)
            "wo": nrm((inner, dim)),           # to_out linear
            "bo": nrm((dim,)),
            "ff_ln_w": jnp.ones((dim,), jnp.float32),
            "ff_ln_b": jnp.zeros((dim,), jnp.float32),
            "w1": nrm((dim, mlp_dim)),
            "b1": nrm((mlp_dim,)),
            "w2": nrm((mlp_dim, dim)),
            "b2": nrm((dim,)),
        })
    return params


def vit_forward(img, params, *, patch_size, heads, dim_head, num_classes, dim,
                mlp_dim, pool="cls"):
    # layout: img is NCHW (B, C, H, W).
    assert pool == "cls"  # TODO(synk): 'mean' pooling branch not implemented
    B, C, H, W = img.shape
    p = patch_size
    hh, ww = H // p, W // p
    N = hh * ww
    N1 = N + 1
    # token axis padded to sublanes; lane-pad long sequences (e.g. 197 -> 256) so the
    # attention score matrices stay lane-dense.
    Np = _round_up(N1, 128) if N1 > 64 else _round_up(N1, 8)
    patch_dim = C * p * p
    inner = heads * dim_head
    depth = len(params["layers"])
    bf16 = jnp.bfloat16

    cap = _vmem_capacity_bytes()
    bytes_fn = functools.partial(
        _block_vmem_bytes, N=N, Np=Np, patch_dim=patch_dim, dim=dim, heads=heads,
        dim_head=dim_head, mlp_dim=mlp_dim, num_classes=num_classes)
    Bt = _pick_batch_tile(B, N, Np, int(0.7 * cap), bytes_fn)
    nb = B // Bt
    vmem_limit = int(min(0.92 * cap, max(1.25 * bytes_fn(Bt), 48 << 20)))

    # TODO(synk): the 6-D einops patch rearrange stays in XLA (no clean BlockSpec gather).
    xp = img.reshape(B, C, hh, p, ww, p)
    xp = jnp.transpose(xp, (0, 2, 4, 3, 5, 1)).reshape(B * N, patch_dim)

    L = params["layers"]

    def stack2(name):                   # (depth, 1, D) f32 (LN params / biases)
        return jnp.stack([l[name] for l in L])[:, None, :]

    def stack_w(name):                  # (depth, A, B) bf16
        return jnp.stack([l[name] for l in L]).astype(bf16)

    def stack_qkv(which):               # (depth, heads, dim, dim_head) bf16, per head
        ws = [l["wqkv"][:, which * inner:(which + 1) * inner]
              .reshape(dim, heads, dim_head).transpose(1, 0, 2) for l in L]
        return jnp.stack(ws).astype(bf16)

    def stack_wo():                     # (depth, heads, dim_head, dim) bf16, per head
        return jnp.stack([l["wo"].reshape(heads, dim_head, dim) for l in L]).astype(bf16)

    def shared(shape):                  # same block every grid step (fetched once)
        nz = len(shape)
        return pl.BlockSpec(shape, lambda i, d: (0,) * nz)

    def per_layer(tail):                # depth-streamed stacked parameter
        nz = len(tail)
        return pl.BlockSpec((None,) + tail, lambda i, d: (d,) + (0,) * nz)

    kernel = make_vit_kernel(Bt, N, N1, Np, patch_dim, dim, heads, dim_head,
                             mlp_dim, num_classes)

    logits3 = pl.pallas_call(
        kernel,
        out_shape=jax.ShapeDtypeStruct((nb, Bt, num_classes), jnp.float32),
        grid=(nb, depth),
        in_specs=[
            pl.BlockSpec((Bt * N, patch_dim), lambda i, d: (i, 0)),   # patch pixels
            shared((1, patch_dim)), shared((1, patch_dim)),           # patch LN1
            shared((patch_dim, dim)), shared((1, dim)),               # patch proj (bf16)
            shared((1, dim)), shared((1, dim)),                       # patch LN2
            shared((1, dim)),                                         # cls token
            shared((N1, dim)),                                        # pos embedding
            per_layer((1, dim)), per_layer((1, dim)),                 # attn LN
            per_layer((heads, dim, dim_head)),                        # wq (bf16)
            per_layer((heads, dim, dim_head)),                        # wk (bf16)
            per_layer((heads, dim, dim_head)),                        # wv (bf16)
            per_layer((heads, dim_head, dim)),                        # wo (bf16)
            per_layer((1, dim)),                                      # bo
            per_layer((1, dim)), per_layer((1, dim)),                 # ff LN
            per_layer((dim, mlp_dim)), per_layer((1, mlp_dim)),       # w1 (bf16), b1
            per_layer((mlp_dim, dim)), per_layer((1, dim)),           # w2 (bf16), b2
            shared((1, dim)), shared((1, dim)),                       # final LN
            shared((dim, num_classes)), shared((1, num_classes)),     # head (bf16)
        ],
        out_specs=pl.BlockSpec((None, Bt, num_classes), lambda i, d: (i, 0, 0)),
        scratch_shapes=[pltpu.VMEM((Bt, Np, dim), jnp.float32)],      # resident residual
        compiler_params=pltpu.CompilerParams(
            dimension_semantics=("parallel", "arbitrary"),
            vmem_limit_bytes=vmem_limit),
    )(xp,
      r2(params["patch_ln1_w"]), r2(params["patch_ln1_b"]),
      params["patch_w"].astype(bf16), r2(params["patch_b"]),
      r2(params["patch_ln2_w"]), r2(params["patch_ln2_b"]),
      params["cls_token"].reshape(1, dim),
      params["pos_embedding"][0, :N1, :],
      stack2("attn_ln_w"), stack2("attn_ln_b"),
      stack_qkv(0), stack_qkv(1), stack_qkv(2),
      stack_wo(), stack2("bo"),
      stack2("ff_ln_w"), stack2("ff_ln_b"),
      stack_w("w1"), stack2("b1"),
      stack_w("w2"), stack2("b2"),
      r2(params["final_ln_w"]), r2(params["final_ln_b"]),
      params["head_w"].astype(bf16), r2(params["head_b"]))

    return logits3.reshape(B, num_classes)


# ---------------------------- pure-JAX reference ----------------------------

def vit_reference(img, params, *, patch_size, heads, dim_head, dim):
    B, C, H, W = img.shape
    p = patch_size
    hh, ww = H // p, W // p
    x = img.reshape(B, C, hh, p, ww, p)
    x = jnp.transpose(x, (0, 2, 4, 3, 5, 1)).reshape(B, hh * ww, p * p * C)
    x = _layer_norm(x, params["patch_ln1_w"], params["patch_ln1_b"])
    x = x @ params["patch_w"] + params["patch_b"]
    x = _layer_norm(x, params["patch_ln2_w"], params["patch_ln2_b"])
    cls = jnp.broadcast_to(params["cls_token"], (B, 1, dim))
    x = jnp.concatenate([cls, x], axis=1)
    x = x + params["pos_embedding"][:, : x.shape[1]]
    inner = heads * dim_head
    scale = dim_head ** (-0.5)
    for layer in params["layers"]:
        xn = _layer_norm(x, layer["attn_ln_w"], layer["attn_ln_b"])
        qkv = xn @ layer["wqkv"]
        q, k, v = jnp.split(qkv, 3, axis=-1)
        to_h = lambda t: t.reshape(B, -1, heads, dim_head).transpose(0, 2, 1, 3)
        q, k, v = map(to_h, (q, k, v))
        dots = jnp.einsum("bhid,bhjd->bhij", q, k) * scale
        attn = jax.nn.softmax(dots, axis=-1)
        out = jnp.einsum("bhij,bhjd->bhid", attn, v)
        out = out.transpose(0, 2, 1, 3).reshape(B, -1, inner)
        x = out @ layer["wo"] + layer["bo"] + x
        h = _layer_norm(x, layer["ff_ln_w"], layer["ff_ln_b"])
        h = h @ layer["w1"] + layer["b1"]
        h = 0.5 * h * (1.0 + lax.erf(h / jnp.sqrt(2.0)))
        x = h @ layer["w2"] + layer["b2"] + x
    x = _layer_norm(x, params["final_ln_w"], params["final_ln_b"])
    return x[:, 0] @ params["head_w"] + params["head_b"]


# ---------------------------- main ----------------------------

if __name__ == "__main__":
    cfg = dict(image_size=16, patch_size=4, channels=3, num_classes=10,
               dim=32, depth=2, heads=4, dim_head=8, mlp_dim=64)
    key = jax.random.PRNGKey(0)
    pkey, xkey = jax.random.split(key)
    params = init_vit_params(pkey, **cfg)
    img = jax.random.normal(
        xkey, (2, cfg["channels"], cfg["image_size"], cfg["image_size"]), jnp.float32)

    logits = vit_forward(
        img, params,
        patch_size=cfg["patch_size"], heads=cfg["heads"], dim_head=cfg["dim_head"],
        num_classes=cfg["num_classes"], dim=cfg["dim"], mlp_dim=cfg["mlp_dim"],
        pool="cls")
    logits = jax.block_until_ready(logits)

    ref = vit_reference(
        img, params,
        patch_size=cfg["patch_size"], heads=cfg["heads"],
        dim_head=cfg["dim_head"], dim=cfg["dim"])

    assert logits.shape == (2, cfg["num_classes"])
    assert bool(jnp.all(jnp.isfinite(logits)))
    # bf16 weight casts + approx reciprocal in the kernel vs. f32 reference.
    np.testing.assert_allclose(np.asarray(logits), np.asarray(ref), rtol=3e-2, atol=3e-2)
    print("KERNEL_OK")
</pallas_src>

<mosaic_0001>
module attributes {stable_mosaic.version = 11 : i64} {
  func.func @kernel(%arg0: i32, %arg1: i32, %arg2: memref<32x48xf32, #tpu.memory_space<vmem>>, %arg3: memref<1x48xf32, #tpu.memory_space<vmem>>, %arg4: memref<1x48xf32, #tpu.memory_space<vmem>>, %arg5: memref<48x32xbf16, #tpu.memory_space<vmem>>, %arg6: memref<1x32xf32, #tpu.memory_space<vmem>>, %arg7: memref<1x32xf32, #tpu.memory_space<vmem>>, %arg8: memref<1x32xf32, #tpu.memory_space<vmem>>, %arg9: memref<1x32xf32, #tpu.memory_space<vmem>>, %arg10: memref<17x32xf32, #tpu.memory_space<vmem>>, %arg11: memref<1x1x32xf32, #tpu.memory_space<vmem>>, %arg12: memref<1x1x32xf32, #tpu.memory_space<vmem>>, %arg13: memref<1x4x32x8xbf16, #tpu.memory_space<vmem>>, %arg14: memref<1x4x32x8xbf16, #tpu.memory_space<vmem>>, %arg15: memref<1x4x32x8xbf16, #tpu.memory_space<vmem>>, %arg16: memref<1x4x8x32xbf16, #tpu.memory_space<vmem>>, %arg17: memref<1x1x32xf32, #tpu.memory_space<vmem>>, %arg18: memref<1x1x32xf32, #tpu.memory_space<vmem>>, %arg19: memref<1x1x32xf32, #tpu.memory_space<vmem>>, %arg20: memref<1x32x64xbf16, #tpu.memory_space<vmem>>, %arg21: memref<1x1x64xf32, #tpu.memory_space<vmem>>, %arg22: memref<1x64x32xbf16, #tpu.memory_space<vmem>>, %arg23: memref<1x1x32xf32, #tpu.memory_space<vmem>>, %arg24: memref<1x32xf32, #tpu.memory_space<vmem>>, %arg25: memref<1x32xf32, #tpu.memory_space<vmem>>, %arg26: memref<32x10xbf16, #tpu.memory_space<vmem>>, %arg27: memref<1x10xf32, #tpu.memory_space<vmem>>, %arg28: memref<1x2x10xf32, #tpu.memory_space<vmem>>, %arg29: memref<2x24x32xf32, #tpu.memory_space<vmem>>) attributes {dimension_semantics = [#tpu.dimension_semantics<parallel>, #tpu.dimension_semantics<arbitrary>], iteration_bounds = array<i64: 1, 2>, scalar_prefetch = 0 : i64, scratch_operands = 1 : i64, tpu.core_type = #tpu.core_type<tc>, window_params = [{transform_indices = @transform_0, window_bounds = array<i64: 32, 48>}, {pipeline_mode = #tpu.pipeline_mode<synchronous>, transform_indices = @transform_1, window_bounds = array<i64: 1, 48>}, {pipeline_mode = #tpu.pipeline_mode<synchronous>, transform_indices = @transform_2, window_bounds = array<i64: 1, 48>}, {pipeline_mode = #tpu.pipeline_mode<synchronous>, transform_indices = @transform_3, window_bounds = array<i64: 48, 32>}, {pipeline_mode = #tpu.pipeline_mode<synchronous>, transform_indices = @transform_4, window_bounds = array<i64: 1, 32>}, {pipeline_mode = #tpu.pipeline_mode<synchronous>, transform_indices = @transform_5, window_bounds = array<i64: 1, 32>}, {pipeline_mode = #tpu.pipeline_mode<synchronous>, transform_indices = @transform_6, window_bounds = array<i64: 1, 32>}, {pipeline_mode = #tpu.pipeline_mode<synchronous>, transform_indices = @transform_7, window_bounds = array<i64: 1, 32>}, {pipeline_mode = #tpu.pipeline_mode<synchronous>, transform_indices = @transform_8, window_bounds = array<i64: 17, 32>}, {transform_indices = @transform_9, window_bounds = array<i64: 1, 1, 32>}, {transform_indices = @transform_10, window_bounds = array<i64: 1, 1, 32>}, {transform_indices = @transform_11, window_bounds = array<i64: 1, 4, 32, 8>}, {transform_indices = @transform_12, window_bounds = array<i64: 1, 4, 32, 8>}, {transform_indices = @transform_13, window_bounds = array<i64: 1, 4, 32, 8>}, {transform_indices = @transform_14, window_bounds = array<i64: 1, 4, 8, 32>}, {transform_indices = @transform_15, window_bounds = array<i64: 1, 1, 32>}, {transform_indices = @transform_16, window_bounds = array<i64: 1, 1, 32>}, {transform_indices = @transform_17, window_bounds = array<i64: 1, 1, 32>}, {transform_indices = @transform_18, window_bounds = array<i64: 1, 32, 64>}, {transform_indices = @transform_19, window_bounds = array<i64: 1, 1, 64>}, {transform_indices = @transform_20, window_bounds = array<i64: 1, 64, 32>}, {transform_indices = @transform_21, window_bounds = array<i64: 1, 1, 32>}, {pipeline_mode = #tpu.pipeline_mode<synchronous>, transform_indices = @transform_22, window_bounds = array<i64: 1, 32>}, {pipeline_mode = #tpu.pipeline_mode<synchronous>, transform_indices = @transform_23, window_bounds = array<i64: 1, 32>}, {pipeline_mode = #tpu.pipeline_mode<synchronous>, transform_indices = @transform_24, window_bounds = array<i64: 32, 10>}, {pipeline_mode = #tpu.pipeline_mode<synchronous>, transform_indices = @transform_25, window_bounds = array<i64: 1, 10>}, {transform_indices = @transform_26, window_bounds = array<i64: 1, 2, 10>}]} {
    %c0_i32 = arith.constant 0 : i32
    %0 = arith.cmpi eq, %arg1, %c0_i32 : i32
    %1 = arith.extui %0 : i1 to i32
    %c0_i32_0 = arith.constant 0 : i32
    %2 = arith.cmpi ne, %1, %c0_i32_0 : i32
    scf.if %2 {
      %c0_150 = arith.constant 0 : index
      %c0_151 = arith.constant 0 : index
      %233 = vector.load %arg2[%c0_150, %c0_151] : memref<32x48xf32, #tpu.memory_space<vmem>>, vector<32x48xf32>
      %c0_152 = arith.constant 0 : index
      %c0_153 = arith.constant 0 : index
      %234 = vector.load %arg3[%c0_152, %c0_153] : memref<1x48xf32, #tpu.memory_space<vmem>>, vector<1x48xf32>
      %c0_154 = arith.constant 0 : index
      %c0_155 = arith.constant 0 : index
      %235 = vector.load %arg4[%c0_154, %c0_155] : memref<1x48xf32, #tpu.memory_space<vmem>>, vector<1x48xf32>
      %cst_156 = arith.constant dense<0.000000e+00> : vector<32xf32>
      %236 = vector.multi_reduction <add>, %233, %cst_156 [1] : vector<32x48xf32> to vector<32xf32>
      %237 = vector.shape_cast %236 : vector<32xf32> to vector<32x1xf32>
      %cst_157 = arith.constant 4.800000e+01 : f32
      %238 = vector.broadcast %cst_157 : f32 to vector<32x1xf32>
      %239 = arith.divf %237, %238 : vector<32x1xf32>
      %240 = vector.broadcast %239 : vector<32x1xf32> to vector<32x48xf32>
      %241 = arith.subf %233, %240 : vector<32x48xf32>
      %242 = arith.mulf %241, %241 : vector<32x48xf32>
      %cst_158 = arith.constant dense<0.000000e+00> : vector<32xf32>
      %243 = vector.multi_reduction <add>, %242, %cst_158 [1] : vector<32x48xf32> to vector<32xf32>
      %244 = vector.shape_cast %243 : vector<32xf32> to vector<32x1xf32>
      %cst_159 = arith.constant 4.800000e+01 : f32
      %245 = vector.broadcast %cst_159 : f32 to vector<32x1xf32>
      %246 = arith.divf %244, %245 : vector<32x1xf32>
      %247 = vector.broadcast %239 : vector<32x1xf32> to vector<32x48xf32>
      %248 = arith.subf %233, %247 : vector<32x48xf32>
      %cst_160 = arith.constant 9.99999974E-6 : f32
      %249 = vector.broadcast %cst_160 : f32 to vector<32x1xf32>
      %250 = arith.addf %246, %249 : vector<32x1xf32>
      %251 = math.rsqrt %250 : vector<32x1xf32>
      %252 = vector.broadcast %251 : vector<32x1xf32> to vector<32x48xf32>
      %253 = arith.mulf %248, %252 : vector<32x48xf32>
      %254 = vector.broadcast %234 : vector<1x48xf32> to vector<32x48xf32>
      %255 = arith.mulf %253, %254 : vector<32x48xf32>
      %256 = vector.broadcast %235 : vector<1x48xf32> to vector<32x48xf32>
      %257 = arith.addf %255, %256 : vector<32x48xf32>
      %258 = arith.truncf %257 : vector<32x48xf32> to vector<32x48xbf16>
      %c0_161 = arith.constant 0 : index
      %c0_162 = arith.constant 0 : index
      %259 = vector.load %arg5[%c0_161, %c0_162] : memref<48x32xbf16, #tpu.memory_space<vmem>>, vector<48x32xbf16>
      %cst_163 = arith.constant dense<0.000000e+00> : vector<32x32xf32>
      %260 = tpu.matmul %258, %259, %cst_163 {dimension_numbers = #tpu.dot_dimension_numbers<[1], [0], [0], [1], [0, 0, 1, 1], [], []>} : vector<32x48xbf16>, vector<48x32xbf16>, vector<32x32xf32> -> vector<32x32xf32>
      %c0_164 = arith.constant 0 : index
      %c0_165 = arith.constant 0 : index
      %261 = vector.load %arg6[%c0_164, %c0_165] : memref<1x32xf32, #tpu.memory_space<vmem>>, vector<1x32xf32>
      %262 = vector.broadcast %261 : vector<1x32xf32> to vector<32x32xf32>
      %263 = arith.addf %260, %262 : vector<32x32xf32>
      %c0_166 = arith.constant 0 : index
      %c0_167 = arith.constant 0 : index
      %264 = vector.load %arg7[%c0_166, %c0_167] : memref<1x32xf32, #tpu.memory_space<vmem>>, vector<1x32xf32>
      %c0_168 = arith.constant 0 : index
      %c0_169 = arith.constant 0 : index
      %265 = vector.load %arg8[%c0_168, %c0_169] : memref<1x32xf32, #tpu.memory_space<vmem>>, vector<1x32xf32>
      %cst_170 = arith.constant dense<0.000000e+00> : vector<32xf32>
      %266 = vector.multi_reduction <add>, %263, %cst_170 [1] : vector<32x32xf32> to vector<32xf32>
      %267 = vector.shape_cast %266 : vector<32xf32> to vector<32x1xf32>
      %cst_171 = arith.constant 3.200000e+01 : f32
      %268 = vector.broadcast %cst_171 : f32 to vector<32x1xf32>
      %269 = arith.divf %267, %268 : vector<32x1xf32>
      %270 = vector.broadcast %269 : vector<32x1xf32> to vector<32x32xf32>
      %271 = arith.subf %263, %270 : vector<32x32xf32>
      %272 = arith.mulf %271, %271 : vector<32x32xf32>
      %cst_172 = arith.constant dense<0.000000e+00> : vector<32xf32>
      %273 = vector.multi_reduction <add>, %272, %cst_172 [1] : vector<32x32xf32> to vector<32xf32>
      %274 = vector.shape_cast %273 : vector<32xf32> to vector<32x1xf32>
      %cst_173 = arith.constant 3.200000e+01 : f32
      %275 = vector.broadcast %cst_173 : f32 to vector<32x1xf32>
      %276 = arith.divf %274, %275 : vector<32x1xf32>
      %277 = vector.broadcast %269 : vector<32x1xf32> to vector<32x32xf32>
      %278 = arith.subf %263, %277 : vector<32x32xf32>
      %cst_174 = arith.constant 9.99999974E-6 : f32
      %279 = vector.broadcast %cst_174 : f32 to vector<32x1xf32>
      %280 = arith.addf %276, %279 : vector<32x1xf32>
      %281 = math.rsqrt %280 : vector<32x1xf32>
      %282 = vector.broadcast %281 : vector<32x1xf32> to vector<32x32xf32>
      %283 = arith.mulf %278, %282 : vector<32x32xf32>
      %284 = vector.broadcast %264 : vector<1x32xf32> to vector<32x32xf32>
      %285 = arith.mulf %283, %284 : vector<32x32xf32>
      %286 = vector.broadcast %265 : vector<1x32xf32> to vector<32x32xf32>
      %287 = arith.addf %285, %286 : vector<32x32xf32>
      %288 = vector.shape_cast %287 : vector<32x32xf32> to vector<2x16x32xf32>
      %c0_175 = arith.constant 0 : index
      %c0_176 = arith.constant 0 : index
      %289 = vector.load %arg9[%c0_175, %c0_176] : memref<1x32xf32, #tpu.memory_space<vmem>>, vector<1x32xf32>
      %c0_177 = arith.constant 0 : index
      %c0_178 = arith.constant 0 : index
      %290 = vector.load %arg10[%c0_177, %c0_178] : memref<17x32xf32, #tpu.memory_space<vmem>>, vector<1x32xf32>
      %291 = arith.addf %289, %290 : vector<1x32xf32>
      %292 = vector.shape_cast %291 : vector<1x32xf32> to vector<1x1x32xf32>
      %293 = vector.shape_cast %292 : vector<1x1x32xf32> to vector<1x1x32xf32>
      %294 = vector.broadcast %293 : vector<1x1x32xf32> to vector<2x1x32xf32>
      %c0_179 = arith.constant 0 : index
      %c0_180 = arith.constant 0 : index
      %c0_181 = arith.constant 0 : index
      %295 = vector.load %arg29[%c0_179, %c0_180, %c0_181] : memref<2x24x32xf32, #tpu.memory_space<vmem>>, vector<2x1x32xf32>
      tpu.vector_store %arg29[%c0_179, %c0_180, %c0_181], %294 {strides = array<i32>} : memref<2x24x32xf32, #tpu.memory_space<vmem>>, vector<2x1x32xf32>,
      %c1_182 = arith.constant 1 : index
      %c0_183 = arith.constant 0 : index
      %296 = vector.load %arg10[%c1_182, %c0_183] : memref<17x32xf32, #tpu.memory_space<vmem>>, vector<16x32xf32>
      %297 = vector.shape_cast %296 : vector<16x32xf32> to vector<1x16x32xf32>
      %298 = vector.broadcast %297 : vector<1x16x32xf32> to vector<2x16x32xf32>
      %299 = arith.addf %288, %298 : vector<2x16x32xf32>
      %c0_184 = arith.constant 0 : index
      %c1_185 = arith.constant 1 : index
      %c0_186 = arith.constant 0 : index
      %300 = vector.load %arg29[%c0_184, %c1_185, %c0_186] : memref<2x24x32xf32, #tpu.memory_space<vmem>>, vector<2x16x32xf32>
      tpu.vector_store %arg29[%c0_184, %c1_185, %c0_186], %299 {strides = array<i32>} : memref<2x24x32xf32, #tpu.memory_space<vmem>>, vector<2x16x32xf32>,
      %cst_187 = arith.constant 0.000000e+00 : f32
      %301 = vector.broadcast %cst_187 : f32 to vector<2x7x32xf32>
      %c0_188 = arith.constant 0 : index
      %c17 = arith.constant 17 : index
      %c0_189 = arith.constant 0 : index
      %302 = vector.load %arg29[%c0_188, %c17, %c0_189] : memref<2x24x32xf32, #tpu.memory_space<vmem>>, vector<2x7x32xf32>
      tpu.vector_store %arg29[%c0_188, %c17, %c0_189], %301 {strides = array<i32>} : memref<2x24x32xf32, #tpu.memory_space<vmem>>, vector<2x7x32xf32>,
    } else {
    }
    %c0 = arith.constant 0 : index
    %c0_1 = arith.constant 0 : index
    %c0_2 = arith.constant 0 : index
    %3 = vector.load %arg29[%c0, %c0_1, %c0_2] : memref<2x24x32xf32, #tpu.memory_space<vmem>>, vector<2x24x32xf32>
    %4 = vector.shape_cast %3 : vector<2x24x32xf32> to vector<48x32xf32>
    %c0_3 = arith.constant 0 : index
    %c0_4 = arith.constant 0 : index
    %c0_5 = arith.constant 0 : index
    %5 = vector.load %arg11[%c0_3, %c0_4, %c0_5] : memref<1x1x32xf32, #tpu.memory_space<vmem>>, vector<1x1x32xf32>
    %6 = vector.shape_cast %5 : vector<1x1x32xf32> to vector<1x32xf32>
    %c0_6 = arith.constant 0 : index
    %c0_7 = arith.constant 0 : index
    %c0_8 = arith.constant 0 : index
    %7 = vector.load %arg12[%c0_6, %c0_7, %c0_8] : memref<1x1x32xf32, #tpu.memory_space<vmem>>, vector<1x1x32xf32>
    %8 = vector.shape_cast %7 : vector<1x1x32xf32> to vector<1x32xf32>
    %cst = arith.constant dense<0.000000e+00> : vector<48xf32>
    %9 = vector.multi_reduction <add>, %4, %cst [1] : vector<48x32xf32> to vector<48xf32>
    %10 = vector.shape_cast %9 : vector<48xf32> to vector<48x1xf32>
    %cst_9 = arith.constant 3.200000e+01 : f32
    %11 = vector.broadcast %cst_9 : f32 to vector<48x1xf32>
    %12 = arith.divf %10, %11 : vector<48x1xf32>
    %13 = vector.broadcast %12 : vector<48x1xf32> to vector<48x32xf32>
    %14 = arith.subf %4, %13 : vector<48x32xf32>
    %15 = arith.mulf %14, %14 : vector<48x32xf32>
    %cst_10 = arith.constant dense<0.000000e+00> : vector<48xf32>
    %16 = vector.multi_reduction <add>, %15, %cst_10 [1] : vector<48x32xf32> to vector<48xf32>
    %17 = vector.shape_cast %16 : vector<48xf32> to vector<48x1xf32>
    %cst_11 = arith.constant 3.200000e+01 : f32
    %18 = vector.broadcast %cst_11 : f32 to vector<48x1xf32>
    %19 = arith.divf %17, %18 : vector<48x1xf32>
    %20 = vector.broadcast %12 : vector<48x1xf32> to vector<48x32xf32>
    %21 = arith.subf %4, %20 : vector<48x32xf32>
    %cst_12 = arith.constant 9.99999974E-6 : f32
    %22 = vector.broadcast %cst_12 : f32 to vector<48x1xf32>
    %23 = arith.addf %19, %22 : vector<48x1xf32>
    %24 = math.rsqrt %23 : vector<48x1xf32>
    %25 = vector.broadcast %24 : vector<48x1xf32> to vector<48x32xf32>
    %26 = arith.mulf %21, %25 : vector<48x32xf32>
    %27 = vector.broadcast %6 : vector<1x32xf32> to vector<48x32xf32>
    %28 = arith.mulf %26, %27 : vector<48x32xf32>
    %29 = vector.broadcast %8 : vector<1x32xf32> to vector<48x32xf32>
    %30 = arith.addf %28, %29 : vector<48x32xf32>
    %31 = arith.truncf %30 : vector<48x32xf32> to vector<48x32xbf16>
    %32 = tpu.iota {dimensions = array<i32: 2>} : vector<2x24x24xi32>
    %c17_i32 = arith.constant 17 : i32
    %33 = vector.broadcast %c17_i32 : i32 to vector<2x24x24xi32>
    %34 = arith.cmpi slt, %32, %33 : vector<2x24x24xi32>
    %cst_13 = arith.constant 0.000000e+00 : f32
    %35 = vector.broadcast %cst_13 : f32 to vector<48x32xf32>
    %c0_14 = arith.constant 0 : index
    %c0_15 = arith.constant 0 : index
    %c0_16 = arith.constant 0 : index
    %c0_17 = arith.constant 0 : index
    %36 = vector.load %arg13[%c0_14, %c0_15, %c0_16, %c0_17] : memref<1x4x32x8xbf16, #tpu.memory_space<vmem>>, vector<1x1x32x8xbf16>
    %37 = vector.shape_cast %36 : vector<1x1x32x8xbf16> to vector<32x8xbf16>
    %cst_18 = arith.constant dense<0.000000e+00> : vector<48x8xf32>
    %38 = tpu.matmul %31, %37, %cst_18 {dimension_numbers = #tpu.dot_dimension_numbers<[1], [0], [0], [1], [0, 0, 1, 1], [], []>} : vector<48x32xbf16>, vector<32x8xbf16>, vector<48x8xf32> -> vector<48x8xf32>
    %39 = vector.shape_cast %38 : vector<48x8xf32> to vector<2x24x8xf32>
    %c0_19 = arith.constant 0 : index
    %c0_20 = arith.constant 0 : index
    %c0_21 = arith.constant 0 : index
    %c0_22 = arith.constant 0 : index
    %40 = vector.load %arg14[%c0_19, %c0_20, %c0_21, %c0_22] : memref<1x4x32x8xbf16, #tpu.memory_space<vmem>>, vector<1x1x32x8xbf16>
    %41 = vector.shape_cast %40 : vector<1x1x32x8xbf16> to vector<32x8xbf16>
    %cst_23 = arith.constant dense<0.000000e+00> : vector<48x8xf32>
    %42 = tpu.matmul %31, %41, %cst_23 {dimension_numbers = #tpu.dot_dimension_numbers<[1], [0], [0], [1], [0, 0, 1, 1], [], []>} : vector<48x32xbf16>, vector<32x8xbf16>, vector<48x8xf32> -> vector<48x8xf32>
    %43 = vector.shape_cast %42 : vector<48x8xf32> to vector<2x24x8xf32>
    %c0_24 = arith.constant 0 : index
    %c0_25 = arith.constant 0 : index
    %c0_26 = arith.constant 0 : index
    %c0_27 = arith.constant 0 : index
    %44 = vector.load %arg15[%c0_24, %c0_25, %c0_26, %c0_27] : memref<1x4x32x8xbf16, #tpu.memory_space<vmem>>, vector<1x1x32x8xbf16>
    %45 = vector.shape_cast %44 : vector<1x1x32x8xbf16> to vector<32x8xbf16>
    %cst_28 = arith.constant dense<0.000000e+00> : vector<48x8xf32>
    %46 = tpu.matmul %31, %45, %cst_28 {dimension_numbers = #tpu.dot_dimension_numbers<[1], [0], [0], [1], [0, 0, 1, 1], [], []>} : vector<48x32xbf16>, vector<32x8xbf16>, vector<48x8xf32> -> vector<48x8xf32>
    %47 = vector.shape_cast %46 : vector<48x8xf32> to vector<2x24x8xf32>
    "tpu.trace_start"() <{level = 10 : i32, message = "bqd,bkd->bqk"}> : () -> ()
    %cst_29 = arith.constant dense<0.000000e+00> : vector<2x24x24xf32>
    %48 = tpu.matmul %39, %43, %cst_29 {dimension_numbers = #tpu.dot_dimension_numbers<[2], [2], [1], [1], [0, 0, 0, 1, 1, 1], [0], [0]>} : vector<2x24x8xf32>, vector<2x24x8xf32>, vector<2x24x24xf32> -> vector<2x24x24xf32>
    "tpu.trace_stop"() : () -> ()
    %cst_30 = arith.constant 0.353553385 : f32
    %49 = vector.broadcast %cst_30 : f32 to vector<2x24x24xf32>
    %50 = arith.mulf %48, %49 : vector<2x24x24xf32>
    %cst_31 = arith.constant -1.000000e+30 : f32
    %51 = vector.broadcast %cst_31 : f32 to vector<2x24x24xf32>
    %52 = arith.select %34, %50, %51 : vector<2x24x24xi1>, vector<2x24x24xf32>
    %cst_32 = arith.constant dense<0xFF800000> : vector<2x24xf32>
    %53 = vector.multi_reduction <maximumf>, %52, %cst_32 [2] : vector<2x24x24xf32> to vector<2x24xf32>
    %54 = vector.shape_cast %53 : vector<2x24xf32> to vector<2x24x1xf32>
    %55 = vector.broadcast %54 : vector<2x24x1xf32> to vector<2x24x24xf32>
    %56 = arith.subf %52, %55 : vector<2x24x24xf32>
    %57 = math.exp %56 : vector<2x24x24xf32>
    %cst_33 = arith.constant dense<0.000000e+00> : vector<2x24xf32>
    %58 = vector.multi_reduction <add>, %57, %cst_33 [2] : vector<2x24x24xf32> to vector<2x24xf32>
    %59 = vector.shape_cast %58 : vector<2x24xf32> to vector<2x24x1xf32>
    %60 = tpu.reciprocal %59 {approx = true} : vector<2x24x1xf32> -> vector<2x24x1xf32>
    %61 = vector.broadcast %60 : vector<2x24x1xf32> to vector<2x24x24xf32>
    %62 = arith.mulf %57, %61 : vector<2x24x24xf32>
    "tpu.trace_start"() <{level = 10 : i32, message = "bqk,bkd->bqd"}> : () -> ()
    %cst_34 = arith.constant dense<0.000000e+00> : vector<2x24x8xf32>
    %63 = tpu.matmul %62, %47, %cst_34 {dimension_numbers = #tpu.dot_dimension_numbers<[2], [1], [1], [2], [0, 0, 0, 1, 1, 2], [0], [0]>} : vector<2x24x24xf32>, vector<2x24x8xf32>, vector<2x24x8xf32> -> vector<2x24x8xf32>
    "tpu.trace_stop"() : () -> ()
    %64 = vector.shape_cast %63 : vector<2x24x8xf32> to vector<48x8xf32>
    %65 = arith.truncf %64 : vector<48x8xf32> to vector<48x8xbf16>
    %c0_35 = arith.constant 0 : index
    %c0_36 = arith.constant 0 : index
    %c0_37 = arith.constant 0 : index
    %c0_38 = arith.constant 0 : index
    %66 = vector.load %arg16[%c0_35, %c0_36, %c0_37, %c0_38] : memref<1x4x8x32xbf16, #tpu.memory_space<vmem>>, vector<1x1x8x32xbf16>
    %67 = vector.shape_cast %66 : vector<1x1x8x32xbf16> to vector<8x32xbf16>
    %cst_39 = arith.constant dense<0.000000e+00> : vector<48x32xf32>
    %68 = tpu.matmul %65, %67, %cst_39 {dimension_numbers = #tpu.dot_dimension_numbers<[1], [0], [0], [1], [0, 0, 1, 1], [], []>} : vector<48x8xbf16>, vector<8x32xbf16>, vector<48x32xf32> -> vector<48x32xf32>
    %69 = arith.addf %35, %68 : vector<48x32xf32>
    %c0_40 = arith.constant 0 : index
    %c1 = arith.constant 1 : index
    %c0_41 = arith.constant 0 : index
    %c0_42 = arith.constant 0 : index
    %70 = vector.load %arg13[%c0_40, %c1, %c0_41, %c0_42] : memref<1x4x32x8xbf16, #tpu.memory_space<vmem>>, vector<1x1x32x8xbf16>
    %71 = vector.shape_cast %70 : vector<1x1x32x8xbf16> to vector<32x8xbf16>
    %cst_43 = arith.constant dense<0.000000e+00> : vector<48x8xf32>
    %72 = tpu.matmul %31, %71, %cst_43 {dimension_numbers = #tpu.dot_dimension_numbers<[1], [0], [0], [1], [0, 0, 1, 1], [], []>} : vector<48x32xbf16>, vector<32x8xbf16>, vector<48x8xf32> -> vector<48x8xf32>
    %73 = vector.shape_cast %72 : vector<48x8xf32> to vector<2x24x8xf32>
    %c0_44 = arith.constant 0 : index
    %c1_45 = arith.constant 1 : index
    %c0_46 = arith.constant 0 : index
    %c0_47 = arith.constant 0 : index
    %74 = vector.load %arg14[%c0_44, %c1_45, %c0_46, %c0_47] : memref<1x4x32x8xbf16, #tpu.memory_space<vmem>>, vector<1x1x32x8xbf16>
    %75 = vector.shape_cast %74 : vector<1x1x32x8xbf16> to vector<32x8xbf16>
    %cst_48 = arith.constant dense<0.000000e+00> : vector<48x8xf32>
    %76 = tpu.matmul %31, %75, %cst_48 {dimension_numbers = #tpu.dot_dimension_numbers<[1], [0], [0], [1], [0, 0, 1, 1], [], []>} : vector<48x32xbf16>, vector<32x8xbf16>, vector<48x8xf32> -> vector<48x8xf32>
    %77 = vector.shape_cast %76 : vector<48x8xf32> to vector<2x24x8xf32>
    %c0_49 = arith.constant 0 : index
    %c1_50 = arith.constant 1 : index
    %c0_51 = arith.constant 0 : index
    %c0_52 = arith.constant 0 : index
    %78 = vector.load %arg15[%c0_49, %c1_50, %c0_51, %c0_52] : memref<1x4x32x8xbf16, #tpu.memory_space<vmem>>, vector<1x1x32x8xbf16>
    %79 = vector.shape_cast %78 : vector<1x1x32x8xbf16> to vector<32x8xbf16>
    %cst_53 = arith.constant dense<0.000000e+00> : vector<48x8xf32>
    %80 = tpu.matmul %31, %79, %cst_53 {dimension_numbers = #tpu.dot_dimension_numbers<[1], [0], [0], [1], [0, 0, 1, 1], [], []>} : vector<48x32xbf16>, vector<32x8xbf16>, vector<48x8xf32> -> vector<48x8xf32>
    %81 = vector.shape_cast %80 : vector<48x8xf32> to vector<2x24x8xf32>
    "tpu.trace_start"() <{level = 10 : i32, message = "bqd,bkd->bqk"}> : () -> ()
    %cst_54 = arith.constant dense<0.000000e+00> : vector<2x24x24xf32>
    %82 = tpu.matmul %73, %77, %cst_54 {dimension_numbers = #tpu.dot_dimension_numbers<[2], [2], [1], [1], [0, 0, 0, 1, 1, 1], [0], [0]>} : vector<2x24x8xf32>, vector<2x24x8xf32>, vector<2x24x24xf32> -> vector<2x24x24xf32>
    "tpu.trace_stop"() : () -> ()
    %cst_55 = arith.constant 0.353553385 : f32
    %83 = vector.broadcast %cst_55 : f32 to vector<2x24x24xf32>
    %84 = arith.mulf %82, %83 : vector<2x24x24xf32>
    %cst_56 = arith.constant -1.000000e+30 : f32
    %85 = vector.broadcast %cst_56 : f32 to vector<2x24x24xf32>
    %86 = arith.select %34, %84, %85 : vector<2x24x24xi1>, vector<2x24x24xf32>
    %cst_57 = arith.constant dense<0xFF800000> : vector<2x24xf32>
    %87 = vector.multi_reduction <maximumf>, %86, %cst_57 [2] : vector<2x24x24xf32> to vector<2x24xf32>
    %88 = vector.shape_cast %87 : vector<2x24xf32> to vector<2x24x1xf32>
    %89 = vector.broadcast %88 : vector<2x24x1xf32> to vector<2x24x24xf32>
    %90 = arith.subf %86, %89 : vector<2x24x24xf32>
    %91 = math.exp %90 : vector<2x24x24xf32>
    %cst_58 = arith.constant dense<0.000000e+00> : vector<2x24xf32>
    %92 = vector.multi_reduction <add>, %91, %cst_58 [2] : vector<2x24x24xf32> to vector<2x24xf32>
    %93 = vector.shape_cast %92 : vector<2x24xf32> to vector<2x24x1xf32>
    %94 = tpu.reciprocal %93 {approx = true} : vector<2x24x1xf32> -> vector<2x24x1xf32>
    %95 = vector.broadcast %94 : vector<2x24x1xf32> to vector<2x24x24xf32>
    %96 = arith.mulf %91, %95 : vector<2x24x24xf32>
    "tpu.trace_start"() <{level = 10 : i32, message = "bqk,bkd->bqd"}> : () -> ()
    %cst_59 = arith.constant dense<0.000000e+00> : vector<2x24x8xf32>
    %97 = tpu.matmul %96, %81, %cst_59 {dimension_numbers = #tpu.dot_dimension_numbers<[2], [1], [1], [2], [0, 0, 0, 1, 1, 2], [0], [0]>} : vector<2x24x24xf32>, vector<2x24x8xf32>, vector<2x24x8xf32> -> vector<2x24x8xf32>
    "tpu.trace_stop"() : () -> ()
    %98 = vector.shape_cast %97 : vector<2x24x8xf32> to vector<48x8xf32>
    %99 = arith.truncf %98 : vector<48x8xf32> to vector<48x8xbf16>
    %c0_60 = arith.constant 0 : index
    %c1_61 = arith.constant 1 : index
    %c0_62 = arith.constant 0 : index
    %c0_63 = arith.constant 0 : index
    %100 = vector.load %arg16[%c0_60, %c1_61, %c0_62, %c0_63] : memref<1x4x8x32xbf16, #tpu.memory_space<vmem>>, vector<1x1x8x32xbf16>
    %101 = vector.shape_cast %100 : vector<1x1x8x32xbf16> to vector<8x32xbf16>
    %cst_64 = arith.constant dense<0.000000e+00> : vector<48x32xf32>
    %102 = tpu.matmul %99, %101, %cst_64 {dimension_numbers = #tpu.dot_dimension_numbers<[1], [0], [0], [1], [0, 0, 1, 1], [], []>} : vector<48x8xbf16>, vector<8x32xbf16>, vector<48x32xf32> -> vector<48x32xf32>
    %103 = arith.addf %69, %102 : vector<48x32xf32>
    %c0_65 = arith.constant 0 : index
    %c2 = arith.constant 2 : index
    %c0_66 = arith.constant 0 : index
    %c0_67 = arith.constant 0 : index
    %104 = vector.load %arg13[%c0_65, %c2, %c0_66, %c0_67] : memref<1x4x32x8xbf16, #tpu.memory_space<vmem>>, vector<1x1x32x8xbf16>
    %105 = vector.shape_cast %104 : vector<1x1x32x8xbf16> to vector<32x8xbf16>
    %cst_68 = arith.constant dense<0.000000e+00> : vector<48x8xf32>
    %106 = tpu.matmul %31, %105, %cst_68 {dimension_numbers = #tpu.dot_dimension_numbers<[1], [0], [0], [1], [0, 0, 1, 1], [], []>} : vector<48x32xbf16>, vector<32x8xbf16>, vector<48x8xf32> -> vector<48x8xf32>
    %107 = vector.shape_cast %106 : vector<48x8xf32> to vector<2x24x8xf32>
    %c0_69 = arith.constant 0 : index
    %c2_70 = arith.constant 2 : index
    %c0_71 = arith.constant 0 : index
    %c0_72 = arith.constant 0 : index
    %108 = vector.load %arg14[%c0_69, %c2_70, %c0_71, %c0_72] : memref<1x4x32x8xbf16, #tpu.memory_space<vmem>>, vector<1x1x32x8xbf16>
    %109 = vector.shape_cast %108 : vector<1x1x32x8xbf16> to vector<32x8xbf16>
    %cst_73 = arith.constant dense<0.000000e+00> : vector<48x8xf32>
    %110 = tpu.matmul %31, %109, %cst_73 {dimension_numbers = #tpu.dot_dimension_numbers<[1], [0], [0], [1], [0, 0, 1, 1], [], []>} : vector<48x32xbf16>, vector<32x8xbf16>, vector<48x8xf32> -> vector<48x8xf32>
    %111 = vector.shape_cast %110 : vector<48x8xf32> to vector<2x24x8xf32>
    %c0_74 = arith.constant 0 : index
    %c2_75 = arith.constant 2 : index
    %c0_76 = arith.constant 0 : index
    %c0_77 = arith.constant 0 : index
    %112 = vector.load %arg15[%c0_74, %c2_75, %c0_76, %c0_77] : memref<1x4x32x8xbf16, #tpu.memory_space<vmem>>, vector<1x1x32x8xbf16>
    %113 = vector.shape_cast %112 : vector<1x1x32x8xbf16> to vector<32x8xbf16>
    %cst_78 = arith.constant dense<0.000000e+00> : vector<48x8xf32>
    %114 = tpu.matmul %31, %113, %cst_78 {dimension_numbers = #tpu.dot_dimension_numbers<[1], [0], [0], [1], [0, 0, 1, 1], [], []>} : vector<48x32xbf16>, vector<32x8xbf16>, vector<48x8xf32> -> vector<48x8xf32>
    %115 = vector.shape_cast %114 : vector<48x8xf32> to vector<2x24x8xf32>
    "tpu.trace_start"() <{level = 10 : i32, message = "bqd,bkd->bqk"}> : () -> ()
    %cst_79 = arith.constant dense<0.000000e+00> : vector<2x24x24xf32>
    %116 = tpu.matmul %107, %111, %cst_79 {dimension_numbers = #tpu.dot_dimension_numbers<[2], [2], [1], [1], [0, 0, 0, 1, 1, 1], [0], [0]>} : vector<2x24x8xf32>, vector<2x24x8xf32>, vector<2x24x24xf32> -> vector<2x24x24xf32>
    "tpu.trace_stop"() : () -> ()
    %cst_80 = arith.constant 0.353553385 : f32
    %117 = vector.broadcast %cst_80 : f32 to vector<2x24x24xf32>
    %118 = arith.mulf %116, %117 : vector<2x24x24xf32>
    %cst_81 = arith.constant -1.000000e+30 : f32
    %119 = vector.broadcast %cst_81 : f32 to vector<2x24x24xf32>
    %120 = arith.select %34, %118, %119 : vector<2x24x24xi1>, vector<2x24x24xf32>
    %cst_82 = arith.constant dense<0xFF800000> : vector<2x24xf32>
    %121 = vector.multi_reduction <maximumf>, %120, %cst_82 [2] : vector<2x24x24xf32> to vector<2x24xf32>
    %122 = vector.shape_cast %121 : vector<2x24xf32> to vector<2x24x1xf32>
    %123 = vector.broadcast %122 : vector<2x24x1xf32> to vector<2x24x24xf32>
    %124 = arith.subf %120, %123 : vector<2x24x24xf32>
    %125 = math.exp %124 : vector<2x24x24xf32>
    %cst_83 = arith.constant dense<0.000000e+00> : vector<2x24xf32>
    %126 = vector.multi_reduction <add>, %125, %cst_83 [2] : vector<2x24x24xf32> to vector<2x24xf32>
    %127 = vector.shape_cast %126 : vector<2x24xf32> to vector<2x24x1xf32>
    %128 = tpu.reciprocal %127 {approx = true} : vector<2x24x1xf32> -> vector<2x24x1xf32>
    %129 = vector.broadcast %128 : vector<2x24x1xf32> to vector<2x24x24xf32>
    %130 = arith.mulf %125, %129 : vector<2x24x24xf32>
    "tpu.trace_start"() <{level = 10 : i32, message = "bqk,bkd->bqd"}> : () -> ()
    %cst_84 = arith.constant dense<0.000000e+00> : vector<2x24x8xf32>
    %131 = tpu.matmul %130, %115, %cst_84 {dimension_numbers = #tpu.dot_dimension_numbers<[2], [1], [1], [2], [0, 0, 0, 1, 1, 2], [0], [0]>} : vector<2x24x24xf32>, vector<2x24x8xf32>, vector<2x24x8xf32> -> vector<2x24x8xf32>
    "tpu.trace_stop"() : () -> ()
    %132 = vector.shape_cast %131 : vector<2x24x8xf32> to vector<48x8xf32>
    %133 = arith.truncf %132 : vector<48x8xf32> to vector<48x8xbf16>
    %c0_85 = arith.constant 0 : index
    %c2_86 = arith.constant 2 : index
    %c0_87 = arith.constant 0 : index
    %c0_88 = arith.constant 0 : index
    %134 = vector.load %arg16[%c0_85, %c2_86, %c0_87, %c0_88] : memref<1x4x8x32xbf16, #tpu.memory_space<vmem>>, vector<1x1x8x32xbf16>
    %135 = vector.shape_cast %134 : vector<1x1x8x32xbf16> to vector<8x32xbf16>
    %cst_89 = arith.constant dense<0.000000e+00> : vector<48x32xf32>
    %136 = tpu.matmul %133, %135, %cst_89 {dimension_numbers = #tpu.dot_dimension_numbers<[1], [0], [0], [1], [0, 0, 1, 1], [], []>} : vector<48x8xbf16>, vector<8x32xbf16>, vector<48x32xf32> -> vector<48x32xf32>
    %137 = arith.addf %103, %136 : vector<48x32xf32>
    %c0_90 = arith.constant 0 : index
    %c3 = arith.constant 3 : index
    %c0_91 = arith.constant 0 : index
    %c0_92 = arith.constant 0 : index
    %138 = vector.load %arg13[%c0_90, %c3, %c0_91, %c0_92] : memref<1x4x32x8xbf16, #tpu.memory_space<vmem>>, vector<1x1x32x8xbf16>
    %139 = vector.shape_cast %138 : vector<1x1x32x8xbf16> to vector<32x8xbf16>
    %cst_93 = arith.constant dense<0.000000e+00> : vector<48x8xf32>
    %140 = tpu.matmul %31, %139, %cst_93 {dimension_numbers = #tpu.dot_dimension_numbers<[1], [0], [0], [1], [0, 0, 1, 1], [], []>} : vector<48x32xbf16>, vector<32x8xbf16>, vector<48x8xf32> -> vector<48x8xf32>
    %141 = vector.shape_cast %140 : vector<48x8xf32> to vector<2x24x8xf32>
    %c0_94 = arith.constant 0 : index
    %c3_95 = arith.constant 3 : index
    %c0_96 = arith.constant 0 : index
    %c0_97 = arith.constant 0 : index
    %142 = vector.load %arg14[%c0_94, %c3_95, %c0_96, %c0_97] : memref<1x4x32x8xbf16, #tpu.memory_space<vmem>>, vector<1x1x32x8xbf16>
    %143 = vector.shape_cast %142 : vector<1x1x32x8xbf16> to vector<32x8xbf16>
    %cst_98 = arith.constant dense<0.000000e+00> : vector<48x8xf32>
    %144 = tpu.matmul %31, %143, %cst_98 {dimension_numbers = #tpu.dot_dimension_numbers<[1], [0], [0], [1], [0, 0, 1, 1], [], []>} : vector<48x32xbf16>, vector<32x8xbf16>, vector<48x8xf32> -> vector<48x8xf32>
    %145 = vector.shape_cast %144 : vector<48x8xf32> to vector<2x24x8xf32>
    %c0_99 = arith.constant 0 : index
    %c3_100 = arith.constant 3 : index
    %c0_101 = arith.constant 0 : index
    %c0_102 = arith.constant 0 : index
    %146 = vector.load %arg15[%c0_99, %c3_100, %c0_101, %c0_102] : memref<1x4x32x8xbf16, #tpu.memory_space<vmem>>, vector<1x1x32x8xbf16>
    %147 = vector.shape_cast %146 : vector<1x1x32x8xbf16> to vector<32x8xbf16>
    %cst_103 = arith.constant dense<0.000000e+00> : vector<48x8xf32>
    %148 = tpu.matmul %31, %147, %cst_103 {dimension_numbers = #tpu.dot_dimension_numbers<[1], [0], [0], [1], [0, 0, 1, 1], [], []>} : vector<48x32xbf16>, vector<32x8xbf16>, vector<48x8xf32> -> vector<48x8xf32>
    %149 = vector.shape_cast %148 : vector<48x8xf32> to vector<2x24x8xf32>
    "tpu.trace_start"() <{level = 10 : i32, message = "bqd,bkd->bqk"}> : () -> ()
    %cst_104 = arith.constant dense<0.000000e+00> : vector<2x24x24xf32>
    %150 = tpu.matmul %141, %145, %cst_104 {dimension_numbers = #tpu.dot_dimension_numbers<[2], [2], [1], [1], [0, 0, 0, 1, 1, 1], [0], [0]>} : vector<2x24x8xf32>, vector<2x24x8xf32>, vector<2x24x24xf32> -> vector<2x24x24xf32>
    "tpu.trace_stop"() : () -> ()
    %cst_105 = arith.constant 0.353553385 : f32
    %151 = vector.broadcast %cst_105 : f32 to vector<2x24x24xf32>
    %152 = arith.mulf %150, %151 : vector<2x24x24xf32>
    %cst_106 = arith.constant -1.000000e+30 : f32
    %153 = vector.broadcast %cst_106 : f32 to vector<2x24x24xf32>
    %154 = arith.select %34, %152, %153 : vector<2x24x24xi1>, vector<2x24x24xf32>
    %cst_107 = arith.constant dense<0xFF800000> : vector<2x24xf32>
    %155 = vector.multi_reduction <maximumf>, %154, %cst_107 [2] : vector<2x24x24xf32> to vector<2x24xf32>
    %156 = vector.shape_cast %155 : vector<2x24xf32> to vector<2x24x1xf32>
    %157 = vector.broadcast %156 : vector<2x24x1xf32> to vector<2x24x24xf32>
    %158 = arith.subf %154, %157 : vector<2x24x24xf32>
    %159 = math.exp %158 : vector<2x24x24xf32>
    %cst_108 = arith.constant dense<0.000000e+00> : vector<2x24xf32>
    %160 = vector.multi_reduction <add>, %159, %cst_108 [2] : vector<2x24x24xf32> to vector<2x24xf32>
    %161 = vector.shape_cast %160 : vector<2x24xf32> to vector<2x24x1xf32>
    %162 = tpu.reciprocal %161 {approx = true} : vector<2x24x1xf32> -> vector<2x24x1xf32>
    %163 = vector.broadcast %162 : vector<2x24x1xf32> to vector<2x24x24xf32>
    %164 = arith.mulf %159, %163 : vector<2x24x24xf32>
    "tpu.trace_start"() <{level = 10 : i32, message = "bqk,bkd->bqd"}> : () -> ()
    %cst_109 = arith.constant dense<0.000000e+00> : vector<2x24x8xf32>
    %165 = tpu.matmul %164, %149, %cst_109 {dimension_numbers = #tpu.dot_dimension_numbers<[2], [1], [1], [2], [0, 0, 0, 1, 1, 2], [0], [0]>} : vector<2x24x24xf32>, vector<2x24x8xf32>, vector<2x24x8xf32> -> vector<2x24x8xf32>
    "tpu.trace_stop"() : () -> ()
    %166 = vector.shape_cast %165 : vector<2x24x8xf32> to vector<48x8xf32>
    %167 = arith.truncf %166 : vector<48x8xf32> to vector<48x8xbf16>
    %c0_110 = arith.constant 0 : index
    %c3_111 = arith.constant 3 : index
    %c0_112 = arith.constant 0 : index
    %c0_113 = arith.constant 0 : index
    %168 = vector.load %arg16[%c0_110, %c3_111, %c0_112, %c0_113] : memref<1x4x8x32xbf16, #tpu.memory_space<vmem>>, vector<1x1x8x32xbf16>
    %169 = vector.shape_cast %168 : vector<1x1x8x32xbf16> to vector<8x32xbf16>
    %cst_114 = arith.constant dense<0.000000e+00> : vector<48x32xf32>
    %170 = tpu.matmul %167, %169, %cst_114 {dimension_numbers = #tpu.dot_dimension_numbers<[1], [0], [0], [1], [0, 0, 1, 1], [], []>} : vector<48x8xbf16>, vector<8x32xbf16>, vector<48x32xf32> -> vector<48x32xf32>
    %171 = arith.addf %137, %170 : vector<48x32xf32>
    %172 = arith.addf %4, %171 : vector<48x32xf32>
    %c0_115 = arith.constant 0 : index
    %c0_116 = arith.constant 0 : index
    %c0_117 = arith.constant 0 : index
    %173 = vector.load %arg17[%c0_115, %c0_116, %c0_117] : memref<1x1x32xf32, #tpu.memory_space<vmem>>, vector<1x1x32xf32>
    %174 = vector.shape_cast %173 : vector<1x1x32xf32> to vector<1x32xf32>
    %175 = vector.broadcast %174 : vector<1x32xf32> to vector<48x32xf32>
    %176 = arith.addf %172, %175 : vector<48x32xf32>
    %c0_118 = arith.constant 0 : index
    %c0_119 = arith.constant 0 : index
    %c0_120 = arith.constant 0 : index
    %177 = vector.load %arg18[%c0_118, %c0_119, %c0_120] : memref<1x1x32xf32, #tpu.memory_space<vmem>>, vector<1x1x32xf32>
    %178 = vector.shape_cast %177 : vector<1x1x32xf32> to vector<1x32xf32>
    %c0_121 = arith.constant 0 : index
    %c0_122 = arith.constant 0 : index
    %c0_123 = arith.constant 0 : index
    %179 = vector.load %arg19[%c0_121, %c0_122, %c0_123] : memref<1x1x32xf32, #tpu.memory_space<vmem>>, vector<1x1x32xf32>
    %180 = vector.shape_cast %179 : vector<1x1x32xf32> to vector<1x32xf32>
    %cst_124 = arith.constant dense<0.000000e+00> : vector<48xf32>
    %181 = vector.multi_reduction <add>, %176, %cst_124 [1] : vector<48x32xf32> to vector<48xf32>
    %182 = vector.shape_cast %181 : vector<48xf32> to vector<48x1xf32>
    %cst_125 = arith.constant 3.200000e+01 : f32
    %183 = vector.broadcast %cst_125 : f32 to vector<48x1xf32>
    %184 = arith.divf %182, %183 : vector<48x1xf32>
    %185 = vector.broadcast %184 : vector<48x1xf32> to vector<48x32xf32>
    %186 = arith.subf %176, %185 : vector<48x32xf32>
    %187 = arith.mulf %186, %186 : vector<48x32xf32>
    %cst_126 = arith.constant dense<0.000000e+00> : vector<48xf32>
    %188 = vector.multi_reduction <add>, %187, %cst_126 [1] : vector<48x32xf32> to vector<48xf32>
    %189 = vector.shape_cast %188 : vector<48xf32> to vector<48x1xf32>
    %cst_127 = arith.constant 3.200000e+01 : f32
    %190 = vector.broadcast %cst_127 : f32 to vector<48x1xf32>
    %191 = arith.divf %189, %190 : vector<48x1xf32>
    %192 = vector.broadcast %184 : vector<48x1xf32> to vector<48x32xf32>
    %193 = arith.subf %176, %192 : vector<48x32xf32>
    %cst_128 = arith.constant 9.99999974E-6 : f32
    %194 = vector.broadcast %cst_128 : f32 to vector<48x1xf32>
    %195 = arith.addf %191, %194 : vector<48x1xf32>
    %196 = math.rsqrt %195 : vector<48x1xf32>
    %197 = vector.broadcast %196 : vector<48x1xf32> to vector<48x32xf32>
    %198 = arith.mulf %193, %197 : vector<48x32xf32>
    %199 = vector.broadcast %178 : vector<1x32xf32> to vector<48x32xf32>
    %200 = arith.mulf %198, %199 : vector<48x32xf32>
    %201 = vector.broadcast %180 : vector<1x32xf32> to vector<48x32xf32>
    %202 = arith.addf %200, %201 : vector<48x32xf32>
    %203 = arith.truncf %202 : vector<48x32xf32> to vector<48x32xbf16>
    %c0_129 = arith.constant 0 : index
    %c0_130 = arith.constant 0 : index
    %c0_131 = arith.constant 0 : index
    %204 = vector.load %arg20[%c0_129, %c0_130, %c0_131] : memref<1x32x64xbf16, #tpu.memory_space<vmem>>, vector<1x32x64xbf16>
    %205 = vector.shape_cast %204 : vector<1x32x64xbf16> to vector<32x64xbf16>
    %cst_132 = arith.constant dense<0.000000e+00> : vector<48x64xf32>
    %206 = tpu.matmul %203, %205, %cst_132 {dimension_numbers = #tpu.dot_dimension_numbers<[1], [0], [0], [1], [0, 0, 1, 1], [], []>} : vector<48x32xbf16>, vector<32x64xbf16>, vector<48x64xf32> -> vector<48x64xf32>
    %c0_133 = arith.constant 0 : index
    %c0_134 = arith.constant 0 : index
    %c0_135 = arith.constant 0 : index
    %207 = vector.load %arg21[%c0_133, %c0_134, %c0_135] : memref<1x1x64xf32, #tpu.memory_space<vmem>>, vector<1x1x64xf32>
    %208 = vector.shape_cast %207 : vector<1x1x64xf32> to vector<1x64xf32>
    %209 = vector.broadcast %208 : vector<1x64xf32> to vector<48x64xf32>
    %210 = arith.addf %206, %209 : vector<48x64xf32>
    %cst_136 = arith.constant 5.000000e-01 : f32
    %211 = vector.broadcast %cst_136 : f32 to vector<48x64xf32>
    %212 = arith.mulf %211, %210 : vector<48x64xf32>
    %cst_137 = arith.constant 0.707106769 : f32
    %213 = vector.broadcast %cst_137 : f32 to vector<48x64xf32>
    %214 = arith.mulf %210, %213 : vector<48x64xf32>
    %215 = math.erf %214 : vector<48x64xf32>
    %cst_138 = arith.constant 1.000000e+00 : f32
    %216 = vector.broadcast %cst_138 : f32 to vector<48x64xf32>
    %217 = arith.addf %216, %215 : vector<48x64xf32>
    %218 = arith.mulf %212, %217 : vector<48x64xf32>
    %219 = arith.truncf %218 : vector<48x64xf32> to vector<48x64xbf16>
    %c0_139 = arith.constant 0 : index
    %c0_140 = arith.constant 0 : index
    %c0_141 = arith.constant 0 : index
    %220 = vector.load %arg22[%c0_139, %c0_140, %c0_141] : memref<1x64x32xbf16, #tpu.memory_space<vmem>>, vector<1x64x32xbf16>
    %221 = vector.shape_cast %220 : vector<1x64x32xbf16> to vector<64x32xbf16>
    %cst_142 = arith.constant dense<0.000000e+00> : vector<48x32xf32>
    %222 = tpu.matmul %219, %221, %cst_142 {dimension_numbers = #tpu.dot_dimension_numbers<[1], [0], [0], [1], [0, 0, 1, 1], [], []>} : vector<48x64xbf16>, vector<64x32xbf16>, vector<48x32xf32> -> vector<48x32xf32>
    %223 = arith.addf %176, %222 : vector<48x32xf32>
    %c0_143 = arith.constant 0 : index
    %c0_144 = arith.constant 0 : index
    %c0_145 = arith.constant 0 : index
    %224 = vector.load %arg23[%c0_143, %c0_144, %c0_145] : memref<1x1x32xf32, #tpu.memory_space<vmem>>, vector<1x1x32xf32>
    %225 = vector.shape_cast %224 : vector<1x1x32xf32> to vector<1x32xf32>
    %226 = vector.broadcast %225 : vector<1x32xf32> to vector<48x32xf32>
    %227 = arith.addf %223, %226 : vector<48x32xf32>
    %228 = vector.shape_cast %227 : vector<48x32xf32> to vector<2x24x32xf32>
    %c0_146 = arith.constant 0 : index
    %c0_147 = arith.constant 0 : index
    %c0_148 = arith.constant 0 : index
    %229 = vector.load %arg29[%c0_146, %c0_147, %c0_148] : memref<2x24x32xf32, #tpu.memory_space<vmem>>, vector<2x24x32xf32>
    tpu.vector_store %arg29[%c0_146, %c0_147, %c0_148], %228 {strides = array<i32>} : memref<2x24x32xf32, #tpu.memory_space<vmem>>, vector<2x24x32xf32>,
    %c1_i32 = arith.constant 1 : i32
    %230 = arith.cmpi eq, %arg1, %c1_i32 : i32
    %231 = arith.extui %230 : i1 to i32
    %c0_i32_149 = arith.constant 0 : i32
    %232 = arith.cmpi ne, %231, %c0_i32_149 : i32
    scf.if %232 {
      %233 = vector.shape_cast %227 : vector<48x32xf32> to vector<2x24x32xf32>
      %234 = vector.extract_strided_slice %233 {offsets = [0, 0, 0], sizes = [2, 1, 32], strides = [1, 1, 1]} : vector<2x24x32xf32> to vector<2x1x32xf32>
      %235 = vector.shape_cast %234 : vector<2x1x32xf32> to vector<2x32xf32>
      %c0_150 = arith.constant 0 : index
      %c0_151 = arith.constant 0 : index
      %236 = vector.load %arg24[%c0_150, %c0_151] : memref<1x32xf32, #tpu.memory_space<vmem>>, vector<1x32xf32>
      %c0_152 = arith.constant 0 : index
      %c0_153 = arith.constant 0 : index
      %237 = vector.load %arg25[%c0_152, %c0_153] : memref<1x32xf32, #tpu.memory_space<vmem>>, vector<1x32xf32>
      %cst_154 = arith.constant dense<0.000000e+00> : vector<2xf32>
      %238 = vector.multi_reduction <add>, %235, %cst_154 [1] : vector<2x32xf32> to vector<2xf32>
      %239 = vector.shape_cast %238 : vector<2xf32> to vector<2x1xf32>
      %cst_155 = arith.constant 3.200000e+01 : f32
      %240 = vector.broadcast %cst_155 : f32 to vector<2x1xf32>
      %241 = arith.divf %239, %240 : vector<2x1xf32>
      %242 = vector.broadcast %241 : vector<2x1xf32> to vector<2x32xf32>
      %243 = arith.subf %235, %242 : vector<2x32xf32>
      %244 = arith.mulf %243, %243 : vector<2x32xf32>
      %cst_156 = arith.constant dense<0.000000e+00> : vector<2xf32>
      %245 = vector.multi_reduction <add>, %244, %cst_156 [1] : vector<2x32xf32> to vector<2xf32>
      %246 = vector.shape_cast %245 : vector<2xf32> to vector<2x1xf32>
      %cst_157 = arith.constant 3.200000e+01 : f32
      %247 = vector.broadcast %cst_157 : f32 to vector<2x1xf32>
      %248 = arith.divf %246, %247 : vector<2x1xf32>
      %249 = vector.broadcast %241 : vector<2x1xf32> to vector<2x32xf32>
      %250 = arith.subf %235, %249 : vector<2x32xf32>
      %cst_158 = arith.constant 9.99999974E-6 : f32
      %251 = vector.broadcast %cst_158 : f32 to vector<2x1xf32>
      %252 = arith.addf %248, %251 : vector<2x1xf32>
      %253 = math.rsqrt %252 : vector<2x1xf32>
      %254 = vector.broadcast %253 : vector<2x1xf32> to vector<2x32xf32>
      %255 = arith.mulf %250, %254 : vector<2x32xf32>
      %256 = vector.broadcast %236 : vector<1x32xf32> to vector<2x32xf32>
      %257 = arith.mulf %255, %256 : vector<2x32xf32>
      %258 = vector.broadcast %237 : vector<1x32xf32> to vector<2x32xf32>
      %259 = arith.addf %257, %258 : vector<2x32xf32>
      %260 = arith.truncf %259 : vector<2x32xf32> to vector<2x32xbf16>
      %c0_159 = arith.constant 0 : index
      %c0_160 = arith.constant 0 : index
      %261 = vector.load %arg26[%c0_159, %c0_160] : memref<32x10xbf16, #tpu.memory_space<vmem>>, vector<32x10xbf16>
      %cst_161 = arith.constant dense<0.000000e+00> : vector<2x10xf32>
      %262 = tpu.matmul %260, %261, %cst_161 {dimension_numbers = #tpu.dot_dimension_numbers<[1], [0], [0], [1], [0, 0, 1, 1], [], []>} : vector<2x32xbf16>, vector<32x10xbf16>, vector<2x10xf32> -> vector<2x10xf32>
      %c0_162 = arith.constant 0 : index
      %c0_163 = arith.constant 0 : index
      %263 = vector.load %arg27[%c0_162, %c0_163] : memref<1x10xf32, #tpu.memory_space<vmem>>, vector<1x10xf32>
      %264 = vector.broadcast %263 : vector<1x10xf32> to vector<2x10xf32>
      %265 = arith.addf %262, %264 : vector<2x10xf32>
      %c0_164 = arith.constant 0 : index
      %c0_165 = arith.constant 0 : index
      %c0_166 = arith.constant 0 : index
      %266 = vector.load %arg28[%c0_164, %c0_165, %c0_166] : memref<1x2x10xf32, #tpu.memory_space<vmem>>, vector<1x2x10xf32>
      %267 = vector.shape_cast %266 : vector<1x2x10xf32> to vector<2x10xf32>
      %268 = vector.shape_cast %265 : vector<2x10xf32> to vector<1x2x10xf32>
      tpu.vector_store %arg28[%c0_164, %c0_165, %c0_166], %268 {strides = array<i32>} : memref<1x2x10xf32, #tpu.memory_space<vmem>>, vector<1x2x10xf32>,
    } else {
    }
    return
  }
  func.func @transform_0(%arg0: i32, %arg1: i32) -> (i32, i32) {
    %c0_i32 = arith.constant 0 : i32
    %c0_i32_0 = arith.constant 0 : i32
    return %arg0, %c0_i32 : i32, i32
  }
  func.func @transform_1(%arg0: i32, %arg1: i32) -> (i32, i32) {
    %c0_i32 = arith.constant 0 : i32
    %c0_i32_0 = arith.constant 0 : i32
    %c0_i32_1 = arith.constant 0 : i32
    return %c0_i32, %c0_i32_0 : i32, i32
  }
  func.func @transform_2(%arg0: i32, %arg1: i32) -> (i32, i32) {
    %c0_i32 = arith.constant 0 : i32
    %c0_i32_0 = arith.constant 0 : i32
    %c0_i32_1 = arith.constant 0 : i32
    return %c0_i32, %c0_i32_0 : i32, i32
  }
  func.func @transform_3(%arg0: i32, %arg1: i32) -> (i32, i32) {
    %c0_i32 = arith.constant 0 : i32
    %c0_i32_0 = arith.constant 0 : i32
    %c0_i32_1 = arith.constant 0 : i32
    return %c0_i32, %c0_i32_0 : i32, i32
  }
  func.func @transform_4(%arg0: i32, %arg1: i32) -> (i32, i32) {
    %c0_i32 = arith.constant 0 : i32
    %c0_i32_0 = arith.constant 0 : i32
    %c0_i32_1 = arith.constant 0 : i32
    return %c0_i32, %c0_i32_0 : i32, i32
  }
  func.func @transform_5(%arg0: i32, %arg1: i32) -> (i32, i32) {
    %c0_i32 = arith.constant 0 : i32
    %c0_i32_0 = arith.constant 0 : i32
    %c0_i32_1 = arith.constant 0 : i32
    return %c0_i32, %c0_i32_0 : i32, i32
  }
  func.func @transform_6(%arg0: i32, %arg1: i32) -> (i32, i32) {
    %c0_i32 = arith.constant 0 : i32
    %c0_i32_0 = arith.constant 0 : i32
    %c0_i32_1 = arith.constant 0 : i32
    return %c0_i32, %c0_i32_0 : i32, i32
  }
  func.func @transform_7(%arg0: i32, %arg1: i32) -> (i32, i32) {
    %c0_i32 = arith.constant 0 : i32
    %c0_i32_0 = arith.constant 0 : i32
    %c0_i32_1 = arith.constant 0 : i32
    return %c0_i32, %c0_i32_0 : i32, i32
  }
  func.func @transform_8(%arg0: i32, %arg1: i32) -> (i32, i32) {
    %c0_i32 = arith.constant 0 : i32
    %c0_i32_0 = arith.constant 0 : i32
    %c0_i32_1 = arith.constant 0 : i32
    return %c0_i32, %c0_i32_0 : i32, i32
  }
  func.func @transform_9(%arg0: i32, %arg1: i32) -> (i32, i32, i32) {
    %c0_i32 = arith.constant 0 : i32
    %c0_i32_0 = arith.constant 0 : i32
    %c0_i32_1 = arith.constant 0 : i32
    return %arg1, %c0_i32, %c0_i32_0 : i32, i32, i32
  }
  func.func @transform_10(%arg0: i32, %arg1: i32) -> (i32, i32, i32) {
    %c0_i32 = arith.constant 0 : i32
    %c0_i32_0 = arith.constant 0 : i32
    %c0_i32_1 = arith.constant 0 : i32
    return %arg1, %c0_i32, %c0_i32_0 : i32, i32, i32
  }
  func.func @transform_11(%arg0: i32, %arg1: i32) -> (i32, i32, i32, i32) {
    %c0_i32 = arith.constant 0 : i32
    %c0_i32_0 = arith.constant 0 : i32
    %c0_i32_1 = arith.constant 0 : i32
    %c0_i32_2 = arith.constant 0 : i32
    return %arg1, %c0_i32, %c0_i32_0, %c0_i32_1 : i32, i32, i32, i32
  }
  func.func @transform_12(%arg0: i32, %arg1: i32) -> (i32, i32, i32, i32) {
    %c0_i32 = arith.constant 0 : i32
    %c0_i32_0 = arith.constant 0 : i32
    %c0_i32_1 = arith.constant 0 : i32
    %c0_i32_2 = arith.constant 0 : i32
    return %arg1, %c0_i32, %c0_i32_0, %c0_i32_1 : i32, i32, i32, i32
  }
  func.func @transform_13(%arg0: i32, %arg1: i32) -> (i32, i32, i32, i32) {
    %c0_i32 = arith.constant 0 : i32
    %c0_i32_0 = arith.constant 0 : i32
    %c0_i32_1 = arith.constant 0 : i32
    %c0_i32_2 = arith.constant 0 : i32
    return %arg1, %c0_i32, %c0_i32_0, %c0_i32_1 : i32, i32, i32, i32
  }
  func.func @transform_14(%arg0: i32, %arg1: i32) -> (i32, i32, i32, i32) {
    %c0_i32 = arith.constant 0 : i32
    %c0_i32_0 = arith.constant 0 : i32
    %c0_i32_1 = arith.constant 0 : i32
    %c0_i32_2 = arith.constant 0 : i32
    return %arg1, %c0_i32, %c0_i32_0, %c0_i32_1 : i32, i32, i32, i32
  }
  func.func @transform_15(%arg0: i32, %arg1: i32) -> (i32, i32, i32) {
    %c0_i32 = arith.constant 0 : i32
    %c0_i32_0 = arith.constant 0 : i32
    %c0_i32_1 = arith.constant 0 : i32
    return %arg1, %c0_i32, %c0_i32_0 : i32, i32, i32
  }
  func.func @transform_16(%arg0: i32, %arg1: i32) -> (i32, i32, i32) {
    %c0_i32 = arith.constant 0 : i32
    %c0_i32_0 = arith.constant 0 : i32
    %c0_i32_1 = arith.constant 0 : i32
    return %arg1, %c0_i32, %c0_i32_0 : i32, i32, i32
  }
  func.func @transform_17(%arg0: i32, %arg1: i32) -> (i32, i32, i32) {
    %c0_i32 = arith.constant 0 : i32
    %c0_i32_0 = arith.constant 0 : i32
    %c0_i32_1 = arith.constant 0 : i32
    return %arg1, %c0_i32, %c0_i32_0 : i32, i32, i32
  }
  func.func @transform_18(%arg0: i32, %arg1: i32) -> (i32, i32, i32) {
    %c0_i32 = arith.constant 0 : i32
    %c0_i32_0 = arith.constant 0 : i32
    %c0_i32_1 = arith.constant 0 : i32
    return %arg1, %c0_i32, %c0_i32_0 : i32, i32, i32
  }
  func.func @transform_19(%arg0: i32, %arg1: i32) -> (i32, i32, i32) {
    %c0_i32 = arith.constant 0 : i32
    %c0_i32_0 = arith.constant 0 : i32
    %c0_i32_1 = arith.constant 0 : i32
    return %arg1, %c0_i32, %c0_i32_0 : i32, i32, i32
  }
  func.func @transform_20(%arg0: i32, %arg1: i32) -> (i32, i32, i32) {
    %c0_i32 = arith.constant 0 : i32
    %c0_i32_0 = arith.constant 0 : i32
    %c0_i32_1 = arith.constant 0 : i32
    return %arg1, %c0_i32, %c0_i32_0 : i32, i32, i32
  }
  func.func @transform_21(%arg0: i32, %arg1: i32) -> (i32, i32, i32) {
    %c0_i32 = arith.constant 0 : i32
    %c0_i32_0 = arith.constant 0 : i32
    %c0_i32_1 = arith.constant 0 : i32
    return %arg1, %c0_i32, %c0_i32_0 : i32, i32, i32
  }
  func.func @transform_22(%arg0: i32, %arg1: i32) -> (i32, i32) {
    %c0_i32 = arith.constant 0 : i32
    %c0_i32_0 = arith.constant 0 : i32
    %c0_i32_1 = arith.constant 0 : i32
    return %c0_i32, %c0_i32_0 : i32, i32
  }
  func.func @transform_23(%arg0: i32, %arg1: i32) -> (i32, i32) {
    %c0_i32 = arith.constant 0 : i32
    %c0_i32_0 = arith.constant 0 : i32
    %c0_i32_1 = arith.constant 0 : i32
    return %c0_i32, %c0_i32_0 : i32, i32
  }
  func.func @transform_24(%arg0: i32, %arg1: i32) -> (i32, i32) {
    %c0_i32 = arith.constant 0 : i32
    %c0_i32_0 = arith.constant 0 : i32
    %c0_i32_1 = arith.constant 0 : i32
    return %c0_i32, %c0_i32_0 : i32, i32
  }
  func.func @transform_25(%arg0: i32, %arg1: i32) -> (i32, i32) {
    %c0_i32 = arith.constant 0 : i32
    %c0_i32_0 = arith.constant 0 : i32
    %c0_i32_1 = arith.constant 0 : i32
    return %c0_i32, %c0_i32_0 : i32, i32
  }
  func.func @transform_26(%arg0: i32, %arg1: i32) -> (i32, i32, i32) {
    %c0_i32 = arith.constant 0 : i32
    %c0_i32_0 = arith.constant 0 : i32
    %c0_i32_1 = arith.constant 0 : i32
    return %arg0, %c0_i32, %c0_i32_0 : i32, i32, i32
  }
}

</mosaic_0001>

<bundles_post_ra>
// kernel: tpu_custom_call.1
= control target key start
LH: loop header
LB: loop body
LE: loop exit
PB: predicated region body
PF: predicated region fallthrough
CT: control target
= control target key end

     0   :  { %s5783_s0 = inlined_call_operand.vmem [shape: f32[32,48], index: 0, kind: input, shape index: {}]   ;;  %s5784_s1 = inlined_call_operand.vmem [shape: f32[1,48], index: 1, kind: input, shape index: {}]   ;;  %s5785_s2 = inlined_call_operand.vmem [shape: f32[1,48], index: 2, kind: input, shape index: {}]   ;;  %s5786_s3 = inlined_call_operand.vmem [shape: bf16[48,32], index: 3, kind: input, shape index: {}]   ;;  %s5787_s4 = inlined_call_operand.vmem [shape: f32[1,32], index: 4, kind: input, shape index: {}]   ;;  %s5788_s5 = inlined_call_operand.vmem [shape: f32[1,32], index: 5, kind: input, shape index: {}]   ;;  %s5789_s6 = inlined_call_operand.vmem [shape: f32[1,32], index: 6, kind: input, shape index: {}]   ;;  %s5790_s7 = inlined_call_operand.vmem [shape: f32[1,32], index: 7, kind: input, shape index: {}]   ;;  %s5791_s8 = inlined_call_operand.vmem [shape: f32[17,32], index: 8, kind: input, shape index: {}]   ;;  %s5792_s9 = inlined_call_operand.vmem [shape: f32[2,1,32], index: 9, kind: input, shape index: {}]   ;;  %s5793_s10 = inlined_call_operand.vmem [shape: f32[2,1,32], index: 10, kind: input, shape index: {}]   ;;  %s5794_s11 = inlined_call_operand.vmem [shape: bf16[2,4,32,8], index: 11, kind: input, shape index: {}]   ;;  %s5795_s12 = inlined_call_operand.vmem [shape: bf16[2,4,32,8], index: 12, kind: input, shape index: {}]   ;;  %s5796_s13 = inlined_call_operand.vmem [shape: bf16[2,4,32,8], index: 13, kind: input, shape index: {}]   ;;  %s5797_s14 = inlined_call_operand.vmem [shape: bf16[2,4,8,32], index: 14, kind: input, shape index: {}]   ;;  %s5798_s15 = inlined_call_operand.vmem [shape: f32[2,1,32], index: 15, kind: input, shape index: {}]   ;;  %s5799_s16 = inlined_call_operand.vmem [shape: f32[2,1,32], index: 16, kind: input, shape index: {}]   ;;  %s5800_s17 = inlined_call_operand.vmem [shape: f32[2,1,32], index: 17, kind: input, shape index: {}]   ;;  %s5801_s18 = inlined_call_operand.vmem [shape: bf16[2,32,64], index: 18, kind: input, shape index: {}]   ;;  %s5802_s19 = inlined_call_operand.vmem [shape: f32[2,1,64], index: 19, kind: input, shape index: {}]   ;;  %s5803_s20 = inlined_call_operand.vmem [shape: bf16[2,64,32], index: 20, kind: input, shape index: {}]   ;;  %s5804_s21 = inlined_call_operand.vmem [shape: f32[2,1,32], index: 21, kind: input, shape index: {}]   ;;  %s5805_s22 = inlined_call_operand.vmem [shape: f32[1,32], index: 22, kind: input, shape index: {}]   ;;  %s5806_s23 = inlined_call_operand.vmem [shape: f32[1,32], index: 23, kind: input, shape index: {}]   ;;  %s5807_s24 = inlined_call_operand.vmem [shape: bf16[32,10], index: 24, kind: input, shape index: {}]   ;;  %s5808_s25 = inlined_call_operand.vmem [shape: f32[1,10], index: 25, kind: input, shape index: {}]   ;;  %s5809_s26 = inlined_call_operand.hbm [shape: f32[1,2,10], index: 26, kind: output, shape index: {}]  }
   0x1   :  { %5815 = sst [smem:[#allocation9_spill]] %s5783_s0 }
   0x2   :  { %5816 = sst [smem:[#allocation10_spill]] %s5784_s1 }
   0x3   :  { %5817 = sst [smem:[#allocation11_spill]] %s5785_s2 }
   0x4   :  { %5818 = sst [smem:[#allocation12_spill]] %s5786_s3 }
   0x5   :  { %5819 = sst [smem:[#allocation13_spill]] %s5787_s4 }
   0x6   :  { %5820 = sst [smem:[#allocation14_spill]] %s5788_s5 }
   0x7   :  { %5821 = sst [smem:[#allocation15_spill]] %s5789_s6 }
   0x8   :  { %5822 = sst [smem:[#allocation16_spill]] %s5790_s7 }
   0x9   :  { %5823 = sst [smem:[#allocation17_spill]] %s5791_s8 }
   0xa   :  { %5824 = sst [smem:[#allocation18_spill]] %s5792_s9 }
   0xb   :  { %5825 = sst [smem:[#allocation19_spill]] %s5793_s10 }
   0xc   :  { %5826 = sst [smem:[#allocation20_spill]] %s5794_s11 }
   0xd   :  { %5827 = sst [smem:[#allocation21_spill]] %s5795_s12 }
   0xe   :  { %5828 = sst [smem:[#allocation22_spill]] %s5796_s13 }
   0xf   :  { %5829 = sst [smem:[#allocation23_spill]] %s5797_s14 }
  0x10   :  { %5830 = sst [smem:[#allocation24_spill]] %s5805_s22 }
  0x11   :  { %5831 = sst [smem:[#allocation25_spill]] %s5806_s23 }
  0x12   :  { %5832 = sst [smem:[#allocation26_spill]] %s5808_s25 }
  0x13   :  { %5833 = sst [smem:[#allocation27_spill]] %s5809_s26 }
  0x14   :  { %31 = vsyncpa [#allocation4], 0  ;;  %s4789_s27 = smov 0   ;;  %s4791_s3 = smov 0  }
  0x15   :  { %s4793_s7 = smov 0  }
  0x16 LB: > { %5834 = sst [smem:[#allocation6_spill]] %s4643_s3  ;;  %s46_s8 = sadd.s32 1, %s4643_s3  ;;  %s4647_s7 = sphi %s4793_s7, %s37_s7   ;;  %s4643_s3 = sphi %s4791_s3, %s5867_s3   ;;  %s4639_s27 = sphi %s4789_s27, %s5866_s27  }
  0x17   : > { %5835 = sst [smem:[#allocation7_spill]] %s4647_s7  ;;  %p47_p0 = scmp.ge.s32.totalorder %s46_s8, 2 }
  0x18   : > { %p4004_p1 = scmp.ge.s32.totalorder %s4647_s7, 1  ;;  %p842_p2 = scmp.lt.s32.totalorder %s4647_s7, 3 }
  0x19   : > { %s5869_s8 = smov (%p47_p0, %s46_s8), 0 }
  0x1a   : > { %5836 = sst [smem:[#allocation8_spill]] %s5869_s8  ;;  %p843_p3 = pnand %p4004_p1, %p842_p2 }
  0x1b   : > { %p964_p4 = scmp.lt.s32.totalorder (!%p843_p3), %s4639_s27, 1  ;;  %s5839_s11 = sld [smem:[#allocation20_spill]] (!%p843_p3) }
  0x1c   : > { %846 = sbr.rel (%p843_p3) target bundleno = 4515 (0x11a3), region = 124  ;;  %s5840_s12 = sld [smem:[#allocation21_spill]] (!%p843_p3) }
  0x1d   : > { %s5841_s13 = sld [smem:[#allocation22_spill]] (!%p843_p3)  ;;  %p4017_p5 = scmp.ne.s32.totalorder (!%p843_p3), %s4639_s27, 0 }
  0x1e   : > { %s5842_s14 = sld [smem:[#allocation23_spill]] (!%p843_p3) }
  0x21   : > { %s4812_s4 = scalar_select %p964_p4, %s4639_s27, 1 }
  0x22   : > { %s5843_s23 = sld [smem:[#allocation9_spill]] (!%p4017_p5) }
  0x23   : > { %s4337_s1 = sshll.u32 %s4812_s4, 6  ;;  %s4340_s28 = sshll.u32 %s4812_s4, 4 }
  0x24   : > { %s4827_s29 = scalar_lea.vmem %s5839_s11, %s4337_s1  ;;  %s4832_s7 = scalar_lea.vmem %s5840_s12, %s4337_s1 }
  0x25   : > { %s4837_s9 = scalar_lea.vmem %s5841_s13, %s4337_s1  ;;  %s4842_s5 = scalar_lea.vmem %s5842_s14, %s4340_s28 }
  0x26   : > { %s995_s26 = scalar_lea.vmem %s5799_s16, %s4812_s4  ;;  %s998_s22 = scalar_lea.vmem %s5800_s17, %s4812_s4 }
  0x27   : > { %s4859_s1 = scalar_lea.vmem %s5801_s18, %s4340_s28  ;;  %s1006_s13 = scalar_lea.vmem %s5802_s19, %s4812_s4 }
  0x28   : > { %s4342_s14 = sshll.u32 %s4812_s4, 5  ;;  %s1014_s12 = scalar_lea.vmem %s5804_s21, %s4812_s4 }
  0x29   : > { %s4869_s3 = scalar_lea.vmem %s5803_s20, %s4342_s14  ;;  %1019 = sbr.rel (%p4017_p5) target bundleno = 734 (0x2de), region = 128 }
  0x2a   : > { %s5844_s0 = sld [smem:[#allocation12_spill]] (!%p4017_p5) }
  0x2b   : > { %s5845_s10 = sld [smem:[#allocation10_spill]] (!%p4017_p5) }
  0x2c   : > { %s5846_s28 = sld [smem:[#allocation11_spill]] (!%p4017_p5) }
  0x2d   : > { %s5847_s14 = sld [smem:[#allocation13_spill]] (!%p4017_p5) }
  0x2e   : > { %v1022_v0 = vld [vmem:[%s5843_s23 + $0x10] sm:$0xff]  ;;  %vm1026_vm0 = vcmask 392192   ;;  %v1020_v1 = vld [vmem:[%s5843_s23] sm:$0xff]  ;;  %v1023_v4 = vld [vmem:[%s5843_s23 + $0x18] sm:$0xff]  ;;  %v4649_v8 = vmov 48.0   ;;  %vm1193_vm14 = vcmask 261120  }
  0x2f   : > { %v1033_v2 = vsel %vm1026_vm0, %v1022_v0, 0.0  ;;  %v1027_v3 = vsel %vm1026_vm0, %v1020_v1, 0.0  ;;  %v1021_v5 = vld [vmem:[%s5843_s23 + $0x8] sm:$0xff]  ;;  %v1036_v6 = vsel %vm1026_vm0, %v1023_v4, 0.0  ;;  %4421 = vrcp.f32 %v4649_v8 }
  0x30   : > { %1034 = vadd.xlane.f32.xlu1 %v1033_v2  ;;  %1028 = vadd.xlane.f32.xlu0 %v1027_v3  ;;  %v1030_v7 = vsel %vm1026_vm0, %v1021_v5, 0.0  ;;  %v4345_v35 = vld [vmem:[%s5844_s0 + $0x10] sm:$0xff]  ;;  %v4344_v36 = vld [vmem:[%s5844_s0 + $0x8] sm:$0xff]  ;;  %v4343_v41 = vld [vmem:[%s5844_s0] sm:$0xff] }
  0x31   : > { %1177 = vmatpush.bf16.msra.mxu0 %v4345_v35  ;;  %4378 = vmatpush.bf16.msra.mxu1 %v4345_v35 }
  0x35   : > { %v4422_v9 = vpop.eup %4421  ;;  %1178 = vmatpush.bf16.msra.mxu0 %v4344_v36  ;;  %4379 = vmatpush.bf16.msra.mxu1 %v4344_v36 }
  0x36   : > { %v1040_v10 = vmul.f32 48.0, %v4422_v9  ;;  %vm1044_vm1 = vweird.f32 %v4422_v9 }
  0x38   : > { %1037 = vadd.xlane.f32.xlu1 %v1036_v6  ;;  %1031 = vadd.xlane.f32.xlu0 %v1030_v7  ;;  %v1041_v11 = vsub.f32 1.0, %v1040_v10 }
  0x39   : > { %1179 = vmatpush.bf16.msra.mxu0 %v4343_v41  ;;  %4380 = vmatpush.bf16.msra.mxu1 %v4343_v41 }
  0x3a   : > { %v1042_v12 = vmul.f32 %v4422_v9, %v1041_v11  ;;  %v4416_v11 = vld [vmem:[%s5845_s10] ss:$0 sm:$0xff]  ;;  %s5848_s10 = sld [smem:[#allocation16_spill]] }
  0x3c   : > { %v1043_v13 = vadd.f32 %v4422_v9, %v1042_v12 }
  0x3e   : > { %v1045_v14 = vsel %vm1044_vm1, %v4422_v9, %v1043_v13  ;;  %vm1319_vm1 = vcmask 260096  }
  0xa3   : > { %v1035_v15 = vpop.xlane.xlu1 %1034  ;;  %v1029_v16 = vpop.xlane.xlu0 %1028 }
  0xa4   : > { %v1048_v17 = vmul.f32 %v1045_v14, %v1035_v15  ;;  %v1046_v18 = vmul.f32 %v1045_v14, %v1029_v16 }
  0xa6   : > { %v4892_v19 = vsub.f32 %v1022_v0, %v1048_v17  ;;  %v4894_v20 = vsub.f32 %v1020_v1, %v1046_v18  ;;  %v4417_v18 = vld [vmem:[%s5846_s28] ss:$0 sm:$0xff]  ;;  %s5849_s28 = sld [smem:[#allocation17_spill]] }
  0xa8   : > { %v1056_v21 = vmul.f32 %v4892_v19, %v4892_v19  ;;  %v1054_v22 = vmul.f32 %v4894_v20, %v4894_v20 }
  0xaa   : > { %v1064_v23 = vsel %vm1026_vm0, %v1056_v21, 0.0  ;;  %v1058_v24 = vsel %vm1026_vm0, %v1054_v22, 0.0 }
  0xab   : > { %v1038_v25 = vpop.xlane.xlu1 %1037  ;;  %1065 = vadd.xlane.f32.xlu0 %v1064_v23  ;;  %1059 = vadd.xlane.f32.xlu2 %v1058_v24  ;;  %v1032_v26 = vpop.xlane.xlu0 %1031 }
  0xac   : > { %v1049_v27 = vmul.f32 %v1045_v14, %v1038_v25  ;;  %v1047_v28 = vmul.f32 %v1045_v14, %v1032_v26 }
  0xae   : > { %v4902_v29 = vsub.f32 %v1023_v4, %v1049_v27  ;;  %v4904_v30 = vsub.f32 %v1021_v5, %v1047_v28 }
  0xb0   : > { %v1057_v31 = vmul.f32 %v4902_v29, %v4902_v29  ;;  %v1055_v32 = vmul.f32 %v4904_v30, %v4904_v30 }
  0xb2   : > { %v1067_v33 = vsel %vm1026_vm0, %v1057_v31, 0.0  ;;  %v1061_v34 = vsel %vm1026_vm0, %v1055_v32, 0.0 }
  0xb3   : > { %1068 = vadd.xlane.f32.xlu1 %v1067_v33  ;;  %1062 = vadd.xlane.f32.xlu2 %v1061_v34 }
 0x11e   : > { %v1060_v37 = vpop.xlane.xlu2 %1059  ;;  %v1066_v38 = vpop.xlane.xlu0 %1065 }
 0x11f   : > { %v1070_v39 = vmul.f32 %v1060_v37, %v1045_v14  ;;  %v1072_v40 = vmul.f32 %v1066_v38, %v1045_v14 }
 0x121   : > { %v1074_v42 = vadd.f32 1e-05, %v1070_v39  ;;  %v1076_v43 = vadd.f32 1e-05, %v1072_v40 }
 0x123   : > { %4423 = vrsqrt.f32 %v1074_v42  ;;  %vm1104_vm4 = vweird.f32 %v1076_v43  ;;  %vm1084_vm5 = vweird.f32 %v1074_v42 }
 0x124   : > { %4425 = vrsqrt.f32 %v1076_v43 }
 0x126   : > { %v1069_v44 = vpop.xlane.xlu1 %1068  ;;  %v1063_v45 = vpop.xlane.xlu2 %1062 }
 0x127   : > { %v1073_v46 = vmul.f32 %v1069_v44, %v1045_v14  ;;  %v1071_v47 = vmul.f32 %v1063_v45, %v1045_v14 }
 0x129   : > { %v4424_v48 = vpop.eup %4423  ;;  %v1077_v49 = vadd.f32 1e-05, %v1073_v46  ;;  %v1075_v50 = vadd.f32 1e-05, %v1071_v47 }
 0x12a   : > { %v4426_v51 = vpop.eup %4425  ;;  %v1079_v52 = vmul.f32 %v4424_v48, %v1074_v42  ;;  %vm1085_vm3 = vweird.f32 %v4424_v48 }
 0x12b   : > { %v1099_v53 = vmul.f32 %v4426_v51, %v1076_v43  ;;  %4427 = vrsqrt.f32 %v1077_v49  ;;  %vm1105_vm2 = vweird.f32 %v4426_v51  ;;  %vm1086_vm7 = vmor %vm1084_vm5, %vm1085_vm3  ;;  %vm1114_vm10 = vweird.f32 %v1077_v49 }
 0x12c   : > { %v1080_v54 = vmul.f32 %v4424_v48, %v1079_v52  ;;  %4429 = vrsqrt.f32 %v1075_v50  ;;  %vm1106_vm6 = vmor %vm1104_vm4, %vm1105_vm2  ;;  %vm1094_vm12 = vweird.f32 %v1075_v50  ;;  %v4650_v43 = vmov 32.0  }
 0x12d   : > { %v1100_v55 = vmul.f32 %v4426_v51, %v1099_v53  ;;  %4431 = vrcp.f32 %v4650_v43 }
 0x12e   : > { %v1081_v56 = vmul.f32 0.5, %v1080_v54 }
 0x12f   : > { %v1101_v57 = vmul.f32 0.5, %v1100_v55 }
 0x130   : > { %v1082_v58 = vsub.f32 1.5, %v1081_v56 }
 0x131   : > { %v4428_v59 = vpop.eup %4427  ;;  %v1102_v60 = vsub.f32 1.5, %v1101_v57 }
 0x132   : > { %v4430_v61 = vpop.eup %4429  ;;  %v1109_v62 = vmul.f32 %v4428_v59, %v1077_v49  ;;  %v1083_v63 = vmul.f32 %v4424_v48, %v1082_v58  ;;  %vm1115_vm8 = vweird.f32 %v4428_v59 }
 0x133   : > { %v1103_v0 = vmul.f32 %v4426_v51, %v1102_v60  ;;  %v1089_v1 = vmul.f32 %v4430_v61, %v1075_v50  ;;  %vm1095_vm9 = vweird.f32 %v4430_v61  ;;  %vm1116_vm11 = vmor %vm1114_vm10, %vm1115_vm8  ;;  %v4432_v44 = vpop.eup %4431 }
 0x134   : > { %v1110_v2 = vmul.f32 %v4428_v59, %v1109_v62  ;;  %v1087_v6 = vsel %vm1086_vm7, %v4424_v48, %v1083_v63  ;;  %vm1096_vm13 = vmor %vm1094_vm12, %vm1095_vm9  ;;  %v1207_v45 = vmul.f32 32.0, %v4432_v44  ;;  %vm1211_vm15 = vweird.f32 %v4432_v44 }
 0x135   : > { %v1090_v3 = vmul.f32 %v4430_v61, %v1089_v1  ;;  %v1107_v4 = vsel %vm1106_vm6, %v4426_v51, %v1103_v0  ;;  %v1118_v12 = vmul.f32 %v1087_v6, %v4894_v20 }
 0x136   : > { %v1111_v5 = vmul.f32 0.5, %v1110_v2  ;;  %v1120_v9 = vmul.f32 %v1107_v4, %v4892_v19  ;;  %v1208_v46 = vsub.f32 1.0, %v1207_v45 }
 0x137   : > { %v1091_v7 = vmul.f32 0.5, %v1090_v3  ;;  %v1125_v22 = vmul.f32 %v4416_v11, %v1118_v12  ;;  %v1303_v12 = vld [vmem:[%s5848_s10] sm:$0x1]  ;;  %s5851_s10 = sld [smem:[#allocation15_spill]] }
 0x138   : > { %v1112_v8 = vsub.f32 1.5, %v1111_v5  ;;  %v1127_v19 = vmul.f32 %v4416_v11, %v1120_v9  ;;  %v1209_v47 = vmul.f32 %v4432_v44, %v1208_v46 }
 0x139   : > { %v1092_v10 = vsub.f32 1.5, %v1091_v7  ;;  %v1132_v26 = vadd.f32 %v4417_v18, %v1125_v22 }
 0x13a   : > { %v1113_v13 = vmul.f32 %v4428_v59, %v1112_v8  ;;  %v1134_v24 = vadd.f32 %v4417_v18, %v1127_v19  ;;  %v1210_v48 = vadd.f32 %v4432_v44, %v1209_v47 }
 0x13b   : > { %v1093_v14 = vmul.f32 %v4430_v61, %v1092_v10 }
 0x13c   : > { %v1117_v15 = vsel %vm1116_vm11, %v4428_v59, %v1113_v13  ;;  %v1212_v49 = vsel %vm1211_vm15, %v4432_v44, %v1210_v48  ;;  %v1304_v13 = vld [vmem:[%s5849_s28] sm:$0x1]  ;;  %v1309_v48 = vld [vmem:[%s5849_s28 + $0x1] sm:$0xff] }
 0x13d   : > { %v1121_v16 = vmul.f32 %v1117_v15, %v4902_v29  ;;  %v1097_v17 = vsel %vm1096_vm13, %v4430_v61, %v1093_v14  ;;  %v4418_v29 = vld [vmem:[%s5847_s14] ss:$0 sm:$0xff]  ;;  %v1305_v14 = vadd.f32 %v1304_v13, %v1303_v12  ;;  %s5850_s14 = sld [smem:[#allocation14_spill]] }
 0x13e   : > { %v1119_v21 = vmul.f32 %v1097_v17, %v4904_v30 }
 0x13f   : > { %v1128_v23 = vmul.f32 %v4416_v11, %v1121_v16 }
 0x140   : > { %v1126_v20 = vmul.f32 %v4416_v11, %v1119_v21  ;;  %v4651_v21 = vmov 0.0  }
 0x141   : > { %v1135_v25 = vadd.f32 %v4417_v18, %v1128_v23  ;;  %1320 = vst.msk [vmem:[#allocation2 + $0x11] sm:$0x7f] %vm1319_vm1, %v4651_v21 }
 0x142   : > { %v1133_v27 = vadd.f32 %v4417_v18, %v1126_v20  ;;  %1321 = vst.msk [vmem:[#allocation2 + $0x29] sm:$0x7f] %vm1319_vm1, %v4651_v21 }
 0x143   : > { %v1137_v28 = vpack.c.bf16 %v1135_v25, %v1134_v24 }
 0x144   : > { %v1136_v31 = vpack.c.bf16 %v1133_v27, %v1132_v26 }
 0x145   : > { %4031 = vmatmul.msk.bf16.vlgmr.msra.gmra.mxu1 %vm1026_vm0, %v1137_v28 }
 0x146   : > { %4030 = vmatmul.msk.bf16.vlgmr.msra.gmra.mxu0 %vm1026_vm0, %v1136_v31  ;;  %vm1306_vm0 = vcmask 253952  }
 0x147   : > { %1307 = vst.msk [vmem:[#allocation2] sm:$0x1] %vm1306_vm0, %v1305_v14 }
 0x148   : > { %1308 = vst.msk [vmem:[#allocation2 + $0x18] sm:$0x1] %vm1306_vm0, %v1305_v14 }
 0x1c2   : > { %v1186_v32 = vpop.f32.mrf.mxu1 }
 0x1c3   : > { %v1181_v30 = vpop.f32.mrf.mxu0  ;;  %v1187_v33 = vadd.f32 %v4418_v29, %v1186_v32 }
 0x1c4   : > { %v1182_v34 = vadd.f32 %v4418_v29, %v1181_v30 }
 0x1c5   : > { %v1200_v35 = vsel %vm1193_vm14, %v1187_v33, 0.0 }
 0x1c6   : > { %v1194_v36 = vsel %vm1193_vm14, %v1182_v34, 0.0  ;;  %1201 = vadd.xlane.f32.xlu1 %v1200_v35  ;;  %v4419_v35 = vld [vmem:[%s5850_s14] ss:$0 sm:$0xff] }
 0x1c7   : > { %1195 = vadd.xlane.f32.xlu2 %v1194_v36 }
 0x1ca   : > { %v1188_v37 = vpop.f32.mrf.mxu1 }
 0x1cb   : > { %v1183_v38 = vpop.f32.mrf.mxu0  ;;  %v1189_v39 = vadd.f32 %v4418_v29, %v1188_v37 }
 0x1cc   : > { %v1184_v40 = vadd.f32 %v4418_v29, %v1183_v38 }
 0x1cd   : > { %v1203_v41 = vsel %vm1193_vm14, %v1189_v39, 0.0 }
 0x1ce   : > { %v1197_v42 = vsel %vm1193_vm14, %v1184_v40, 0.0 }
 0x1cf   : > { %1198 = vadd.xlane.f32.xlu0 %v1197_v42  ;;  %1204 = vadd.xlane.f32.xlu2 %v1203_v41 }
 0x239   : > { %v1202_v50 = vpop.xlane.xlu1 %1201 }
 0x23a   : > { %v1196_v51 = vpop.xlane.xlu2 %1195  ;;  %v1215_v52 = vmul.f32 %v1212_v49, %v1202_v50 }
 0x23b   : > { %v1213_v53 = vmul.f32 %v1212_v49, %v1196_v51 }
 0x23c   : > { %v4940_v54 = vsub.f32 %v1187_v33, %v1215_v52 }
 0x23d   : > { %v4942_v55 = vsub.f32 %v1182_v34, %v1213_v53 }
 0x23e   : > { %v1223_v56 = vmul.f32 %v4940_v54, %v4940_v54 }
 0x23f   : > { %v1221_v57 = vmul.f32 %v4942_v55, %v4942_v55 }
 0x240   : > { %v1231_v58 = vsel %vm1193_vm14, %v1223_v56, 0.0 }
 0x241   : > { %v1225_v59 = vsel %vm1193_vm14, %v1221_v57, 0.0  ;;  %1232 = vadd.xlane.f32.xlu2 %v1231_v58 }
 0x242   : > { %1226 = vadd.xlane.f32.xlu0 %v1225_v59  ;;  %v1205_v60 = vpop.xlane.xlu2 %1204  ;;  %v1199_v61 = vpop.xlane.xlu0 %1198 }
 0x243   : > { %v1216_v62 = vmul.f32 %v1212_v49, %v1205_v60  ;;  %v1214_v63 = vmul.f32 %v1212_v49, %v1199_v61 }
 0x245   : > { %v4950_v0 = vsub.f32 %v1189_v39, %v1216_v62  ;;  %v4952_v1 = vsub.f32 %v1184_v40, %v1214_v63  ;;  %v4420_v40 = vld [vmem:[%s5851_s10] ss:$0 sm:$0xff] }
 0x247   : > { %v1224_v2 = vmul.f32 %v4950_v0, %v4950_v0  ;;  %v1222_v3 = vmul.f32 %v4952_v1, %v4952_v1 }
 0x249   : > { %v1234_v4 = vsel %vm1193_vm14, %v1224_v2, 0.0  ;;  %v1228_v5 = vsel %vm1193_vm14, %v1222_v3, 0.0  ;;  %v1310_v2 = vld [vmem:[%s5849_s28 + $0x9] sm:$0xff] }
 0x24a   : > { %1235 = vadd.xlane.f32.xlu0 %v1234_v4  ;;  %1229 = vadd.xlane.f32.xlu1 %v1228_v5 }
 0x2b4   : > { %v1233_v6 = vpop.xlane.xlu2 %1232 }
 0x2b5   : > { %v1239_v7 = vmul.f32 %v1233_v6, %v1212_v49  ;;  %v1227_v8 = vpop.xlane.xlu0 %1226 }
 0x2b6   : > { %v1237_v9 = vmul.f32 %v1227_v8, %v1212_v49 }
 0x2b7   : > { %v1243_v10 = vadd.f32 1e-05, %v1239_v7 }
 0x2b8   : > { %v1241_v11 = vadd.f32 1e-05, %v1237_v9 }
 0x2b9   : > { %4433 = vrsqrt.f32 %v1243_v10  ;;  %vm1271_vm4 = vweird.f32 %v1243_v10 }
 0x2ba   : > { %4435 = vrsqrt.f32 %v1241_v11  ;;  %vm1251_vm6 = vweird.f32 %v1241_v11 }
 0x2bd   : > { %v1230_v15 = vpop.xlane.xlu1 %1229  ;;  %v1236_v16 = vpop.xlane.xlu0 %1235 }
 0x2be   : > { %v1238_v17 = vmul.f32 %v1230_v15, %v1212_v49  ;;  %v1240_v18 = vmul.f32 %v1236_v16, %v1212_v49 }
 0x2bf   : > { %v4434_v19 = vpop.eup %4433 }
 0x2c0   : > { %v4436_v22 = vpop.eup %4435  ;;  %v1266_v23 = vmul.f32 %v4434_v19, %v1243_v10  ;;  %v1242_v20 = vadd.f32 1e-05, %v1238_v17  ;;  %v1244_v24 = vadd.f32 1e-05, %v1240_v18  ;;  %vm1272_vm2 = vweird.f32 %v4434_v19 }
 0x2c1   : > { %v1246_v25 = vmul.f32 %v4436_v22, %v1241_v11  ;;  %vm1252_vm3 = vweird.f32 %v4436_v22  ;;  %vm1273_vm5 = vmor %vm1271_vm4, %vm1272_vm2 }
 0x2c2   : > { %v1267_v26 = vmul.f32 %v4434_v19, %v1266_v23  ;;  %4437 = vrsqrt.f32 %v1242_v20  ;;  %vm1253_vm7 = vmor %vm1251_vm6, %vm1252_vm3  ;;  %vm1261_vm10 = vweird.f32 %v1242_v20  ;;  %vm1281_vm12 = vweird.f32 %v1244_v24 }
 0x2c3   : > { %v1247_v27 = vmul.f32 %v4436_v22, %v1246_v25  ;;  %4439 = vrsqrt.f32 %v1244_v24 }
 0x2c4   : > { %v1268_v28 = vmul.f32 0.5, %v1267_v26 }
 0x2c5   : > { %v1248_v31 = vmul.f32 0.5, %v1247_v27 }
 0x2c6   : > { %v1269_v29 = vsub.f32 1.5, %v1268_v28 }
 0x2c7   : > { %v1249_v32 = vsub.f32 1.5, %v1248_v31 }
 0x2c8   : > { %v4438_v30 = vpop.eup %4437  ;;  %v1270_v33 = vmul.f32 %v4434_v19, %v1269_v29 }
 0x2c9   : > { %v4440_v34 = vpop.eup %4439  ;;  %v1250_v36 = vmul.f32 %v4436_v22, %v1249_v32  ;;  %v1256_v37 = vmul.f32 %v4438_v30, %v1242_v20  ;;  %vm1262_vm8 = vweird.f32 %v4438_v30 }
 0x2ca   : > { %v1274_v38 = vsel %vm1273_vm5, %v4434_v19, %v1270_v33  ;;  %v1276_v39 = vmul.f32 %v4440_v34, %v1244_v24  ;;  %vm1282_vm9 = vweird.f32 %v4440_v34  ;;  %vm1263_vm11 = vmor %vm1261_vm10, %vm1262_vm8 }
 0x2cb   : > { %v1287_v41 = vmul.f32 %v1274_v38, %v4940_v54  ;;  %v1254_v42 = vsel %vm1253_vm7, %v4436_v22, %v1250_v36  ;;  %v1257_v43 = vmul.f32 %v4438_v30, %v1256_v37  ;;  %vm1283_vm13 = vmor %vm1281_vm12, %vm1282_vm9 }
 0x2cc   : > { %v1285_v44 = vmul.f32 %v1254_v42, %v4942_v55  ;;  %v1277_v45 = vmul.f32 %v4440_v34, %v1276_v39 }
 0x2cd   : > { %v1294_v46 = vmul.f32 %v4419_v35, %v1287_v41  ;;  %v1258_v47 = vmul.f32 0.5, %v1257_v43 }
 0x2ce   : > { %v1292_v49 = vmul.f32 %v4419_v35, %v1285_v44  ;;  %v1278_v50 = vmul.f32 0.5, %v1277_v45 }
 0x2cf   : > { %v1301_v51 = vadd.f32 %v4420_v40, %v1294_v46  ;;  %v1259_v52 = vsub.f32 1.5, %v1258_v47 }
 0x2d0   : > { %v1299_v53 = vadd.f32 %v4420_v40, %v1292_v49  ;;  %v1279_v56 = vsub.f32 1.5, %v1278_v50 }
 0x2d1   : > { %v1313_v54 = vadd.f32 %v1309_v48, %v1301_v51  ;;  %v1260_v57 = vmul.f32 %v4438_v30, %v1259_v52 }
 0x2d2   : > { %v1311_v58 = vadd.f32 %v1309_v48, %v1299_v53  ;;  %v1280_v55 = vmul.f32 %v4440_v34, %v1279_v56 }
 0x2d3   : > { %1317 = vst.msk [vmem:[#allocation2 + $0x19] sm:$0xff] %vm1193_vm14, %v1313_v54  ;;  %v1264_v59 = vsel %vm1263_vm11, %v4438_v30, %v1260_v57 }
 0x2d4   : > { %1315 = vst.msk [vmem:[#allocation2 + $0x1] sm:$0xff] %vm1193_vm14, %v1311_v58  ;;  %v1286_v60 = vmul.f32 %v1264_v59, %v4952_v1  ;;  %v1284_v61 = vsel %vm1283_vm13, %v4440_v34, %v1280_v55 }
 0x2d5   : > { %v1288_v62 = vmul.f32 %v1284_v61, %v4950_v0 }
 0x2d6   : > { %v1293_v63 = vmul.f32 %v4419_v35, %v1286_v60 }
 0x2d7   : > { %v1295_v3 = vmul.f32 %v4419_v35, %v1288_v62 }
 0x2d8   : > { %v1300_v4 = vadd.f32 %v4420_v40, %v1293_v63 }
 0x2d9   : > { %v1302_v5 = vadd.f32 %v4420_v40, %v1295_v3 }
 0x2da   : > { %v1312_v6 = vadd.f32 %v1310_v2, %v1300_v4 }
 0x2db   : > { %v1314_v7 = vadd.f32 %v1310_v2, %v1302_v5 }
 0x2dc   : > { %1316 = vst.msk [vmem:[#allocation2 + $0x9] sm:$0xff] %vm1193_vm14, %v1312_v6 }
 0x2dd   : > { %1318 = vst.msk [vmem:[#allocation2 + $0x21] sm:$0xff] %vm1193_vm14, %v1314_v7 }
 0x2de PF: > { %vm1330_vm15 = vcmask 261120   ;;  %v1322_v9 = vld [vmem:[#allocation2] sm:$0xff]  ;;  %v1325_v13 = vld [vmem:[#allocation2 + $0x18] sm:$0xff]  ;;  %v4652_v18 = vmov 32.0   ;;  %v4347_v54 = vld [vmem:[%s4827_s29 + $0x8] sm:$0xff]  ;;  %s5852_s6 = sld [smem:[#allocation18_spill]] }
 0x2df   : > { %v1331_v11 = vsel %vm1330_vm15, %v1322_v9, 0.0  ;;  %v1340_v16 = vsel %vm1330_vm15, %v1325_v13, 0.0  ;;  %4448 = vrcp.f32 %v4652_v18  ;;  %v4349_v57 = vld [vmem:[%s4832_s7 + $0x8] sm:$0xff]  ;;  %1525 = vmatpush.bf16.msra.mxu0 %v4347_v54  ;;  %v4346_v63 = vld [vmem:[%s4827_s29] sm:$0xff]  ;;  %s5854_s25 = sld [smem:[#allocation19_spill]]  ;;  %p4323_p6 = scmp.ne.s32.totalorder %s4639_s27, 1 }
 0x2e0   : > { %1332 = vadd.xlane.f32.xlu0 %v1331_v11  ;;  %v4351_v58 = vld [vmem:[%s4837_s9 + $0x8] sm:$0xff]  ;;  %1565 = vmatpush.bf16.msra.mxu1 %v4349_v57  ;;  %v4348_v2 = vld [vmem:[%s4832_s7] sm:$0xff]  ;;  %s5859_s8 = sld [smem:[#allocation24_spill]] (!%p4323_p6) }
 0x2e1   : > { %1605 = vmatpush.bf16.msra.mxu2 %v4351_v58  ;;  %v4350_v3 = vld [vmem:[%s4837_s9] sm:$0xff] }
 0x2e3   : > { %v1324_v1 = vld [vmem:[#allocation2 + $0x10] sm:$0xff]  ;;  %v1323_v14 = vld [vmem:[#allocation2 + $0x8] sm:$0xff]  ;;  %1526 = vmatpush.bf16.msra.mxu0 %v4346_v63 }
 0x2e4   : > { %v1326_v8 = vld [vmem:[#allocation2 + $0x20] sm:$0xff]  ;;  %v1337_v10 = vsel %vm1330_vm15, %v1324_v1, 0.0  ;;  %v1327_v12 = vld [vmem:[#allocation2 + $0x28] sm:$0xff]  ;;  %v1334_v17 = vsel %vm1330_vm15, %v1323_v14, 0.0  ;;  %1566 = vmatpush.bf16.msra.mxu1 %v4348_v2  ;;  %s5853_s10 = scalar_lea.vmem %s5852_s6, %s4812_s4  ;;  %v4353_v2 = vld [vmem:[%s4827_s29 + $0x18] sm:$0xff] }
 0x2e5   : > { %v1343_v0 = vsel %vm1330_vm15, %v1326_v8, 0.0  ;;  %1338 = vadd.xlane.f32.xlu1 %v1337_v10  ;;  %v1346_v15 = vsel %vm1330_vm15, %v1327_v12, 0.0  ;;  %v4449_v19 = vpop.eup %4448  ;;  %1606 = vmatpush.bf16.msra.mxu2 %v4350_v3  ;;  %s5855_s30 = scalar_lea.vmem %s5854_s25, %s4812_s4  ;;  %v4357_v3 = vld [vmem:[%s4837_s9 + $0x18] sm:$0xff] }
 0x2e6   : > { %1344 = vadd.xlane.f32.xlu2 %v1343_v0  ;;  %v1350_v21 = vmul.f32 32.0, %v4449_v19  ;;  %vm1354_vm14 = vweird.f32 %v4449_v19 }
 0x2e7   : > { %1970 = vmatpush.bf16.msrb.mxu0 %v4357_v3 }
 0x2e8   : > { %1335 = vadd.xlane.f32.xlu0 %v1334_v17  ;;  %v1351_v22 = vsub.f32 1.0, %v1350_v21 }
 0x2e9   : > { %1888 = vmatpush.bf16.msrb.mxu2 %v4353_v2 }
 0x2ea   : > { %v1352_v23 = vmul.f32 %v4449_v19, %v1351_v22 }
 0x2ec   : > { %v1353_v20 = vadd.f32 %v4449_v19, %v1352_v23 }
 0x2ed   : > { %1341 = vadd.xlane.f32.xlu1 %v1340_v16 }
 0x2ee   : > { %1347 = vadd.xlane.f32.xlu2 %v1346_v15  ;;  %v4992_v24 = vsel %vm1354_vm14, %v4449_v19, %v1353_v20 }
 0x353   : > { %v1333_v28 = vpop.xlane.xlu0 %1332 }
 0x354   : > { %v1356_v31 = vmul.f32 %v4992_v24, %v1333_v28 }
 0x356   : > { %v4998_v32 = vsub.f32 %v1322_v9, %v1356_v31 }
 0x358   : > { %v1339_v26 = vpop.xlane.xlu1 %1338  ;;  %v1368_v33 = vmul.f32 %v4998_v32, %v4998_v32 }
 0x359   : > { %v1345_v25 = vpop.xlane.xlu2 %1344  ;;  %v1358_v27 = vmul.f32 %v4992_v24, %v1339_v26 }
 0x35a   : > { %v1374_v37 = vsel %vm1330_vm15, %v1368_v33, 0.0  ;;  %v1360_v41 = vmul.f32 %v4992_v24, %v1345_v25 }
 0x35b   : > { %v4996_v29 = vsub.f32 %v1324_v1, %v1358_v27  ;;  %1375 = vadd.xlane.f32.xlu0 %v1374_v37  ;;  %v1336_v40 = vpop.xlane.xlu0 %1335  ;;  %v5060_v37 = vld [vmem:[%s5853_s10] ss:$0 sm:$0xff] }
 0x35c   : > { %v1357_v42 = vmul.f32 %v4992_v24, %v1336_v40  ;;  %v5020_v48 = vsub.f32 %v1326_v8, %v1360_v41 }
 0x35d   : > { %v1370_v30 = vmul.f32 %v4996_v29, %v4996_v29 }
 0x35e   : > { %v5014_v45 = vsub.f32 %v1323_v14, %v1357_v42  ;;  %v1372_v53 = vmul.f32 %v5020_v48, %v5020_v48 }
 0x35f   : > { %v1380_v34 = vsel %vm1330_vm15, %v1370_v30, 0.0 }
 0x360   : > { %1381 = vadd.xlane.f32.xlu2 %v1380_v34  ;;  %v1342_v36 = vpop.xlane.xlu1 %1341  ;;  %v1369_v49 = vmul.f32 %v5014_v45, %v5014_v45  ;;  %v1386_v56 = vsel %vm1330_vm15, %v1372_v53, 0.0 }
 0x361   : > { %v1348_v35 = vpop.xlane.xlu2 %1347  ;;  %v1359_v39 = vmul.f32 %v4992_v24, %v1342_v36 }
 0x362   : > { %v1361_v38 = vmul.f32 %v4992_v24, %v1348_v35  ;;  %v1377_v52 = vsel %vm1330_vm15, %v1369_v49, 0.0 }
 0x363   : > { %v5012_v44 = vsub.f32 %v1325_v13, %v1359_v39  ;;  %1378 = vadd.xlane.f32.xlu1 %v1377_v52 }
 0x364   : > { %v5010_v43 = vsub.f32 %v1327_v12, %v1361_v38 }
 0x365   : > { %v1371_v47 = vmul.f32 %v5012_v44, %v5012_v44 }
 0x366   : > { %v1373_v46 = vmul.f32 %v5010_v43, %v5010_v43 }
 0x367   : > { %v1383_v51 = vsel %vm1330_vm15, %v1371_v47, 0.0  ;;  %v5069_v47 = vld [vmem:[%s5855_s30] ss:$0 sm:$0xff] }
 0x368   : > { %v1389_v50 = vsel %vm1330_vm15, %v1373_v46, 0.0  ;;  %1384 = vadd.xlane.f32.xlu0 %v1383_v51 }
 0x369   : > { %1390 = vadd.xlane.f32.xlu2 %v1389_v50 }
 0x36b   : > { %1387 = vadd.xlane.f32.xlu1 %v1386_v56 }
 0x3ce   : > { %v1376_v59 = vpop.xlane.xlu0 %1375 }
 0x3cf   : > { %v1392_v60 = vmul.f32 %v1376_v59, %v4992_v24 }
 0x3d1   : > { %v1398_v62 = vadd.f32 1e-05, %v1392_v60 }
 0x3d3   : > { %v1382_v55 = vpop.xlane.xlu2 %1381  ;;  %4450 = vrsqrt.f32 %v1398_v62  ;;  %vm1410_vm1 = vweird.f32 %v1398_v62 }
 0x3d4   : > { %v1394_v61 = vmul.f32 %v1382_v55, %v4992_v24 }
 0x3d6   : > { %v5038_v4 = vadd.f32 1e-05, %v1394_v61  ;;  %v1379_v5 = vpop.xlane.xlu1 %1378 }
 0x3d7   : > { %v1393_v7 = vmul.f32 %v1379_v5, %v4992_v24 }
 0x3d8   : > { %4452 = vrsqrt.f32 %v5038_v4  ;;  %vm1430_vm8 = vweird.f32 %v5038_v4 }
 0x3d9   : > { %v4451_v1 = vpop.eup %4450  ;;  %v1399_v9 = vadd.f32 1e-05, %v1393_v7  ;;  %v4356_v7 = vld [vmem:[%s4837_s9 + $0x10] sm:$0xff] }
 0x3da   : > { %v1405_v10 = vmul.f32 %v4451_v1, %v1398_v62  ;;  %vm1411_vm0 = vweird.f32 %v4451_v1  ;;  %1971 = vmatpush.bf16.msrb.mxu0 %v4356_v7 }
 0x3db   : > { %v1385_v6 = vpop.xlane.xlu0 %1384  ;;  %4454 = vrsqrt.f32 %v1399_v9  ;;  %vm1412_vm2 = vmor %vm1410_vm1, %vm1411_vm0  ;;  %vm1420_vm4 = vweird.f32 %v1399_v9 }
 0x3dc   : > { %v1395_v8 = vmul.f32 %v1385_v6, %v4992_v24  ;;  %v1406_v11 = vmul.f32 %v4451_v1, %v1405_v10  ;;  %v1391_v13 = vpop.xlane.xlu2 %1390  ;;  %v4352_v6 = vld [vmem:[%s4827_s29 + $0x10] sm:$0xff] }
 0x3dd   : > { %v1397_v19 = vmul.f32 %v1391_v13, %v4992_v24  ;;  %1889 = vmatpush.bf16.msrb.mxu2 %v4352_v6 }
 0x3de   : > { %v1401_v0 = vadd.f32 1e-05, %v1395_v8  ;;  %v1407_v12 = vmul.f32 0.5, %v1406_v11  ;;  %v1388_v14 = vpop.xlane.xlu1 %1387  ;;  %v5043_v15 = vpop.eup %4452 }
 0x3df   : > { %v1396_v16 = vmul.f32 %v1388_v14, %v4992_v24  ;;  %v1425_v22 = vmul.f32 %v5043_v15, %v5038_v4  ;;  %v5051_v28 = vadd.f32 1e-05, %v1397_v19  ;;  %vm1431_vm9 = vweird.f32 %v5043_v15 }
 0x3e0   : > { %4456 = vrsqrt.f32 %v1401_v0  ;;  %v1408_v17 = vsub.f32 1.5, %v1407_v12  ;;  %vm1440_vm6 = vweird.f32 %v1401_v0  ;;  %vm5081_vm11 = vmor %vm1430_vm8, %vm1431_vm9 }
 0x3e1   : > { %v4455_v18 = vpop.eup %4454  ;;  %v5049_v26 = vadd.f32 1e-05, %v1396_v16  ;;  %v1426_v30 = vmul.f32 %v5043_v15, %v1425_v22  ;;  %vm1460_vm14 = vweird.f32 %v5051_v28 }
 0x3e2   : > { %v1409_v23 = vmul.f32 %v4451_v1, %v1408_v17  ;;  %v1415_v20 = vmul.f32 %v4455_v18, %v1399_v9  ;;  %vm1421_vm3 = vweird.f32 %v4455_v18 }
 0x3e3   : > { %4458 = vrsqrt.f32 %v5049_v26  ;;  %v1427_v39 = vmul.f32 0.5, %v1426_v30  ;;  %vm1422_vm5 = vmor %vm1420_vm4, %vm1421_vm3  ;;  %vm1450_vm12 = vweird.f32 %v5049_v26  ;;  %vm1623_vm3 = vcmask 64512  }
 0x3e4   : > { %v1416_v27 = vmul.f32 %v4455_v18, %v1415_v20  ;;  %v1413_v33 = vsel %vm1412_vm2, %v4451_v1, %v1409_v23  ;;  %4460 = vrsqrt.f32 %v5051_v28 }
 0x3e5   : > { %v1464_v38 = vmul.f32 %v1413_v33, %v4998_v32  ;;  %v1428_v32 = vsub.f32 1.5, %v1427_v39 }
 0x3e6   : > { %v4457_v21 = vpop.eup %4456  ;;  %v1417_v34 = vmul.f32 0.5, %v1416_v27 }
 0x3e7   : > { %v1435_v25 = vmul.f32 %v4457_v21, %v1401_v0  ;;  %v1473_v49 = vmul.f32 %v5060_v37, %v1464_v38  ;;  %vm1441_vm7 = vweird.f32 %v4457_v21 }
 0x3e8   : > { %v1418_v35 = vsub.f32 1.5, %v1417_v34  ;;  %vm1442_vm10 = vmor %vm1440_vm6, %vm1441_vm7  ;;  %vm2238_vm6 = vcmask 1043456  }
 0x3e9   : > { %v1436_v31 = vmul.f32 %v4457_v21, %v1435_v25  ;;  %v4459_v46 = vpop.eup %4458  ;;  %v1482_v54 = vadd.f32 %v5069_v47, %v1473_v49  ;;  %v4354_v49 = vld [vmem:[%s4832_s7 + $0x10] sm:$0xff] }
 0x3ea   : > { %v1419_v40 = vmul.f32 %v4455_v18, %v1418_v35  ;;  %v4461_v51 = vpop.eup %4460  ;;  %v1445_v56 = vmul.f32 %v4459_v46, %v5049_v26  ;;  %vm1451_vm13 = vweird.f32 %v4459_v46 }
 0x3eb   : > { %v1437_v36 = vmul.f32 0.5, %v1436_v31  ;;  %v1455_v58 = vmul.f32 %v4461_v51, %v5051_v28  ;;  %vm1461_vm0 = vweird.f32 %v4461_v51  ;;  %vm1452_vm1 = vmor %vm1450_vm12, %vm1451_vm13 }
 0x3ec   : > { %v1423_v41 = vsel %vm1422_vm5, %v4455_v18, %v1419_v40  ;;  %v1446_v61 = vmul.f32 %v4459_v46, %v1445_v56  ;;  %vm1462_vm2 = vmor %vm1460_vm14, %vm1461_vm0  ;;  %v1491_v56 = vlaneseq  ;;  %vm1724_vm5 = vcmask 195584  }
 0x3ed   : > { %v1438_v42 = vsub.f32 1.5, %v1437_v36  ;;  %v1465_v50 = vmul.f32 %v1423_v41, %v5014_v45  ;;  %v1429_v45 = vmul.f32 %v5043_v15, %v1428_v32  ;;  %v1456_v63 = vmul.f32 %v4461_v51, %v1455_v58 }
 0x3ee   : > { %v1447_v5 = vmul.f32 0.5, %v1446_v61 }
 0x3ef   : > { %v1474_v52 = vmul.f32 %v5060_v37, %v1465_v50  ;;  %v1439_v53 = vmul.f32 %v4457_v21, %v1438_v42  ;;  %v1433_v62 = vsel %vm5081_vm11, %v5043_v15, %v1429_v45  ;;  %v1457_v1 = vmul.f32 0.5, %v1456_v63  ;;  %v4355_v42 = vld [vmem:[%s4832_s7 + $0x18] sm:$0xff] }
 0x3f0   : > { %v1466_v8 = vmul.f32 %v1433_v62, %v4996_v29  ;;  %v1448_v0 = vsub.f32 1.5, %v1447_v5 }
 0x3f1   : > { %v1483_v57 = vadd.f32 %v5069_v47, %v1474_v52  ;;  %v1443_v60 = vsel %vm1442_vm10, %v4457_v21, %v1439_v53  ;;  %v1458_v11 = vsub.f32 1.5, %v1457_v1 }
 0x3f2   : > { %v1467_v4 = vmul.f32 %v1443_v60, %v5012_v44  ;;  %v1475_v10 = vmul.f32 %v5060_v37, %v1466_v8  ;;  %v1449_v12 = vmul.f32 %v4459_v46, %v1448_v0 }
 0x3f3   : > { %v5085_v59 = vpack.c.bf16 %v1483_v57, %v1482_v54  ;;  %v1459_v13 = vmul.f32 %v4461_v51, %v1458_v11  ;;  %v5162_v54 = vand.u32 127, %v1491_v56 }
 0x3f4   : > { %v1476_v9 = vmul.f32 %v5060_v37, %v1467_v4  ;;  %v1484_v29 = vadd.f32 %v5069_v47, %v1475_v10  ;;  %v1453_v15 = vsel %vm1452_vm1, %v4459_v46, %v1449_v12 }
 0x3f5   : > { %4040 = vmatmul.msk.bf16.vlgmr.msra.gmra.mxu0 %vm1330_vm15, %v5085_v59  ;;  %4051 = vmatmul.msk.bf16.vlgmr.msra.gmra.mxu1 %vm1330_vm15, %v5085_v59  ;;  %v1463_v16 = vsel %vm1462_vm2, %v4461_v51, %v1459_v13  ;;  %v1468_v17 = vmul.f32 %v1453_v15, %v5020_v48  ;;  %vm1493_vm4 = vcmp.lt.s32.totalorder %v5162_v54, 17 }
 0x3f6   : > { %4062 = vmatmul.msk.bf16.vlgmr.msra.gmra.mxu2 %vm1330_vm15, %v5085_v59  ;;  %v1485_v44 = vadd.f32 %v5069_v47, %v1476_v9  ;;  %v1469_v18 = vmul.f32 %v1463_v16, %v5010_v43 }
 0x3f7   : > { %v1477_v19 = vmul.f32 %v5060_v37, %v1468_v17 }
 0x3f8   : > { %v5108_v14 = vpack.c.bf16 %v1485_v44, %v1484_v29  ;;  %v1478_v21 = vmul.f32 %v5060_v37, %v1469_v18 }
 0x3f9   : > { %v1486_v22 = vadd.f32 %v5069_v47, %v1477_v19 }
 0x3fa   : > { %v1487_v23 = vadd.f32 %v5069_v47, %v1478_v21 }
 0x3fc   : > { %v5122_v20 = vpack.c.bf16 %v1487_v23, %v1486_v22 }
 0x405   : > { %4041 = vmatmul.msk.bf16.gmra.mxu0 %vm1330_vm15, %v5108_v14  ;;  %4052 = vmatmul.msk.bf16.gmra.mxu1 %vm1330_vm15, %v5108_v14 }
 0x406   : > { %4063 = vmatmul.msk.bf16.gmra.mxu2 %vm1330_vm15, %v5108_v14 }
 0x415   : > { %4042 = vmatmul.msk.bf16.gmra.mxu0 %vm1330_vm15, %v5122_v20  ;;  %4053 = vmatmul.msk.bf16.gmra.mxu1 %vm1330_vm15, %v5122_v20 }
 0x416   : > { %4064 = vmatmul.msk.bf16.gmra.mxu2 %vm1330_vm15, %v5122_v20 }
 0x425   : > { %4125 = vmatmul.msk.bf16.vlgmr.msrb.gmra.mxu0 %vm1330_vm15, %v5085_v59 }
 0x426   : > { %4095 = vmatmul.msk.bf16.vlgmr.msrb.gmra.mxu2 %vm1330_vm15, %v5085_v59 }
 0x435   : > { %4126 = vmatmul.msk.bf16.gmra.mxu0 %vm1330_vm15, %v5108_v14 }
 0x436   : > { %4096 = vmatmul.msk.bf16.gmra.mxu2 %vm1330_vm15, %v5108_v14 }
 0x445   : > { %4127 = vmatmul.msk.bf16.gmra.mxu0 %vm1330_vm15, %v5122_v20 }
 0x446   : > { %4097 = vmatmul.msk.bf16.gmra.mxu2 %vm1330_vm15, %v5122_v20 }
 0x472   : > { %v1528_v43 = vpop.f32.mrf.mxu0  ;;  %v1568_v48 = vpop.f32.mrf.mxu1 }
 0x479   : > { %v1608_v25 = vpop.f32.mrf.mxu2 }
 0x47a   : > { %v1530_v26 = vpop.f32.mrf.mxu0  ;;  %v1570_v27 = vpop.f32.mrf.mxu1 }
 0x481   : > { %v1610_v28 = vpop.f32.mrf.mxu2 }
 0x482   : > { %v1533_v31 = vpop.f32.mrf.mxu0  ;;  %v1573_v30 = vpop.f32.mrf.mxu1 }
 0x483   : > { %4065 = vmatpush.xpose.msk.msra.mxu3 %vm1623_vm3, %v1573_v30 }
 0x487   : > { %4066 = vmatpush.xpose.msk.msra.mxu3 %vm1623_vm3, %v1570_v27 }
 0x489   : > { %v1613_v33 = vpop.f32.mrf.mxu2 }
 0x48a   : > { %1813 = vmatpush.msrb.mxu1 %v1613_v33  ;;  %v1535_v34 = vpop.f32.mrf.mxu0  ;;  %v1575_v35 = vpop.f32.mrf.mxu1 }
 0x48b   : > { %4067 = vmatpush.xpose.msk.msra.mxu3 %vm1623_vm3, %v1568_v48 }
 0x48c   : > { %1814 = vmatpush.msrb.mxu1 %v1610_v28 }
 0x48e   : > { %1815 = vmatpush.msrb.mxu1 %v1608_v25  ;;  %4068 = vmatmul.msk.f32.vlgmr.msra.gmra.mxu3 %vm1623_vm3, %v1528_v43 }
 0x491   : > { %v1615_v36 = vpop.f32.mrf.mxu2 }
 0x492   : > { %v1538_v37 = vpop.f32.mrf.mxu0  ;;  %v1578_v38 = vpop.f32.mrf.mxu1 }
 0x496   : > { %4069 = vmatmul.msk.f32.gmra.mxu3 %vm1623_vm3, %v1530_v26 }
 0x499   : > { %v1618_v39 = vpop.f32.mrf.mxu2 }
 0x49a   : > { %v1540_v40 = vpop.f32.mrf.mxu0  ;;  %v1580_v41 = vpop.f32.mrf.mxu1 }
 0x49b   : > { %4071 = vmatpush.xpose.msk.msrb.mxu3 %vm1623_vm3, %v1580_v41 }
 0x49e   : > { %4070 = vmatmul.msk.f32.gmra.mxu3 %vm1623_vm3, %v1533_v31 }
 0x49f   : > { %4072 = vmatpush.xpose.msk.msrb.mxu3 %vm1623_vm3, %v1578_v38 }
 0x4a1   : > { %v1620_v46 = vpop.f32.mrf.mxu2 }
 0x4a2   : > { %1848 = vmatpush.msra.mxu1 %v1620_v46  ;;  %v1973_v47 = vpop.f32.mrf.mxu0 }
 0x4a3   : > { %4073 = vmatpush.xpose.msk.msrb.mxu3 %vm1623_vm3, %v1575_v35 }
 0x4a4   : > { %1849 = vmatpush.msra.mxu1 %v1618_v39 }
 0x4a6   : > { %1850 = vmatpush.msra.mxu1 %v1615_v36  ;;  %4074 = vmatmul.msk.f32.vlgmr.msrb.gmra.mxu3 %vm1623_vm3, %v1535_v34 }
 0x4a7   : > { %1929 = vmatpush.bf16.msra.mxu3 %v4355_v42 }
 0x4aa   : > { %v1975_v50 = vpop.f32.mrf.mxu0 }
 0x4ab   : > { %1930 = vmatpush.bf16.msra.mxu3 %v4354_v49 }
 0x4ae   : > { %4075 = vmatmul.msk.f32.gmra.mxu3 %vm1623_vm3, %v1538_v37 }
 0x4b2   : > { %v1978_v32 = vpop.f32.mrf.mxu0 }
 0x4b3   : > { %2176 = vmatpush.msra.mxu2 %v1978_v32 }
 0x4b5   : > { %2177 = vmatpush.msra.mxu2 %v1975_v50 }
 0x4b6   : > { %4076 = vmatmul.msk.f32.gmra.mxu3 %vm1623_vm3, %v1540_v40 }
 0x4b7   : > { %2178 = vmatpush.msra.mxu2 %v1973_v47 }
 0x4ba   : > { %v1980_v51 = vpop.f32.mrf.mxu0 }
 0x4be   : > { %4110 = vmatmul.msk.bf16.vlgmr.msra.gmra.mxu3 %vm1330_vm15, %v5085_v59 }
 0x4c2   : > { %v1983_v52 = vpop.f32.mrf.mxu0 }
 0x4ca   : > { %v1985_v53 = vpop.f32.mrf.mxu0 }
 0x4cb   : > { %2211 = vmatpush.msrb.mxu3 %v1985_v53 }
 0x4cd   : > { %2212 = vmatpush.msrb.mxu3 %v1983_v52 }
 0x4ce   : > { %4111 = vmatmul.msk.bf16.gmra.mxu3 %vm1330_vm15, %v5108_v14 }
 0x4cf   : > { %2213 = vmatpush.msrb.mxu3 %v1980_v51 }
 0x4de   : > { %4112 = vmatmul.msk.bf16.gmra.mxu3 %vm1330_vm15, %v5122_v20 }
 0x511   : > { %v1659_v57 = vpop.f32.mrf.mxu3 }
 0x512   : > { %v1712_v45 = vmul.f32 0.35355338, %v1659_v57 }
 0x514   : > { %v1718_v58 = vsel %vm1493_vm4, %v1712_v45, -1e+30 }
 0x515   : > { %v1725_v55 = vsel %vm1724_vm5, %v1718_v58, -inf }
 0x516   : > { %1726 = vmax.xlane.f32.xlu0 %v1725_v55 }
 0x519   : > { %v1662_v60 = vpop.f32.mrf.mxu3 }
 0x51a   : > { %v1713_v61 = vmul.f32 0.35355338, %v1662_v60 }
 0x51c   : > { %v1719_v62 = vsel %vm1493_vm4, %v1713_v61, -1e+30 }
 0x51d   : > { %v1728_v63 = vsel %vm1724_vm5, %v1719_v62, -inf }
 0x51e   : > { %1729 = vmax.xlane.f32.xlu1 %v1728_v63 }
 0x521   : > { %v1665_v2 = vpop.f32.mrf.mxu3 }
 0x522   : > { %v1714_v3 = vmul.f32 0.35355338, %v1665_v2 }
 0x524   : > { %v1720_v4 = vsel %vm1493_vm4, %v1714_v3, -1e+30 }
 0x525   : > { %v1731_v5 = vsel %vm1724_vm5, %v1720_v4, -inf }
 0x526   : > { %1732 = vmax.xlane.f32.xlu2 %v1731_v5 }
 0x529   : > { %v1703_v6 = vpop.f32.mrf.mxu3 }
 0x52a   : > { %v1715_v7 = vmul.f32 0.35355338, %v1703_v6 }
 0x52c   : > { %v1721_v8 = vsel %vm1493_vm4, %v1715_v7, -1e+30 }
 0x52d   : > { %v1734_v1 = vsel %vm1724_vm5, %v1721_v8, -inf }
 0x52e   : > { %1735 = vmax.xlane.f32.xlu0 %v1734_v1 }
 0x531   : > { %v1706_v9 = vpop.f32.mrf.mxu3 }
 0x532   : > { %v1716_v0 = vmul.f32 0.35355338, %v1706_v9 }
 0x534   : > { %v1722_v10 = vsel %vm1493_vm4, %v1716_v0, -1e+30 }
 0x535   : > { %v1737_v11 = vsel %vm1724_vm5, %v1722_v10, -inf }
 0x536   : > { %1738 = vmax.xlane.f32.xlu1 %v1737_v11 }
 0x539   : > { %v1709_v44 = vpop.f32.mrf.mxu3 }
 0x53a   : > { %v1717_v12 = vmul.f32 0.35355338, %v1709_v44 }
 0x53c   : > { %v1723_v29 = vsel %vm1493_vm4, %v1717_v12, -1e+30 }
 0x53d   : > { %v1740_v13 = vsel %vm1724_vm5, %v1723_v29, -inf }
 0x53e   : > { %1741 = vmax.xlane.f32.xlu2 %v1740_v13 }
 0x541   : > { %v1932_v32 = vpop.f32.mrf.mxu3 }
 0x549   : > { %v1934_v51 = vpop.f32.mrf.mxu3 }
 0x551   : > { %v1937_v53 = vpop.f32.mrf.mxu3 }
 0x589   : > { %v1727_v15 = vpop.xlane.xlu0 %1726 }
 0x58a   : > { %v1743_v16 = vsub.f32 %v1718_v58, %v1727_v15  ;;  %v1939_v58 = vpop.f32.mrf.mxu3 }
 0x58c   : > { %v1749_v17 = vmul.f32 1.442695, %v1743_v16  ;;  %v1864_v16 = vld [vmem:[%s4842_s5] sm:$0xf] }
 0x58e   : > { %4462 = vpow2.f32 %v1749_v17  ;;  %v2276_v17 = vsel %vm2238_vm6, %v1864_v16, 0 }
 0x591   : > { %v1730_v18 = vpop.xlane.xlu1 %1729 }
 0x592   : > { %v1744_v19 = vsub.f32 %v1719_v62, %v1730_v18  ;;  %v1942_v63 = vpop.f32.mrf.mxu3 }
 0x594   : > { %v4463_v21 = vpop.eup %4462  ;;  %v1751_v22 = vmul.f32 1.442695, %v1744_v19 }
 0x595   : > { %v1761_v23 = vsel %vm1724_vm5, %v4463_v21, 0.0 }
 0x596   : > { %4464 = vpow2.f32 %v1751_v22  ;;  %1762 = vadd.xlane.f32.xlu0 %v1761_v23 }
 0x599   : > { %v1733_v43 = vpop.xlane.xlu2 %1732 }
 0x59a   : > { %v1745_v48 = vsub.f32 %v1720_v4, %v1733_v43  ;;  %v1944_v7 = vpop.f32.mrf.mxu3 }
 0x59c   : > { %v4465_v25 = vpop.eup %4464  ;;  %v1753_v26 = vmul.f32 1.442695, %v1745_v48 }
 0x59d   : > { %v1764_v27 = vsel %vm1724_vm5, %v4465_v25, 0.0 }
 0x59e   : > { %4466 = vpow2.f32 %v1753_v26  ;;  %1765 = vadd.xlane.f32.xlu1 %v1764_v27 }
 0x5a1   : > { %v1736_v28 = vpop.xlane.xlu0 %1735 }
 0x5a2   : > { %v1746_v31 = vsub.f32 %v1721_v8, %v1736_v28 }
 0x5a4   : > { %v4467_v30 = vpop.eup %4466  ;;  %v1755_v33 = vmul.f32 1.442695, %v1746_v31 }
 0x5a5   : > { %v1767_v34 = vsel %vm1724_vm5, %v4467_v30, 0.0 }
 0x5a6   : > { %4468 = vpow2.f32 %v1755_v33  ;;  %1768 = vadd.xlane.f32.xlu2 %v1767_v34 }
 0x5a9   : > { %v1739_v35 = vpop.xlane.xlu1 %1738 }
 0x5aa   : > { %v1747_v36 = vsub.f32 %v1722_v10, %v1739_v35  ;;  %v1891_v10 = vpop.f32.mrf.mxu2 }
 0x5ac   : > { %v4469_v37 = vpop.eup %4468  ;;  %v1757_v38 = vmul.f32 1.442695, %v1747_v36 }
 0x5ad   : > { %v1770_v39 = vsel %vm1724_vm5, %v4469_v37, 0.0 }
 0x5ae   : > { %4470 = vpow2.f32 %v1757_v38  ;;  %1771 = vadd.xlane.f32.xlu0 %v1770_v39 }
 0x5b1   : > { %v1742_v40 = vpop.xlane.xlu2 %1741 }
 0x5b2   : > { %v1748_v41 = vsub.f32 %v1723_v29, %v1742_v40  ;;  %v1893_v44 = vpop.f32.mrf.mxu2 }
 0x5b4   : > { %v4471_v42 = vpop.eup %4470  ;;  %v1759_v46 = vmul.f32 1.442695, %v1748_v41 }
 0x5b5   : > { %v1773_v47 = vsel %vm1724_vm5, %v4471_v42, 0.0 }
 0x5b6   : > { %4472 = vpow2.f32 %v1759_v46  ;;  %1774 = vadd.xlane.f32.xlu1 %v1773_v47 }
 0x5ba   : > { %v1896_v12 = vpop.f32.mrf.mxu2 }
 0x5bc   : > { %v4473_v49 = vpop.eup %4472 }
 0x5bd   : > { %v1776_v50 = vsel %vm1724_vm5, %v4473_v49, 0.0 }
 0x5be   : > { %1777 = vadd.xlane.f32.xlu2 %v1776_v50 }
 0x5c2   : > { %v1898_v29 = vpop.f32.mrf.mxu2 }
 0x5ca   : > { %v1901_v13 = vpop.f32.mrf.mxu2 }
 0x5d2   : > { %v1903_v15 = vpop.f32.mrf.mxu2 }
 0x609   : > { %v1763_v52 = vpop.xlane.xlu0 %1762 }
 0x60a   : > { %4474 = vrcp.f32 %v1763_v52 }
 0x610   : > { %v4475_v56 = vpop.eup %4474 }
 0x611   : > { %v1766_v57 = vpop.xlane.xlu1 %1765  ;;  %v1785_v45 = vmul.f32 %v4475_v56, %v4463_v21 }
 0x612   : > { %4476 = vrcp.f32 %v1766_v57 }
 0x613   : > { %4077 = vmatmul.msk.f32.vlgmr.msrb.gmra.mxu1 %vm1724_vm5, %v1785_v45 }
 0x614   : > { %4128 = vmatpush.xpose.msk.msrb.mxu1 %vm1623_vm3, %v1937_v53 }
 0x618   : > { %v4477_v55 = vpop.eup %4476  ;;  %4129 = vmatpush.xpose.msk.msrb.mxu1 %vm1623_vm3, %v1934_v51 }
 0x619   : > { %v1769_v60 = vpop.xlane.xlu2 %1768  ;;  %v1786_v61 = vmul.f32 %v4477_v55, %v4465_v25 }
 0x61a   : > { %4478 = vrcp.f32 %v1769_v60 }
 0x61b   : > { %4078 = vmatmul.msk.f32.gmra.mxu1 %vm1724_vm5, %v1786_v61 }
 0x61c   : > { %4130 = vmatpush.xpose.msk.msrb.mxu1 %vm1623_vm3, %v1932_v32 }
 0x620   : > { %v4479_v62 = vpop.eup %4478 }
 0x621   : > { %v1772_v2 = vpop.xlane.xlu0 %1771  ;;  %v1787_v3 = vmul.f32 %v4479_v62, %v4467_v30 }
 0x622   : > { %4480 = vrcp.f32 %v1772_v2 }
 0x623   : > { %4079 = vmatmul.msk.f32.gmra.mxu1 %vm1724_vm5, %v1787_v3 }
 0x628   : > { %v4481_v4 = vpop.eup %4480 }
 0x629   : > { %v1788_v5 = vmul.f32 %v4481_v4, %v4469_v37  ;;  %v1775_v6 = vpop.xlane.xlu1 %1774 }
 0x62a   : > { %4482 = vrcp.f32 %v1775_v6 }
 0x62b   : > { %4080 = vmatmul.msk.f32.vlgmr.msra.gmra.mxu1 %vm1724_vm5, %v1788_v5 }
 0x62c   : > { %4134 = vmatpush.xpose.msk.msra.mxu1 %vm1623_vm3, %v1944_v7 }
 0x630   : > { %v4483_v8 = vpop.eup %4482  ;;  %4135 = vmatpush.xpose.msk.msra.mxu1 %vm1623_vm3, %v1942_v63 }
 0x631   : > { %v1778_v1 = vpop.xlane.xlu2 %1777  ;;  %v1789_v9 = vmul.f32 %v4483_v8, %v4471_v42 }
 0x632   : > { %4484 = vrcp.f32 %v1778_v1 }
 0x633   : > { %4081 = vmatmul.msk.f32.gmra.mxu1 %vm1724_vm5, %v1789_v9 }
 0x634   : > { %4136 = vmatpush.xpose.msk.msra.mxu1 %vm1623_vm3, %v1939_v58 }
 0x638   : > { %v4485_v0 = vpop.eup %4484 }
 0x639   : > { %v1790_v11 = vmul.f32 %v4485_v0, %v4473_v49 }
 0x63b   : > { %4082 = vmatmul.msk.f32.gmra.mxu1 %vm1724_vm5, %v1790_v11 }
 0x643   : > { %4131 = vmatmul.msk.f32.vlgmr.msrb.gmra.mxu1 %vm1623_vm3, %v1891_v10 }
 0x644   : > { %2285 = vmatpush.bf16.msrb.mxu1 %v2276_v17 }
 0x64b   : > { %4132 = vmatmul.msk.f32.gmra.mxu1 %vm1623_vm3, %v1893_v44 }
 0x653   : > { %4133 = vmatmul.msk.f32.gmra.mxu1 %vm1623_vm3, %v1896_v12 }
 0x65b   : > { %4137 = vmatmul.msk.f32.vlgmr.msra.gmra.mxu1 %vm1623_vm3, %v1898_v29 }
 0x663   : > { %4138 = vmatmul.msk.f32.gmra.mxu1 %vm1623_vm3, %v1901_v13 }
 0x66b   : > { %4139 = vmatmul.msk.f32.gmra.mxu1 %vm1623_vm3, %v1903_v15 }
 0x690   : > { %v1817_v18 = vpop.f32.mrf.mxu1 }
 0x698   : > { %v1820_v19 = vpop.f32.mrf.mxu1 }
 0x699   : > { %v1861_v21 = vpack.c.bf16 %v1820_v19, %v1817_v18 }
 0x69b   : > { %4150 = vmatmul.msk.bf16.vlgmr.msrb.gmra.mxu1 %vm1623_vm3, %v1861_v21 }
 0x6a0   : > { %v1823_v22 = vpop.f32.mrf.mxu1 }
 0x6a8   : > { %v1852_v23 = vpop.f32.mrf.mxu1 }
 0x6a9   : > { %v1862_v43 = vpack.c.bf16 %v1852_v23, %v1823_v22  ;;  %v4361_v23 = vld [vmem:[%s4832_s7 + $0x28] sm:$0xff] }
 0x6aa   : > { %2366 = vmatpush.bf16.msra.mxu3 %v4361_v23 }
 0x6ab   : > { %4151 = vmatmul.msk.bf16.gmra.mxu1 %vm1623_vm3, %v1862_v43  ;;  %v4360_v43 = vld [vmem:[%s4832_s7 + $0x20] sm:$0xff] }
 0x6ae   : > { %2367 = vmatpush.bf16.msra.mxu3 %v4360_v43 }
 0x6b0   : > { %v1855_v48 = vpop.f32.mrf.mxu1 }
 0x6b8   : > { %v1858_v25 = vpop.f32.mrf.mxu1 }
 0x6b9   : > { %v1863_v26 = vpack.c.bf16 %v1858_v25, %v1855_v48  ;;  %v4359_v25 = vld [vmem:[%s4827_s29 + $0x28] sm:$0xff] }
 0x6ba   : > { %2325 = vmatpush.bf16.msrb.mxu2 %v4359_v25 }
 0x6bb   : > { %4152 = vmatmul.msk.bf16.gmra.mxu1 %vm1623_vm3, %v1863_v26  ;;  %v4358_v26 = vld [vmem:[%s4827_s29 + $0x20] sm:$0xff] }
 0x6be   : > { %2326 = vmatpush.bf16.msrb.mxu2 %v4358_v26 }
 0x6c0   : > { %v2023_v27 = vpop.f32.mrf.mxu1 }
 0x6c1   : > { %v2076_v36 = vmul.f32 0.35355338, %v2023_v27 }
 0x6c3   : > { %v2082_v39 = vsel %vm1493_vm4, %v2076_v36, -1e+30 }
 0x6c4   : > { %v2088_v41 = vsel %vm1724_vm5, %v2082_v39, -inf }
 0x6c8   : > { %v2026_v28 = vpop.f32.mrf.mxu1 }
 0x6c9   : > { %v2077_v46 = vmul.f32 0.35355338, %v2026_v28 }
 0x6cb   : > { %v2083_v50 = vsel %vm1493_vm4, %v2077_v46, -1e+30 }
 0x6cc   : > { %v2091_v51 = vsel %vm1724_vm5, %v2083_v50, -inf }
 0x6d0   : > { %v2029_v31 = vpop.f32.mrf.mxu1 }
 0x6d1   : > { %v2078_v53 = vmul.f32 0.35355338, %v2029_v31 }
 0x6d3   : > { %v2084_v56 = vsel %vm1493_vm4, %v2078_v53, -1e+30 }
 0x6d4   : > { %v2094_v57 = vsel %vm1724_vm5, %v2084_v56, -inf }
 0x6d8   : > { %v2067_v30 = vpop.f32.mrf.mxu1 }
 0x6d9   : > { %v2079_v33 = vmul.f32 0.35355338, %v2067_v30 }
 0x6db   : > { %v2085_v34 = vsel %vm1493_vm4, %v2079_v33, -1e+30 }
 0x6dc   : > { %v2097_v35 = vsel %vm1724_vm5, %v2085_v34, -inf }
 0x6dd   : > { %2098 = vmax.xlane.f32.xlu0 %v2097_v35 }
 0x6e0   : > { %v2070_v37 = vpop.f32.mrf.mxu1 }
 0x6e1   : > { %v2080_v38 = vmul.f32 0.35355338, %v2070_v37 }
 0x6e3   : > { %v2086_v40 = vsel %vm1493_vm4, %v2080_v38, -1e+30 }
 0x6e4   : > { %v2100_v42 = vsel %vm1724_vm5, %v2086_v40, -inf }
 0x6e5   : > { %2089 = vmax.xlane.f32.xlu0 %v2088_v41  ;;  %2101 = vmax.xlane.f32.xlu1 %v2100_v42 }
 0x6e8   : > { %v2073_v47 = vpop.f32.mrf.mxu1 }
 0x6e9   : > { %v2081_v49 = vmul.f32 0.35355338, %v2073_v47 }
 0x6eb   : > { %v2087_v32 = vsel %vm1493_vm4, %v2081_v49, -1e+30 }
 0x6ec   : > { %v2103_v52 = vsel %vm1724_vm5, %v2087_v32, -inf }
 0x6ed   : > { %2092 = vmax.xlane.f32.xlu1 %v2091_v51  ;;  %2104 = vmax.xlane.f32.xlu2 %v2103_v52 }
 0x6f5   : > { %2095 = vmax.xlane.f32.xlu2 %v2094_v57 }
 0x750   : > { %v2099_v45 = vpop.xlane.xlu0 %2098 }
 0x751   : > { %v2109_v58 = vsub.f32 %v2085_v34, %v2099_v45 }
 0x753   : > { %v2118_v55 = vmul.f32 1.442695, %v2109_v58 }
 0x755   : > { %4486 = vpow2.f32 %v2118_v55  ;;  %v4363_v55 = vld [vmem:[%s4837_s9 + $0x28] sm:$0xff] }
 0x758   : > { %v2090_v60 = vpop.xlane.xlu0 %2089  ;;  %v2102_v61 = vpop.xlane.xlu1 %2101 }
 0x759   : > { %v2106_v62 = vsub.f32 %v2082_v39, %v2090_v60  ;;  %v2110_v63 = vsub.f32 %v2086_v40, %v2102_v61  ;;  %v4362_v61 = vld [vmem:[%s4837_s9 + $0x20] sm:$0xff] }
 0x75b   : > { %v4487_v2 = vpop.eup %4486  ;;  %v2112_v3 = vmul.f32 1.442695, %v2106_v62  ;;  %v2120_v4 = vmul.f32 1.442695, %v2110_v63 }
 0x75c   : > { %v2133_v5 = vsel %vm1724_vm5, %v4487_v2, 0.0 }
 0x75d   : > { %4488 = vpow2.f32 %v2112_v3  ;;  %2134 = vadd.xlane.f32.xlu0 %v2133_v5 }
 0x75e   : > { %4490 = vpow2.f32 %v2120_v4 }
 0x760   : > { %v2093_v6 = vpop.xlane.xlu1 %2092  ;;  %v2105_v7 = vpop.xlane.xlu2 %2104 }
 0x761   : > { %v2107_v8 = vsub.f32 %v2083_v50, %v2093_v6  ;;  %v2111_v1 = vsub.f32 %v2087_v32, %v2105_v7  ;;  %v4146_v50 = vld [vmem:[%s4842_s5 + $0x4] sm:$0xf] }
 0x762   : > { %v2240_v32 = vsel %vm2238_vm6, %v4146_v50, 0 }
 0x763   : > { %v4489_v9 = vpop.eup %4488  ;;  %v2114_v0 = vmul.f32 1.442695, %v2107_v8  ;;  %v2122_v10 = vmul.f32 1.442695, %v2111_v1  ;;  %2249 = vmatpush.bf16.msra.mxu0 %v2240_v32 }
 0x764   : > { %v4491_v11 = vpop.eup %4490  ;;  %v2124_v44 = vsel %vm1724_vm5, %v4489_v9, 0.0 }
 0x765   : > { %4492 = vpow2.f32 %v2114_v0  ;;  %2125 = vadd.xlane.f32.xlu0 %v2124_v44  ;;  %v2136_v12 = vsel %vm1724_vm5, %v4491_v11, 0.0  ;;  %v4366_v0 = vld [vmem:[%s4832_s7 + $0x30] sm:$0xff] }
 0x766   : > { %4494 = vpow2.f32 %v2122_v10  ;;  %2137 = vadd.xlane.f32.xlu1 %v2136_v12  ;;  %v5287_v12 = vpop.f32.mrf.mxu1 }
 0x767   : > { %2407 = vmatpush.bf16.msrb.mxu0 %v4363_v55 }
 0x768   : > { %v2096_v29 = vpop.xlane.xlu2 %2095 }
 0x769   : > { %v2108_v13 = vsub.f32 %v2084_v56, %v2096_v29 }
 0x76b   : > { %v4493_v15 = vpop.eup %4492  ;;  %v2116_v16 = vmul.f32 1.442695, %v2108_v13  ;;  %2408 = vmatpush.bf16.msrb.mxu0 %v4362_v61 }
 0x76c   : > { %v4495_v17 = vpop.eup %4494  ;;  %v2127_v18 = vsel %vm1724_vm5, %v4493_v15, 0.0 }
 0x76d   : > { %4496 = vpow2.f32 %v2116_v16  ;;  %v2139_v19 = vsel %vm1724_vm5, %v4495_v17, 0.0 }
 0x76e   : > { %2128 = vadd.xlane.f32.xlu1 %v2127_v18  ;;  %2140 = vadd.xlane.f32.xlu2 %v2139_v19  ;;  %v5289_v29 = vpop.f32.mrf.mxu1 }
 0x773   : > { %v4497_v21 = vpop.eup %4496 }
 0x774   : > { %v2130_v22 = vsel %vm1724_vm5, %v4497_v21, 0.0 }
 0x776   : > { %2131 = vadd.xlane.f32.xlu2 %v2130_v22  ;;  %v5293_v13 = vpop.f32.mrf.mxu1 }
 0x77e   : > { %v5299_v16 = vpop.f32.mrf.mxu1 }
 0x786   : > { %v5303_v18 = vpop.f32.mrf.mxu1 }
 0x78e   : > { %v2299_v22 = vpop.f32.mrf.mxu1 }
 0x7d0   : > { %v2135_v48 = vpop.xlane.xlu0 %2134 }
 0x7d1   : > { %4498 = vrcp.f32 %v2135_v48 }
 0x7d7   : > { %v4499_v27 = vpop.eup %4498 }
 0x7d8   : > { %v2151_v28 = vmul.f32 %v4499_v27, %v4487_v2  ;;  %v2126_v31 = vpop.xlane.xlu0 %2125 }
 0x7d9   : > { %4500 = vrcp.f32 %v2126_v31  ;;  %v2138_v30 = vpop.xlane.xlu1 %2137 }
 0x7da   : > { %4502 = vrcp.f32 %v2138_v30  ;;  %4143 = vmatmul.msk.f32.vlgmr.msrb.gmra.mxu3 %vm1724_vm5, %v2151_v28 }
 0x7df   : > { %v4501_v33 = vpop.eup %4500 }
 0x7e0   : > { %v4503_v34 = vpop.eup %4502  ;;  %v2148_v35 = vmul.f32 %v4501_v33, %v4489_v9  ;;  %v4367_v9 = vld [vmem:[%s4832_s7 + $0x38] sm:$0xff]  ;;  %s5860_s7 = sld [smem:[#allocation25_spill]] (!%p4323_p6) }
 0x7e1   : > { %v2129_v36 = vpop.xlane.xlu1 %2128  ;;  %v2141_v37 = vpop.xlane.xlu2 %2140  ;;  %v2152_v38 = vmul.f32 %v4503_v34, %v4491_v11 }
 0x7e2   : > { %4504 = vrcp.f32 %v2129_v36  ;;  %4140 = vmatmul.msk.f32.vlgmr.msra.gmra.mxu2 %vm1724_vm5, %v2148_v35 }
 0x7e3   : > { %4506 = vrcp.f32 %v2141_v37  ;;  %4144 = vmatmul.msk.f32.gmra.mxu3 %vm1724_vm5, %v2152_v38 }
 0x7e8   : > { %v4505_v39 = vpop.eup %4504 }
 0x7e9   : > { %v4507_v40 = vpop.eup %4506  ;;  %v2132_v41 = vpop.xlane.xlu2 %2131  ;;  %v2149_v42 = vmul.f32 %v4505_v39, %v4493_v15 }
 0x7ea   : > { %4508 = vrcp.f32 %v2132_v41  ;;  %v2153_v46 = vmul.f32 %v4507_v40, %v4495_v17 }
 0x7eb   : > { %4141 = vmatmul.msk.f32.gmra.mxu2 %vm1724_vm5, %v2149_v42 }
 0x7ec   : > { %4145 = vmatmul.msk.f32.gmra.mxu3 %vm1724_vm5, %v2153_v46 }
 0x7f0   : > { %v4509_v47 = vpop.eup %4508 }
 0x7f1   : > { %v2150_v49 = vmul.f32 %v4509_v47, %v4497_v21 }
 0x7f3   : > { %4142 = vmatmul.msk.f32.gmra.mxu2 %vm1724_vm5, %v2150_v49 }
 0x7f4   : > { %4180 = vmatmul.msk.bf16.vlgmr.msra.gmra.mxu3 %vm1330_vm15, %v5085_v59 }
 0x7fb   : > { %4165 = vmatmul.msk.bf16.vlgmr.msrb.gmra.mxu2 %vm1330_vm15, %v5085_v59 }
 0x804   : > { %4181 = vmatmul.msk.bf16.gmra.mxu3 %vm1330_vm15, %v5108_v14 }
 0x80b   : > { %4166 = vmatmul.msk.bf16.gmra.mxu2 %vm1330_vm15, %v5108_v14 }
 0x814   : > { %4182 = vmatmul.msk.bf16.gmra.mxu3 %vm1330_vm15, %v5122_v20 }
 0x81b   : > { %4167 = vmatmul.msk.bf16.gmra.mxu2 %vm1330_vm15, %v5122_v20 }
 0x85d   : > { %v2215_v51 = vpop.f32.mrf.mxu3 }
 0x865   : > { %v2180_v52 = vpop.f32.mrf.mxu2 }
 0x866   : > { %v2218_v53 = vpop.f32.mrf.mxu3 }
 0x86e   : > { %v2183_v56 = vpop.f32.mrf.mxu2 }
 0x86f   : > { %v2224_v57 = vpack.c.bf16 %v2183_v56, %v2180_v52  ;;  %v2221_v45 = vpop.f32.mrf.mxu3 }
 0x870   : > { %v2226_v4 = vpack.c.bf16 %v2221_v45, %v2218_v53 }
 0x871   : > { %4147 = vmatmul.msk.bf16.vlgmr.msra.gmra.mxu0 %vm1623_vm3, %v2224_v57 }
 0x872   : > { %2772 = vmatpush.bf16.msra.mxu0 %v4367_v9 }
 0x876   : > { %v2186_v60 = vpop.f32.mrf.mxu2  ;;  %2773 = vmatpush.bf16.msra.mxu0 %v4366_v0 }
 0x877   : > { %v2369_v58 = vpop.f32.mrf.mxu3  ;;  %v2225_v62 = vpack.c.bf16 %v2215_v51, %v2186_v60  ;;  %v4216_v51 = vld [vmem:[%s4842_s5 + $0x8] sm:$0xf] }
 0x878   : > { %v2676_v53 = vsel %vm2238_vm6, %v4216_v51, 0 }
 0x87e   : > { %v2328_v3 = vpop.f32.mrf.mxu2 }
 0x87f   : > { %v2371_v63 = vpop.f32.mrf.mxu3 }
 0x881   : > { %4148 = vmatmul.msk.bf16.gmra.mxu0 %vm1623_vm3, %v2225_v62 }
 0x886   : > { %v2330_v6 = vpop.f32.mrf.mxu2 }
 0x887   : > { %v2374_v2 = vpop.f32.mrf.mxu3 }
 0x888   : > { %4198 = vmatpush.xpose.msk.msra.mxu1 %vm1623_vm3, %v2374_v2 }
 0x88c   : > { %4199 = vmatpush.xpose.msk.msra.mxu1 %vm1623_vm3, %v2371_v63 }
 0x88e   : > { %v2333_v8 = vpop.f32.mrf.mxu2 }
 0x88f   : > { %v2376_v5 = vpop.f32.mrf.mxu3 }
 0x890   : > { %4200 = vmatpush.xpose.msk.msra.mxu1 %vm1623_vm3, %v2369_v58 }
 0x891   : > { %4149 = vmatmul.msk.bf16.gmra.mxu0 %vm1623_vm3, %v2226_v4 }
 0x893   : > { %4201 = vmatmul.msk.f32.vlgmr.msra.gmra.mxu1 %vm1623_vm3, %v2328_v3 }
 0x896   : > { %v2335_v10 = vpop.f32.mrf.mxu2 }
 0x897   : > { %v2379_v7 = vpop.f32.mrf.mxu3 }
 0x89b   : > { %4202 = vmatmul.msk.f32.gmra.mxu1 %vm1623_vm3, %v2330_v6 }
 0x89e   : > { %v2338_v11 = vpop.f32.mrf.mxu2 }
 0x89f   : > { %v2381_v1 = vpop.f32.mrf.mxu3 }
 0x8a0   : > { %4204 = vmatpush.xpose.msk.msra.mxu2 %vm1623_vm3, %v2381_v1 }
 0x8a1   : > { %4195 = vmatmul.msk.bf16.vlgmr.msrb.gmra.mxu0 %vm1330_vm15, %v5085_v59 }
 0x8a3   : > { %4203 = vmatmul.msk.f32.gmra.mxu1 %vm1623_vm3, %v2333_v8 }
 0x8a4   : > { %4205 = vmatpush.xpose.msk.msra.mxu2 %vm1623_vm3, %v2379_v7 }
 0x8a6   : > { %v2340_v44 = vpop.f32.mrf.mxu2 }
 0x8a8   : > { %4206 = vmatpush.xpose.msk.msra.mxu2 %vm1623_vm3, %v2376_v5 }
 0x8ab   : > { %4207 = vmatmul.msk.f32.vlgmr.msra.gmra.mxu2 %vm1623_vm3, %v2335_v10 }
 0x8ac   : > { %2685 = vmatpush.bf16.msrb.mxu2 %v2676_v53 }
 0x8b1   : > { %4196 = vmatmul.msk.bf16.gmra.mxu0 %vm1330_vm15, %v5108_v14 }
 0x8b3   : > { %4208 = vmatmul.msk.f32.gmra.mxu2 %vm1623_vm3, %v2338_v11 }
 0x8bb   : > { %4209 = vmatmul.msk.f32.gmra.mxu2 %vm1623_vm3, %v2340_v44 }
 0x8c1   : > { %4197 = vmatmul.msk.bf16.gmra.mxu0 %vm1330_vm15, %v5122_v20 }
 0x8d1   : > { %4247 = vmatmul.msk.bf16.vlgmr.msra.gmra.mxu0 %vm1330_vm15, %v5085_v59 }
 0x8e1   : > { %4248 = vmatmul.msk.bf16.gmra.mxu0 %vm1330_vm15, %v5108_v14 }
 0x8ee   : > { %v5295_v15 = vpop.f32.mrf.mxu0 }
 0x8f1   : > { %4249 = vmatmul.msk.bf16.gmra.mxu0 %vm1330_vm15, %v5122_v20 }
 0x8f6   : > { %v5301_v17 = vpop.f32.mrf.mxu0 }
 0x8fe   : > { %v5305_v19 = vpop.f32.mrf.mxu0 }
 0x906   : > { %v5307_v21 = vpop.f32.mrf.mxu0 }
 0x90e   : > { %v5309_v23 = vpop.f32.mrf.mxu0 }
 0x910   : > { %v2460_v43 = vpop.f32.mrf.mxu1 }
 0x911   : > { %v2513_v48 = vmul.f32 0.35355338, %v2460_v43 }
 0x913   : > { %v2519_v25 = vsel %vm1493_vm4, %v2513_v48, -1e+30 }
 0x914   : > { %v2525_v26 = vsel %vm1724_vm5, %v2519_v25, -inf }
 0x915   : > { %2526 = vmax.xlane.f32.xlu0 %v2525_v26 }
 0x916   : > { %v2263_v27 = vpop.f32.mrf.mxu0 }
 0x917   : > { %v5314_v28 = vadd.f32 %v2299_v22, %v2263_v27 }
 0x918   : > { %v2463_v31 = vpop.f32.mrf.mxu1 }
 0x919   : > { %v2514_v30 = vmul.f32 0.35355338, %v2463_v31 }
 0x91b   : > { %v2520_v33 = vsel %vm1493_vm4, %v2514_v30, -1e+30 }
 0x91c   : > { %v2528_v34 = vsel %vm1724_vm5, %v2520_v33, -inf }
 0x91d   : > { %2529 = vmax.xlane.f32.xlu1 %v2528_v34 }
 0x91e   : > { %v2410_v35 = vpop.f32.mrf.mxu0 }
 0x920   : > { %v2466_v36 = vpop.f32.mrf.mxu1 }
 0x921   : > { %v2515_v37 = vmul.f32 0.35355338, %v2466_v36 }
 0x923   : > { %v2521_v38 = vsel %vm1493_vm4, %v2515_v37, -1e+30 }
 0x924   : > { %v2531_v39 = vsel %vm1724_vm5, %v2521_v38, -inf }
 0x925   : > { %2532 = vmax.xlane.f32.xlu2 %v2531_v39 }
 0x926   : > { %v2412_v40 = vpop.f32.mrf.mxu0 }
 0x92e   : > { %v2504_v41 = vpop.f32.mrf.mxu2  ;;  %v2415_v42 = vpop.f32.mrf.mxu0 }
 0x92f   : > { %v2516_v46 = vmul.f32 0.35355338, %v2504_v41  ;;  %2613 = vmatpush.msrb.mxu3 %v2415_v42 }
 0x931   : > { %2614 = vmatpush.msrb.mxu3 %v2412_v40  ;;  %v2522_v47 = vsel %vm1493_vm4, %v2516_v46, -1e+30 }
 0x932   : > { %v2534_v49 = vsel %vm1724_vm5, %v2522_v47, -inf }
 0x933   : > { %2535 = vmax.xlane.f32.xlu0 %v2534_v49  ;;  %2615 = vmatpush.msrb.mxu3 %v2410_v35  ;;  %v4364_v49 = vld [vmem:[%s4827_s29 + $0x30] sm:$0xff] }
 0x936   : > { %v2507_v50 = vpop.f32.mrf.mxu2  ;;  %v2417_v32 = vpop.f32.mrf.mxu0 }
 0x937   : > { %v2517_v52 = vmul.f32 0.35355338, %v2507_v50 }
 0x939   : > { %v2523_v56 = vsel %vm1493_vm4, %v2517_v52, -1e+30 }
 0x93a   : > { %v2537_v57 = vsel %vm1724_vm5, %v2523_v56, -inf }
 0x93b   : > { %2538 = vmax.xlane.f32.xlu1 %v2537_v57 }
 0x93e   : > { %v2510_v45 = vpop.f32.mrf.mxu2  ;;  %v2420_v58 = vpop.f32.mrf.mxu0 }
 0x93f   : > { %v2518_v55 = vmul.f32 0.35355338, %v2510_v45 }
 0x941   : > { %v2524_v60 = vsel %vm1493_vm4, %v2518_v55, -1e+30 }
 0x942   : > { %v2540_v61 = vsel %vm1724_vm5, %v2524_v60, -inf }
 0x943   : > { %2541 = vmax.xlane.f32.xlu2 %v2540_v61 }
 0x946   : > { %v2422_v62 = vpop.f32.mrf.mxu0 }
 0x947   : > { %2648 = vmatpush.msrb.mxu1 %v2422_v62  ;;  %v4369_v62 = vld [vmem:[%s4837_s9 + $0x38] sm:$0xff] }
 0x949   : > { %2649 = vmatpush.msrb.mxu1 %v2420_v58 }
 0x94b   : > { %2650 = vmatpush.msrb.mxu1 %v2417_v32 }
 0x94d   : > { %2813 = vmatpush.bf16.msra.mxu1 %v4369_v62 }
 0x94e   : > { %v2775_v63 = vpop.f32.mrf.mxu0 }
 0x956   : > { %v2777_v2 = vpop.f32.mrf.mxu0 }
 0x95e   : > { %v2780_v3 = vpop.f32.mrf.mxu0 }
 0x95f   : > { %4265 = vmatpush.xpose.msk.msra.mxu2 %vm1623_vm3, %v2780_v3 }
 0x963   : > { %4266 = vmatpush.xpose.msk.msra.mxu2 %vm1623_vm3, %v2777_v2 }
 0x966   : > { %v2782_v50 = vpop.f32.mrf.mxu0 }
 0x967   : > { %4267 = vmatpush.xpose.msk.msra.mxu2 %vm1623_vm3, %v2775_v63  ;;  %v4368_v63 = vld [vmem:[%s4837_s9 + $0x30] sm:$0xff]  ;;  %s5858_s9 = scalar_lea.vmem %s5798_s15, %s4812_s4 }
 0x968   : > { %2814 = vmatpush.bf16.msra.mxu1 %v4368_v63 }
 0x96e   : > { %v2785_v32 = vpop.f32.mrf.mxu0 }
 0x976   : > { %v2787_v57 = vpop.f32.mrf.mxu0 }
 0x988   : > { %v2527_v4 = vpop.xlane.xlu0 %2526 }
 0x989   : > { %v2543_v5 = vsub.f32 %v2519_v25, %v2527_v4 }
 0x98b   : > { %v2549_v6 = vmul.f32 1.442695, %v2543_v5 }
 0x98d   : > { %4510 = vpow2.f32 %v2549_v6 }
 0x990   : > { %v2530_v7 = vpop.xlane.xlu1 %2529 }
 0x991   : > { %v2544_v8 = vsub.f32 %v2520_v33, %v2530_v7 }
 0x993   : > { %v4511_v1 = vpop.eup %4510  ;;  %v2551_v9 = vmul.f32 1.442695, %v2544_v8 }
 0x994   : > { %v2561_v0 = vsel %vm1724_vm5, %v4511_v1, 0.0 }
 0x995   : > { %4512 = vpow2.f32 %v2551_v9  ;;  %2562 = vadd.xlane.f32.xlu0 %v2561_v0 }
 0x998   : > { %v2533_v10 = vpop.xlane.xlu2 %2532 }
 0x999   : > { %v2545_v11 = vsub.f32 %v2521_v38, %v2533_v10 }
 0x99b   : > { %v4513_v44 = vpop.eup %4512  ;;  %v2553_v22 = vmul.f32 1.442695, %v2545_v11 }
 0x99c   : > { %v2564_v43 = vsel %vm1724_vm5, %v4513_v44, 0.0 }
 0x99d   : > { %4514 = vpow2.f32 %v2553_v22  ;;  %2565 = vadd.xlane.f32.xlu1 %v2564_v43 }
 0x9a3   : > { %v4515_v48 = vpop.eup %4514 }
 0x9a4   : > { %v2567_v25 = vsel %vm1724_vm5, %v4515_v48, 0.0 }
 0x9a5   : > { %2568 = vadd.xlane.f32.xlu2 %v2567_v25 }
 0x9a6   : > { %v2536_v26 = vpop.xlane.xlu0 %2535 }
 0x9a7   : > { %v2546_v27 = vsub.f32 %v2522_v47, %v2536_v26  ;;  %v4365_v47 = vld [vmem:[%s4827_s29 + $0x38] sm:$0xff] }
 0x9a8   : > { %2731 = vmatpush.bf16.msra.mxu3 %v4365_v47  ;;  %v2295_v47 = vadd.f32 %v5299_v16, %v5307_v21 }
 0x9a9   : > { %v2555_v31 = vmul.f32 1.442695, %v2546_v27 }
 0x9ab   : > { %4516 = vpow2.f32 %v2555_v31 }
 0x9ac   : > { %2732 = vmatpush.bf16.msra.mxu3 %v4364_v49 }
 0x9ae   : > { %v2539_v30 = vpop.xlane.xlu1 %2538 }
 0x9af   : > { %v2547_v33 = vsub.f32 %v2523_v56, %v2539_v30 }
 0x9b1   : > { %v4517_v34 = vpop.eup %4516  ;;  %v2557_v35 = vmul.f32 1.442695, %v2547_v33 }
 0x9b2   : > { %v2570_v36 = vsel %vm1724_vm5, %v4517_v34, 0.0 }
 0x9b3   : > { %4518 = vpow2.f32 %v2557_v35  ;;  %2571 = vadd.xlane.f32.xlu0 %v2570_v36 }
 0x9b6   : > { %v2542_v37 = vpop.xlane.xlu2 %2541 }
 0x9b7   : > { %v2548_v38 = vsub.f32 %v2524_v60, %v2542_v37 }
 0x9b9   : > { %v4519_v39 = vpop.eup %4518  ;;  %v2559_v40 = vmul.f32 1.442695, %v2548_v38 }
 0x9ba   : > { %v2573_v41 = vsel %vm1724_vm5, %v4519_v39, 0.0 }
 0x9bb   : > { %4520 = vpow2.f32 %v2559_v40  ;;  %2574 = vadd.xlane.f32.xlu1 %v2573_v41  ;;  %v2290_v40 = vadd.f32 %v5289_v29, %v5301_v17 }
 0x9c1   : > { %v4521_v42 = vpop.eup %4520 }
 0x9c2   : > { %v2576_v46 = vsel %vm1724_vm5, %v4521_v42, 0.0 }
 0x9c3   : > { %2577 = vadd.xlane.f32.xlu2 %v2576_v46 }
 0xa08   : > { %v2563_v51 = vpop.xlane.xlu0 %2562 }
 0xa09   : > { %4522 = vrcp.f32 %v2563_v51 }
 0xa0f   : > { %v4523_v52 = vpop.eup %4522 }
 0xa10   : > { %v2585_v53 = vmul.f32 %v4523_v52, %v4511_v1  ;;  %v2566_v56 = vpop.xlane.xlu1 %2565 }
 0xa11   : > { %4524 = vrcp.f32 %v2566_v56 }
 0xa12   : > { %4210 = vmatmul.msk.f32.vlgmr.msrb.gmra.mxu3 %vm1724_vm5, %v2585_v53 }
 0xa13   : > { %4271 = vmatpush.xpose.msk.msrb.mxu3 %vm1623_vm3, %v2787_v57 }
 0xa17   : > { %v4525_v45 = vpop.eup %4524  ;;  %4272 = vmatpush.xpose.msk.msrb.mxu3 %vm1623_vm3, %v2785_v32  ;;  %v2298_v32 = vadd.f32 %v5303_v18, %v5309_v23 }
 0xa18   : > { %v2569_v58 = vpop.xlane.xlu2 %2568  ;;  %v2586_v55 = vmul.f32 %v4525_v45, %v4513_v44 }
 0xa19   : > { %4526 = vrcp.f32 %v2569_v58 }
 0xa1a   : > { %4211 = vmatmul.msk.f32.gmra.mxu3 %vm1724_vm5, %v2586_v55 }
 0xa1b   : > { %4273 = vmatpush.xpose.msk.msrb.mxu3 %vm1623_vm3, %v2782_v50 }
 0xa1f   : > { %v4527_v60 = vpop.eup %4526 }
 0xa20   : > { %v2587_v61 = vmul.f32 %v4527_v60, %v4515_v48 }
 0xa22   : > { %4212 = vmatmul.msk.f32.gmra.mxu3 %vm1724_vm5, %v2587_v61 }
 0xa26   : > { %v2572_v2 = vpop.xlane.xlu0 %2571 }
 0xa27   : > { %4528 = vrcp.f32 %v2572_v2 }
 0xa2a   : > { %4232 = vmatmul.msk.bf16.vlgmr.msra.gmra.mxu3 %vm1330_vm15, %v5085_v59 }
 0xa2d   : > { %v4529_v3 = vpop.eup %4528 }
 0xa2e   : > { %v2588_v4 = vmul.f32 %v4529_v3, %v4517_v34  ;;  %v2575_v5 = vpop.xlane.xlu1 %2574 }
 0xa2f   : > { %4530 = vrcp.f32 %v2575_v5 }
 0xa30   : > { %4213 = vmatmul.msk.f32.vlgmr.msrb.gmra.mxu1 %vm1724_vm5, %v2588_v4 }
 0xa35   : > { %v4531_v6 = vpop.eup %4530 }
 0xa36   : > { %v2578_v7 = vpop.xlane.xlu2 %2577  ;;  %v2589_v8 = vmul.f32 %v4531_v6, %v4519_v39 }
 0xa37   : > { %4532 = vrcp.f32 %v2578_v7 }
 0xa38   : > { %4214 = vmatmul.msk.f32.gmra.mxu1 %vm1724_vm5, %v2589_v8 }
 0xa3a   : > { %4233 = vmatmul.msk.bf16.gmra.mxu3 %vm1330_vm15, %v5108_v14 }
 0xa3d   : > { %v4533_v1 = vpop.eup %4532 }
 0xa3e   : > { %v2590_v9 = vmul.f32 %v4533_v1, %v4521_v42 }
 0xa40   : > { %4215 = vmatmul.msk.f32.gmra.mxu1 %vm1724_vm5, %v2590_v9 }
 0xa48   : > { %4262 = vmatmul.msk.bf16.vlgmr.msra.gmra.mxu1 %vm1330_vm15, %v5085_v59 }
 0xa4a   : > { %4234 = vmatmul.msk.bf16.gmra.mxu3 %vm1330_vm15, %v5122_v20 }
 0xa58   : > { %4263 = vmatmul.msk.bf16.gmra.mxu1 %vm1330_vm15, %v5108_v14 }
 0xa68   : > { %4264 = vmatmul.msk.bf16.gmra.mxu1 %vm1330_vm15, %v5122_v20 }
 0xa95   : > { %v2617_v0 = vpop.f32.mrf.mxu3 }
 0xa9d   : > { %v2620_v10 = vpop.f32.mrf.mxu3 }
 0xa9e   : > { %v2661_v11 = vpack.c.bf16 %v2620_v10, %v2617_v0 }
 0xaa0   : > { %4217 = vmatmul.msk.bf16.vlgmr.msrb.gmra.mxu2 %vm1623_vm3, %v2661_v11 }
 0xaa5   : > { %v2623_v44 = vpop.f32.mrf.mxu3 }
 0xaad   : > { %v2652_v22 = vpop.f32.mrf.mxu1  ;;  %v2734_v43 = vpop.f32.mrf.mxu3 }
 0xaae   : > { %v2662_v48 = vpack.c.bf16 %v2652_v22, %v2623_v44 }
 0xab0   : > { %4218 = vmatmul.msk.bf16.gmra.mxu2 %vm1623_vm3, %v2662_v48 }
 0xab5   : > { %v2655_v59 = vpop.f32.mrf.mxu1  ;;  %v2736_v25 = vpop.f32.mrf.mxu3 }
 0xabd   : > { %v2658_v26 = vpop.f32.mrf.mxu1  ;;  %v2739_v27 = vpop.f32.mrf.mxu3 }
 0xabe   : > { %v2663_v31 = vpack.c.bf16 %v2658_v26, %v2655_v59 }
 0xac0   : > { %4219 = vmatmul.msk.bf16.gmra.mxu2 %vm1623_vm3, %v2663_v31 }
 0xac5   : > { %v2741_v14 = vpop.f32.mrf.mxu3  ;;  %v2816_v20 = vpop.f32.mrf.mxu1 }
 0xac6   : > { %4274 = vmatmul.msk.f32.vlgmr.msrb.gmra.mxu3 %vm1623_vm3, %v2741_v14 }
 0xacd   : > { %v2744_v30 = vpop.f32.mrf.mxu3  ;;  %v2818_v33 = vpop.f32.mrf.mxu1 }
 0xace   : > { %4275 = vmatmul.msk.f32.gmra.mxu3 %vm1623_vm3, %v2744_v30 }
 0xad0   : > { %4268 = vmatmul.msk.f32.vlgmr.msra.gmra.mxu2 %vm1623_vm3, %v2734_v43 }
 0xad5   : > { %v2746_v34 = vpop.f32.mrf.mxu3  ;;  %v2821_v35 = vpop.f32.mrf.mxu1 }
 0xad6   : > { %4276 = vmatmul.msk.f32.gmra.mxu3 %vm1623_vm3, %v2746_v34  ;;  %3019 = vmatpush.msrb.mxu0 %v2821_v35 }
 0xad8   : > { %4269 = vmatmul.msk.f32.gmra.mxu2 %vm1623_vm3, %v2736_v25  ;;  %3020 = vmatpush.msrb.mxu0 %v2818_v33 }
 0xada   : > { %3021 = vmatpush.msrb.mxu0 %v2816_v20 }
 0xadd   : > { %v2823_v36 = vpop.f32.mrf.mxu1 }
 0xae0   : > { %4270 = vmatmul.msk.f32.gmra.mxu2 %vm1623_vm3, %v2739_v27 }
 0xae5   : > { %v2826_v37 = vpop.f32.mrf.mxu1 }
 0xaed   : > { %v2828_v38 = vpop.f32.mrf.mxu1 }
 0xaee   : > { %3054 = vmatpush.msrb.mxu1 %v2828_v38 }
 0xaf0   : > { %3055 = vmatpush.msrb.mxu1 %v2826_v37 }
 0xaf2   : > { %3056 = vmatpush.msrb.mxu1 %v2823_v36 }
 0xb23   : > { %v5376_v39 = vpop.f32.mrf.mxu2 }
 0xb2b   : > { %v2689_v41 = vpop.f32.mrf.mxu2 }
 0xb2c   : > { %v5380_v42 = vadd.f32 %v2689_v41, %v2290_v40 }
 0xb33   : > { %v5382_v46 = vpop.f32.mrf.mxu2 }
 0xb3b   : > { %v2694_v49 = vpop.f32.mrf.mxu2 }
 0xb3c   : > { %v5386_v50 = vadd.f32 %v2694_v49, %v2295_v47 }
 0xb43   : > { %v2697_v51 = vpop.f32.mrf.mxu2 }
 0xb44   : > { %v5390_v52 = vadd.f32 %v2697_v51, %v2298_v32 }
 0xb49   : > { %v2910_v17 = vpop.f32.mrf.mxu3 }
 0xb4a   : > { %v2922_v21 = vmul.f32 0.35355338, %v2910_v17 }
 0xb4b   : > { %v2699_v53 = vpop.f32.mrf.mxu2 }
 0xb4c   : > { %v5393_v29 = vadd.f32 %v2699_v53, %v5314_v28  ;;  %v2928_v23 = vsel %vm1493_vm4, %v2922_v21, -1e+30 }
 0xb4d   : > { %v2940_v60 = vsel %vm1724_vm5, %v2928_v23, -inf }
 0xb51   : > { %v2913_v58 = vpop.f32.mrf.mxu3 }
 0xb52   : > { %v2923_v62 = vmul.f32 0.35355338, %v2913_v58 }
 0xb53   : > { %v2866_v56 = vpop.f32.mrf.mxu2 }
 0xb54   : > { %v2919_v57 = vmul.f32 0.35355338, %v2866_v56  ;;  %v2929_v3 = vsel %vm1493_vm4, %v2923_v62, -1e+30 }
 0xb55   : > { %v2943_v6 = vsel %vm1724_vm5, %v2929_v3, -inf }
 0xb56   : > { %v2925_v45 = vsel %vm1493_vm4, %v2919_v57, -1e+30 }
 0xb57   : > { %v2931_v16 = vsel %vm1724_vm5, %v2925_v45, -inf }
 0xb58   : > { %2932 = vmax.xlane.f32.xlu0 %v2931_v16 }
 0xb59   : > { %v2916_v4 = vpop.f32.mrf.mxu3 }
 0xb5a   : > { %v2924_v8 = vmul.f32 0.35355338, %v2916_v4 }
 0xb5b   : > { %v2869_v55 = vpop.f32.mrf.mxu2 }
 0xb5c   : > { %v2920_v18 = vmul.f32 0.35355338, %v2869_v55  ;;  %v2930_v1 = vsel %vm1493_vm4, %v2924_v8, -1e+30 }
 0xb5d   : > { %v2946_v9 = vsel %vm1724_vm5, %v2930_v1, -inf }
 0xb5e   : > { %v2926_v28 = vsel %vm1493_vm4, %v2920_v18, -1e+30 }
 0xb5f   : > { %v2934_v61 = vsel %vm1724_vm5, %v2926_v28, -inf }
 0xb60   : > { %2941 = vmax.xlane.f32.xlu0 %v2940_v60  ;;  %2935 = vmax.xlane.f32.xlu1 %v2934_v61 }
 0xb63   : > { %v2872_v63 = vpop.f32.mrf.mxu2 }
 0xb64   : > { %v2921_v2 = vmul.f32 0.35355338, %v2872_v63 }
 0xb66   : > { %v2927_v5 = vsel %vm1493_vm4, %v2921_v2, -1e+30 }
 0xb67   : > { %v2937_v7 = vsel %vm1724_vm5, %v2927_v5, -inf }
 0xb68   : > { %2944 = vmax.xlane.f32.xlu1 %v2943_v6  ;;  %2938 = vmax.xlane.f32.xlu2 %v2937_v7  ;;  %v4283_v6 = vld [vmem:[%s4842_s5 + $0xc] sm:$0xf]  ;;  %s5861_s5 = sld [smem:[#allocation26_spill]] (!%p4323_p6) }
 0xb69   : > { %v3082_v7 = vsel %vm2238_vm6, %v4283_v6, 0 }
 0xb6a   : > { %3091 = vmatpush.bf16.msrb.mxu2 %v3082_v7 }
 0xb70   : > { %2947 = vmax.xlane.f32.xlu2 %v2946_v9 }
 0xbcb   : > { %v2933_v0 = vpop.xlane.xlu0 %2932 }
 0xbcc   : > { %v2949_v10 = vsub.f32 %v2925_v45, %v2933_v0 }
 0xbce   : > { %v2955_v11 = vmul.f32 1.442695, %v2949_v10 }
 0xbd0   : > { %4534 = vpow2.f32 %v2955_v11 }
 0xbd3   : > { %v2942_v44 = vpop.xlane.xlu0 %2941  ;;  %v2936_v22 = vpop.xlane.xlu1 %2935 }
 0xbd4   : > { %v2952_v43 = vsub.f32 %v2928_v23, %v2942_v44  ;;  %v2950_v48 = vsub.f32 %v2926_v28, %v2936_v22 }
 0xbd6   : > { %v4535_v59 = vpop.eup %4534  ;;  %v2961_v25 = vmul.f32 1.442695, %v2952_v43  ;;  %v2957_v26 = vmul.f32 1.442695, %v2950_v48  ;;  %v2288_v48 = vadd.f32 %v5287_v12, %v5295_v15  ;;  %v4583_v15 = vld [vmem:[#allocation2 + $0x8] sm:$0xff] }
 0xbd7   : > { %v2967_v27 = vsel %vm1724_vm5, %v4535_v59, 0.0 }
 0xbd8   : > { %4536 = vpow2.f32 %v2961_v25  ;;  %2968 = vadd.xlane.f32.xlu0 %v2967_v27  ;;  %v4443_v27 = vld [vmem:[%s5858_s9] ss:$0 sm:$0xff] }
 0xbd9   : > { %4538 = vpow2.f32 %v2957_v26 }
 0xbdb   : > { %v2945_v54 = vpop.xlane.xlu1 %2944  ;;  %v2939_v31 = vpop.xlane.xlu2 %2938 }
 0xbdc   : > { %v2953_v14 = vsub.f32 %v2929_v3, %v2945_v54  ;;  %v2951_v20 = vsub.f32 %v2927_v5, %v2939_v31  ;;  %v4582_v54 = vld [vmem:[#allocation2] sm:$0xff] }
 0xbde   : > { %v4537_v30 = vpop.eup %4536  ;;  %v2963_v33 = vmul.f32 1.442695, %v2953_v14  ;;  %v2959_v34 = vmul.f32 1.442695, %v2951_v20 }
 0xbdf   : > { %v4539_v35 = vpop.eup %4538  ;;  %v2976_v36 = vsel %vm1724_vm5, %v4537_v30, 0.0 }
 0xbe0   : > { %4540 = vpow2.f32 %v2963_v33  ;;  %2977 = vadd.xlane.f32.xlu0 %v2976_v36  ;;  %v2970_v37 = vsel %vm1724_vm5, %v4539_v35, 0.0  ;;  %v2293_v33 = vadd.f32 %v5293_v13, %v5305_v19  ;;  %v4585_v19 = vld [vmem:[#allocation2 + $0x18] sm:$0xff] }
 0xbe1   : > { %4542 = vpow2.f32 %v2959_v34  ;;  %2971 = vadd.xlane.f32.xlu1 %v2970_v37 }
 0xbe3   : > { %v2948_v38 = vpop.xlane.xlu2 %2947 }
 0xbe4   : > { %v2954_v40 = vsub.f32 %v2930_v1, %v2948_v38 }
 0xbe6   : > { %v4541_v41 = vpop.eup %4540  ;;  %v2965_v47 = vmul.f32 1.442695, %v2954_v40  ;;  %v4584_v40 = vld [vmem:[#allocation2 + $0x10] sm:$0xff] }
 0xbe7   : > { %v4543_v49 = vpop.eup %4542  ;;  %v2979_v32 = vsel %vm1724_vm5, %v4541_v41, 0.0 }
 0xbe8   : > { %4544 = vpow2.f32 %v2965_v47  ;;  %v2973_v51 = vsel %vm1724_vm5, %v4543_v49, 0.0 }
 0xbe9   : > { %2980 = vadd.xlane.f32.xlu1 %v2979_v32  ;;  %2974 = vadd.xlane.f32.xlu2 %v2973_v51 }
 0xbee   : > { %v4545_v53 = vpop.eup %4544 }
 0xbef   : > { %v2982_v17 = vsel %vm1724_vm5, %v4545_v53, 0.0 }
 0xbf1   : > { %2983 = vadd.xlane.f32.xlu2 %v2982_v17 }
 0xc4b   : > { %v2969_v56 = vpop.xlane.xlu0 %2968 }
 0xc4c   : > { %4546 = vrcp.f32 %v2969_v56  ;;  %v4586_v56 = vld [vmem:[#allocation2 + $0x20] sm:$0xff] }
 0xc52   : > { %v4547_v57 = vpop.eup %4546 }
 0xc53   : > { %v2991_v45 = vmul.f32 %v4547_v57, %v4535_v59  ;;  %v2978_v16 = vpop.xlane.xlu0 %2977  ;;  %v2702_v59 = vadd.f32 %v5376_v39, %v2288_v48 }
 0xc54   : > { %4548 = vrcp.f32 %v2978_v16  ;;  %v2972_v21 = vpop.xlane.xlu1 %2971 }
 0xc55   : > { %4550 = vrcp.f32 %v2972_v21  ;;  %4277 = vmatmul.msk.f32.vlgmr.msrb.gmra.mxu0 %vm1724_vm5, %v2991_v45 }
 0xc5a   : > { %v4549_v58 = vpop.eup %4548 }
 0xc5b   : > { %v4551_v55 = vpop.eup %4550  ;;  %v2994_v18 = vmul.f32 %v4549_v58, %v4537_v30  ;;  %v4587_v58 = vld [vmem:[#allocation2 + $0x28] sm:$0xff] }
 0xc5c   : > { %v2981_v23 = vpop.xlane.xlu1 %2980  ;;  %v2975_v28 = vpop.xlane.xlu2 %2974  ;;  %v2992_v60 = vmul.f32 %v4551_v55, %v4539_v35  ;;  %v2704_v35 = vadd.f32 %v5382_v46, %v2293_v33  ;;  %v4370_v33 = vld [vmem:[%s4859_s1] sm:$0xff] }
 0xc5d   : > { %4552 = vrcp.f32 %v2981_v23  ;;  %4280 = vmatmul.msk.f32.vlgmr.msrb.gmra.mxu1 %vm1724_vm5, %v2994_v18 }
 0xc5e   : > { %4554 = vrcp.f32 %v2975_v28  ;;  %4278 = vmatmul.msk.f32.gmra.mxu0 %vm1724_vm5, %v2992_v60 }
 0xc63   : > { %v4553_v61 = vpop.eup %4552 }
 0xc64   : > { %v4555_v62 = vpop.eup %4554  ;;  %v2984_v63 = vpop.xlane.xlu2 %2983  ;;  %v2995_v2 = vmul.f32 %v4553_v61, %v4541_v41 }
 0xc65   : > { %4556 = vrcp.f32 %v2984_v63  ;;  %v2993_v3 = vmul.f32 %v4555_v62, %v4543_v49 }
 0xc66   : > { %4281 = vmatmul.msk.f32.gmra.mxu1 %vm1724_vm5, %v2995_v2 }
 0xc67   : > { %4279 = vmatmul.msk.f32.gmra.mxu0 %vm1724_vm5, %v2993_v3 }
 0xc6b   : > { %v4557_v4 = vpop.eup %4556 }
 0xc6c   : > { %v2996_v5 = vmul.f32 %v4557_v4, %v4545_v53 }
 0xc6e   : > { %4282 = vmatmul.msk.f32.gmra.mxu1 %vm1724_vm5, %v2996_v5 }
 0xcd2   : > { %v3023_v8 = vpop.f32.mrf.mxu0 }
 0xcda   : > { %v3058_v0 = vpop.f32.mrf.mxu1 }
 0xcdb   : > { %v3026_v1 = vpop.f32.mrf.mxu0 }
 0xcdc   : > { %v3067_v9 = vpack.c.bf16 %v3026_v1, %v3023_v8 }
 0xcde   : > { %4284 = vmatmul.msk.bf16.vlgmr.msrb.gmra.mxu2 %vm1623_vm3, %v3067_v9 }
 0xce3   : > { %v3061_v44 = vpop.f32.mrf.mxu1 }
 0xce4   : > { %v3029_v10 = vpop.f32.mrf.mxu0 }
 0xce5   : > { %v3068_v11 = vpack.c.bf16 %v3058_v0, %v3029_v10 }
 0xceb   : > { %v3064_v22 = vpop.f32.mrf.mxu1 }
 0xcec   : > { %v3069_v43 = vpack.c.bf16 %v3064_v22, %v3061_v44 }
 0xcee   : > { %4285 = vmatmul.msk.bf16.gmra.mxu2 %vm1623_vm3, %v3068_v11 }
 0xcfe   : > { %4286 = vmatmul.msk.bf16.gmra.mxu2 %vm1623_vm3, %v3069_v43 }
 0xd61   : > { %v3093_v25 = vpop.f32.mrf.mxu2 }
 0xd62   : > { %v3108_v26 = vadd.f32 %v3093_v25, %v2702_v59 }
 0xd64   : > { %v3114_v31 = vadd.f32 %v4582_v54, %v3108_v26 }
 0xd66   : > { %v5438_v14 = vadd.f32 %v4443_v27, %v3114_v31 }
 0xd68   : > { %v3132_v20 = vsel %vm1330_vm15, %v5438_v14, 0.0 }
 0xd69   : > { %3133 = vadd.xlane.f32.xlu0 %v3132_v20  ;;  %v3095_v30 = vpop.f32.mrf.mxu2 }
 0xd6a   : > { %v3109_v12 = vadd.f32 %v3095_v30, %v5380_v42  ;;  %v4371_v30 = vld [vmem:[%s4859_s1 + $0x8] sm:$0xff] }
 0xd6b   : > { %3320 = vmatpush.bf16.msra.mxu3 %v4371_v30 }
 0xd6c   : > { %v3115_v39 = vadd.f32 %v4583_v15, %v3109_v12 }
 0xd6e   : > { %v5445_v34 = vadd.f32 %v4443_v27, %v3115_v39 }
 0xd6f   : > { %3321 = vmatpush.bf16.msra.mxu3 %v4370_v33 }
 0xd70   : > { %v3135_v36 = vsel %vm1330_vm15, %v5445_v34, 0.0 }
 0xd71   : > { %3136 = vadd.xlane.f32.xlu1 %v3135_v36  ;;  %v3098_v37 = vpop.f32.mrf.mxu2 }
 0xd72   : > { %v3110_v38 = vadd.f32 %v3098_v37, %v2704_v35 }
 0xd74   : > { %v3116_v41 = vadd.f32 %v4584_v40, %v3110_v38 }
 0xd76   : > { %v5450_v47 = vadd.f32 %v4443_v27, %v3116_v41 }
 0xd78   : > { %v3138_v42 = vsel %vm1330_vm15, %v5450_v47, 0.0 }
 0xd79   : > { %3139 = vadd.xlane.f32.xlu2 %v3138_v42  ;;  %v3100_v49 = vpop.f32.mrf.mxu2 }
 0xd7a   : > { %v3111_v13 = vadd.f32 %v3100_v49, %v5386_v50 }
 0xd7c   : > { %v3117_v32 = vadd.f32 %v4585_v19, %v3111_v13 }
 0xd7e   : > { %v5455_v46 = vadd.f32 %v4443_v27, %v3117_v32 }
 0xd80   : > { %v3141_v51 = vsel %vm1330_vm15, %v5455_v46, 0.0 }
 0xd81   : > { %3142 = vadd.xlane.f32.xlu0 %v3141_v51  ;;  %v3103_v53 = vpop.f32.mrf.mxu2 }
 0xd82   : > { %v3112_v17 = vadd.f32 %v3103_v53, %v5390_v52 }
 0xd84   : > { %v3118_v57 = vadd.f32 %v4586_v56, %v3112_v17 }
 0xd86   : > { %v5460_v45 = vadd.f32 %v4443_v27, %v3118_v57 }
 0xd88   : > { %v3144_v16 = vsel %vm1330_vm15, %v5460_v45, 0.0 }
 0xd89   : > { %v3105_v21 = vpop.f32.mrf.mxu2  ;;  %3145 = vadd.xlane.f32.xlu1 %v3144_v16 }
 0xd8a   : > { %v3113_v50 = vadd.f32 %v3105_v21, %v5393_v29 }
 0xd8c   : > { %v3119_v55 = vadd.f32 %v4587_v58, %v3113_v50 }
 0xd8e   : > { %v5465_v18 = vadd.f32 %v4443_v27, %v3119_v55 }
 0xd90   : > { %v3147_v23 = vsel %vm1330_vm15, %v5465_v18, 0.0 }
 0xd91   : > { %3148 = vadd.xlane.f32.xlu2 %v3147_v23  ;;  %v5522_v23 = vld [vmem:[%s995_s26] ss:$0 sm:$0xff] }
 0xddc   : > { %v3134_v52 = vpop.xlane.xlu0 %3133 }
 0xddd   : > { %v3150_v28 = vmul.f32 %v3134_v52, %v4992_v24 }
 0xddf   : > { %v5471_v60 = vsub.f32 %v5438_v14, %v3150_v28 }
 0xde1   : > { %v3162_v61 = vmul.f32 %v5471_v60, %v5471_v60 }
 0xde3   : > { %v3168_v62 = vsel %vm1330_vm15, %v3162_v61, 0.0 }
 0xde4   : > { %v3137_v29 = vpop.xlane.xlu1 %3136  ;;  %3169 = vadd.xlane.f32.xlu0 %v3168_v62 }
 0xde5   : > { %v3151_v63 = vmul.f32 %v3137_v29, %v4992_v24 }
 0xde7   : > { %v5478_v2 = vsub.f32 %v5445_v34, %v3151_v63 }
 0xde9   : > { %v3163_v3 = vmul.f32 %v5478_v2, %v5478_v2 }
 0xdeb   : > { %v3171_v4 = vsel %vm1330_vm15, %v3163_v3, 0.0  ;;  %v5530_v3 = vld [vmem:[%s998_s22] ss:$0 sm:$0xff] }
 0xdec   : > { %v3140_v5 = vpop.xlane.xlu2 %3139  ;;  %3172 = vadd.xlane.f32.xlu1 %v3171_v4 }
 0xded   : > { %v3152_v6 = vmul.f32 %v3140_v5, %v4992_v24 }
 0xdef   : > { %v5485_v7 = vsub.f32 %v5450_v47, %v3152_v6 }
 0xdf1   : > { %v3164_v8 = vmul.f32 %v5485_v7, %v5485_v7 }
 0xdf3   : > { %v3174_v1 = vsel %vm1330_vm15, %v3164_v8, 0.0 }
 0xdf4   : > { %v3143_v9 = vpop.xlane.xlu0 %3142  ;;  %3175 = vadd.xlane.f32.xlu2 %v3174_v1 }
 0xdf5   : > { %v3153_v0 = vmul.f32 %v3143_v9, %v4992_v24 }
 0xdf7   : > { %v5492_v10 = vsub.f32 %v5455_v46, %v3153_v0 }
 0xdf9   : > { %v3165_v11 = vmul.f32 %v5492_v10, %v5492_v10 }
 0xdfb   : > { %v3177_v44 = vsel %vm1330_vm15, %v3165_v11, 0.0 }
 0xdfc   : > { %3178 = vadd.xlane.f32.xlu0 %v3177_v44  ;;  %v3146_v22 = vpop.xlane.xlu1 %3145 }
 0xdfd   : > { %v3154_v43 = vmul.f32 %v3146_v22, %v4992_v24 }
 0xdff   : > { %v5499_v48 = vsub.f32 %v5460_v45, %v3154_v43 }
 0xe01   : > { %v3166_v59 = vmul.f32 %v5499_v48, %v5499_v48 }
 0xe03   : > { %v3180_v25 = vsel %vm1330_vm15, %v3166_v59, 0.0 }
 0xe04   : > { %v3149_v26 = vpop.xlane.xlu2 %3148  ;;  %3181 = vadd.xlane.f32.xlu1 %v3180_v25 }
 0xe05   : > { %v3155_v27 = vmul.f32 %v3149_v26, %v4992_v24 }
 0xe07   : > { %v5506_v54 = vsub.f32 %v5465_v18, %v3155_v27 }
 0xe09   : > { %v3167_v31 = vmul.f32 %v5506_v54, %v5506_v54 }
 0xe0b   : > { %v3183_v20 = vsel %vm1330_vm15, %v3167_v31, 0.0 }
 0xe0c   : > { %3184 = vadd.xlane.f32.xlu2 %v3183_v20 }
 0xe57   : > { %v3170_v12 = vpop.xlane.xlu0 %3169 }
 0xe58   : > { %v3186_v15 = vmul.f32 %v3170_v12, %v4992_v24 }
 0xe5a   : > { %v3192_v39 = vadd.f32 1e-05, %v3186_v15 }
 0xe5c   : > { %4558 = vrsqrt.f32 %v3192_v39  ;;  %vm3204_vm8 = vweird.f32 %v3192_v39 }
 0xe5f   : > { %v3173_v35 = vpop.xlane.xlu1 %3172 }
 0xe60   : > { %v3187_v36 = vmul.f32 %v3173_v35, %v4992_v24 }
 0xe62   : > { %v4559_v37 = vpop.eup %4558  ;;  %v3193_v38 = vadd.f32 1e-05, %v3187_v36 }
 0xe63   : > { %v3199_v40 = vmul.f32 %v4559_v37, %v3192_v39  ;;  %vm3205_vm7 = vweird.f32 %v4559_v37 }
 0xe64   : > { %4560 = vrsqrt.f32 %v3193_v38  ;;  %vm3206_vm9 = vmor %vm3204_vm8, %vm3205_vm7  ;;  %vm3214_vm11 = vweird.f32 %v3193_v38 }
 0xe65   : > { %v3200_v41 = vmul.f32 %v4559_v37, %v3199_v40 }
 0xe67   : > { %v3201_v42 = vmul.f32 0.5, %v3200_v41  ;;  %v3176_v49 = vpop.xlane.xlu2 %3175 }
 0xe68   : > { %v3188_v13 = vmul.f32 %v3176_v49, %v4992_v24 }
 0xe69   : > { %v3202_v19 = vsub.f32 1.5, %v3201_v42 }
 0xe6a   : > { %v4561_v32 = vpop.eup %4560  ;;  %v3194_v51 = vadd.f32 1e-05, %v3188_v13 }
 0xe6b   : > { %v3203_v53 = vmul.f32 %v4559_v37, %v3202_v19  ;;  %v3209_v17 = vmul.f32 %v4561_v32, %v3193_v38  ;;  %vm3215_vm10 = vweird.f32 %v4561_v32 }
 0xe6c   : > { %4562 = vrsqrt.f32 %v3194_v51  ;;  %vm3216_vm12 = vmor %vm3214_vm11, %vm3215_vm10  ;;  %vm3224_vm14 = vweird.f32 %v3194_v51 }
 0xe6d   : > { %v3210_v56 = vmul.f32 %v4561_v32, %v3209_v17  ;;  %v3207_v57 = vsel %vm3206_vm9, %v4559_v37, %v3203_v53 }
 0xe6e   : > { %v3258_v52 = vmul.f32 %v3207_v57, %v5471_v60 }
 0xe6f   : > { %v3211_v16 = vmul.f32 0.5, %v3210_v56  ;;  %v3179_v21 = vpop.xlane.xlu0 %3178 }
 0xe70   : > { %v3189_v50 = vmul.f32 %v3179_v21, %v4992_v24  ;;  %v3267_v4 = vmul.f32 %v5522_v23, %v3258_v52 }
 0xe71   : > { %v3212_v58 = vsub.f32 1.5, %v3211_v16 }
 0xe72   : > { %v4563_v55 = vpop.eup %4562  ;;  %v3195_v28 = vadd.f32 1e-05, %v3189_v50  ;;  %v3276_v11 = vadd.f32 %v5530_v3, %v3267_v4 }
 0xe73   : > { %v3213_v61 = vmul.f32 %v4561_v32, %v3212_v58  ;;  %v3219_v62 = vmul.f32 %v4563_v55, %v3194_v51  ;;  %vm3225_vm13 = vweird.f32 %v4563_v55 }
 0xe74   : > { %4564 = vrsqrt.f32 %v3195_v28  ;;  %vm3226_vm0 = vmor %vm3224_vm14, %vm3225_vm13  ;;  %vm3234_vm2 = vweird.f32 %v3195_v28 }
 0xe75   : > { %v3217_v29 = vsel %vm3216_vm12, %v4561_v32, %v3213_v61  ;;  %v3220_v63 = vmul.f32 %v4563_v55, %v3219_v62 }
 0xe76   : > { %v3259_v5 = vmul.f32 %v3217_v29, %v5478_v2 }
 0xe77   : > { %v3221_v6 = vmul.f32 0.5, %v3220_v63  ;;  %v3182_v60 = vpop.xlane.xlu1 %3181 }
 0xe78   : > { %v3268_v8 = vmul.f32 %v5522_v23, %v3259_v5  ;;  %v3190_v1 = vmul.f32 %v3182_v60, %v4992_v24 }
 0xe79   : > { %v3222_v9 = vsub.f32 1.5, %v3221_v6 }
 0xe7a   : > { %v4565_v0 = vpop.eup %4564  ;;  %v3277_v44 = vadd.f32 %v5530_v3, %v3268_v8  ;;  %v3196_v22 = vadd.f32 1e-05, %v3190_v1 }
 0xe7b   : > { %v3223_v43 = vmul.f32 %v4563_v55, %v3222_v9  ;;  %v3229_v59 = vmul.f32 %v4565_v0, %v3195_v28  ;;  %vm3235_vm1 = vweird.f32 %v4565_v0 }
 0xe7c   : > { %v3282_v25 = vpack.c.bf16 %v3277_v44, %v3276_v11  ;;  %4566 = vrsqrt.f32 %v3196_v22  ;;  %vm3236_vm3 = vmor %vm3234_vm2, %vm3235_vm1  ;;  %vm3244_vm5 = vweird.f32 %v3196_v22 }
 0xe7d   : > { %v3230_v2 = vmul.f32 %v4565_v0, %v3229_v59  ;;  %v3227_v26 = vsel %vm3226_vm0, %v4563_v55, %v3223_v43 }
 0xe7e   : > { %4295 = vmatmul.msk.bf16.vlgmr.msra.gmra.mxu3 %vm1330_vm15, %v3282_v25  ;;  %v3260_v15 = vmul.f32 %v3227_v26, %v5485_v7 }
 0xe7f   : > { %v3231_v27 = vmul.f32 0.5, %v3230_v2  ;;  %v3185_v31 = vpop.xlane.xlu2 %3184 }
 0xe80   : > { %v3191_v20 = vmul.f32 %v3185_v31, %v4992_v24  ;;  %v3269_v40 = vmul.f32 %v5522_v23, %v3260_v15 }
 0xe81   : > { %v3232_v30 = vsub.f32 1.5, %v3231_v27 }
 0xe82   : > { %v4567_v12 = vpop.eup %4566  ;;  %v3197_v39 = vadd.f32 1e-05, %v3191_v20  ;;  %v3278_v19 = vadd.f32 %v5530_v3, %v3269_v40 }
 0xe83   : > { %v3233_v33 = vmul.f32 %v4565_v0, %v3232_v30  ;;  %v3239_v35 = vmul.f32 %v4567_v12, %v3196_v22  ;;  %vm3245_vm4 = vweird.f32 %v4567_v12 }
 0xe84   : > { %4568 = vrsqrt.f32 %v3197_v39  ;;  %vm3246_vm6 = vmor %vm3244_vm5, %vm3245_vm4  ;;  %vm3254_vm8 = vweird.f32 %v3197_v39  ;;  %vm3637_vm5 = vcmask 523264  }
 0xe85   : > { %v3237_v36 = vsel %vm3236_vm3, %v4565_v0, %v3233_v33  ;;  %v3240_v37 = vmul.f32 %v4567_v12, %v3239_v35 }
 0xe86   : > { %v3261_v38 = vmul.f32 %v3237_v36, %v5492_v10 }
 0xe87   : > { %v3241_v41 = vmul.f32 0.5, %v3240_v37 }
 0xe88   : > { %v3270_v42 = vmul.f32 %v5522_v23, %v3261_v38 }
 0xe89   : > { %v3242_v49 = vsub.f32 1.5, %v3241_v41 }
 0xe8a   : > { %v4569_v13 = vpop.eup %4568  ;;  %v3279_v7 = vadd.f32 %v5530_v3, %v3270_v42 }
 0xe8b   : > { %v3243_v32 = vmul.f32 %v4567_v12, %v3242_v49  ;;  %v3249_v51 = vmul.f32 %v4569_v13, %v3197_v39  ;;  %vm3255_vm7 = vweird.f32 %v4569_v13 }
 0xe8c   : > { %v3283_v53 = vpack.c.bf16 %v3279_v7, %v3278_v19  ;;  %vm3256_vm9 = vmor %vm3254_vm8, %vm3255_vm7 }
 0xe8d   : > { %v3250_v17 = vmul.f32 %v4569_v13, %v3249_v51  ;;  %v3247_v10 = vsel %vm3246_vm6, %v4567_v12, %v3243_v32 }
 0xe8e   : > { %4296 = vmatmul.msk.bf16.gmra.mxu3 %vm1330_vm15, %v3283_v53  ;;  %v3262_v16 = vmul.f32 %v3247_v10, %v5499_v48  ;;  %v5559_v48 = vld [vmem:[%s1006_s13] ss:$0 sm:$0xff] }
 0xe8f   : > { %v3251_v56 = vmul.f32 0.5, %v3250_v17 }
 0xe90   : > { %v3271_v55 = vmul.f32 %v5522_v23, %v3262_v16 }
 0xe91   : > { %v3252_v57 = vsub.f32 1.5, %v3251_v56 }
 0xe92   : > { %v3280_v28 = vadd.f32 %v5530_v3, %v3271_v55 }
 0xe93   : > { %v3253_v21 = vmul.f32 %v4569_v13, %v3252_v57 }
 0xe95   : > { %v3257_v50 = vsel %vm3256_vm9, %v4569_v13, %v3253_v21 }
 0xe96   : > { %v3263_v58 = vmul.f32 %v3257_v50, %v5506_v54  ;;  %v4375_v50 = vld [vmem:[%s4869_s3 + $0x18] sm:$0xff] }
 0xe97   : > { %3651 = vmatpush.bf16.msra.mxu0 %v4375_v50 }
 0xe98   : > { %v3272_v52 = vmul.f32 %v5522_v23, %v3263_v58 }
 0xe9a   : > { %v3281_v61 = vadd.f32 %v5530_v3, %v3272_v52 }
 0xe9c   : > { %v3284_v62 = vpack.c.bf16 %v3281_v61, %v3280_v28 }
 0xe9e   : > { %4297 = vmatmul.msk.bf16.gmra.mxu3 %vm1330_vm15, %v3284_v62 }
 0xf01   : > { %v3323_v29 = vpop.f32.mrf.mxu3 }
 0xf02   : > { %v5562_v54 = vadd.f32 %v5559_v48, %v3323_v29 }
 0xf04   : > { %v5565_v63 = vmul.f32 0.70710677, %v5562_v54 }
 0xf06   : > { %v3350_v23 = vmul.f32 %v5565_v63, %v5565_v63 }
 0xf08   : > { %v5569_v3 = vmin.f32 %v3350_v23, 16.0  ;;  %v4374_v23 = vld [vmem:[%s4869_s3 + $0x10] sm:$0xff] }
 0xf09   : > { %v3325_v4 = vpop.f32.mrf.mxu3  ;;  %3652 = vmatpush.bf16.msra.mxu0 %v4374_v23 }
 0xf0a   : > { %v3352_v5 = vmul.f32 2.1237322e-06, %v5569_v3  ;;  %v3363_v6 = vmul.f32 3.8918573e-05, %v5569_v3  ;;  %v5574_v60 = vadd.f32 %v5559_v48, %v3325_v4 }
 0xf0c   : > { %v3353_v8 = vadd.f32 0.00028619796, %v3352_v5  ;;  %v3364_v1 = vadd.f32 0.001143296, %v3363_v6  ;;  %v5577_v9 = vmul.f32 0.70710677, %v5574_v60 }
 0xf0e   : > { %v3354_v0 = vmul.f32 %v3353_v8, %v5569_v3  ;;  %v3365_v11 = vmul.f32 %v3364_v1, %v5569_v3  ;;  %v3390_v44 = vmul.f32 %v5577_v9, %v5577_v9 }
 0xf10   : > { %v3355_v22 = vadd.f32 0.0036580483, %v3354_v0  ;;  %v3366_v43 = vadd.f32 0.014752088, %v3365_v11  ;;  %v5583_v59 = vmin.f32 %v3390_v44, 16.0 }
 0xf11   : > { %v3328_v25 = vpop.f32.mrf.mxu3 }
 0xf12   : > { %v3367_v2 = vmul.f32 %v3366_v43, %v5569_v3  ;;  %v5587_v26 = vadd.f32 %v5559_v48, %v3328_v25  ;;  %v3392_v27 = vmul.f32 2.1237322e-06, %v5583_v59  ;;  %v3403_v31 = vmul.f32 3.8918573e-05, %v5583_v59 }
 0xf13   : > { %v3356_v20 = vmul.f32 %v3355_v22, %v5569_v3 }
 0xf14   : > { %v3368_v30 = vadd.f32 0.112945676, %v3367_v2  ;;  %v3393_v12 = vadd.f32 0.00028619796, %v3392_v27  ;;  %v3404_v15 = vadd.f32 0.001143296, %v3403_v31 }
 0xf15   : > { %v5593_v39 = vmul.f32 0.70710677, %v5587_v26  ;;  %v3357_v38 = vadd.f32 0.05243302, %v3356_v20  ;;  %v4373_v31 = vld [vmem:[%s4869_s3 + $0x8] sm:$0xff] }
 0xf16   : > { %v3369_v33 = vmul.f32 %v3368_v30, %v5569_v3  ;;  %v3394_v35 = vmul.f32 %v3393_v12, %v5583_v59  ;;  %v3405_v36 = vmul.f32 %v3404_v15, %v5583_v59  ;;  %3653 = vmatpush.bf16.msra.mxu0 %v4373_v31 }
 0xf17   : > { %v3430_v37 = vmul.f32 %v5593_v39, %v5593_v39  ;;  %v3358_v57 = vmul.f32 %v3357_v38, %v5569_v3 }
 0xf18   : > { %v3370_v40 = vadd.f32 0.4994258, %v3369_v33  ;;  %v3395_v41 = vadd.f32 0.0036580483, %v3394_v35  ;;  %v3406_v42 = vadd.f32 0.014752088, %v3405_v36 }
 0xf19   : > { %v5600_v49 = vmin.f32 %v3430_v37, 16.0  ;;  %v3330_v13 = vpop.f32.mrf.mxu3  ;;  %v3359_v62 = vadd.f32 0.18741608, %v3358_v57 }
 0xf1a   : > { %v3371_v19 = vmul.f32 %v3370_v40, %v5569_v3  ;;  %v5604_v7 = vadd.f32 %v5559_v48, %v3330_v13  ;;  %v3407_v32 = vmul.f32 %v3406_v42, %v5583_v59  ;;  %v3396_v17 = vmul.f32 %v3395_v41, %v5583_v59  ;;  %v4372_v13 = vld [vmem:[%s4869_s3] sm:$0xff] }
 0xf1b   : > { %v3432_v51 = vmul.f32 2.1237322e-06, %v5600_v49  ;;  %v3443_v10 = vmul.f32 3.8918573e-05, %v5600_v49  ;;  %v3360_v25 = vmul.f32 %v3359_v62, %v5569_v3  ;;  %3654 = vmatpush.bf16.msra.mxu0 %v4372_v13 }
 0xf1c   : > { %v5608_v53 = vadd.f32 1.0, %v3371_v19  ;;  %v5613_v56 = vmul.f32 0.70710677, %v5604_v7  ;;  %v3408_v16 = vadd.f32 0.112945676, %v3407_v32 }
 0xf1d   : > { %v3433_v21 = vadd.f32 0.00028619796, %v3432_v51  ;;  %v3397_v52 = vadd.f32 0.05243302, %v3396_v17  ;;  %v3444_v28 = vadd.f32 0.001143296, %v3443_v10 }
 0xf1e   : > { %4570 = vrcp.f32 %v5608_v53  ;;  %v3409_v58 = vmul.f32 %v3408_v16, %v5583_v59  ;;  %v3470_v61 = vmul.f32 %v5613_v56, %v5613_v56  ;;  %v3382_v35 = vand.u32 2147483647, %v5608_v53 }
 0xf1f   : > { %v3434_v55 = vmul.f32 %v3433_v21, %v5600_v49  ;;  %v3445_v5 = vmul.f32 %v3444_v28, %v5600_v49  ;;  %v3398_v11 = vmul.f32 %v3397_v52, %v5583_v59  ;;  %v3384_v3 = vand.u32 2147483648, %v5608_v53 }
 0xf20   : > { %v3410_v29 = vadd.f32 0.4994258, %v3409_v58  ;;  %v5624_v6 = vmin.f32 %v3470_v61, 16.0  ;;  %v3361_v19 = vadd.f32 1.1283791, %v3360_v25  ;;  %vm3378_vm11 = vweird.f32 %v5608_v53 }
 0xf21   : > { %v3435_v4 = vadd.f32 0.0036580483, %v3434_v55  ;;  %v3333_v8 = vpop.f32.mrf.mxu3  ;;  %v3446_v44 = vadd.f32 0.014752088, %v3445_v5  ;;  %v3399_v37 = vadd.f32 0.18741608, %v3398_v11 }
 0xf22   : > { %v3411_v1 = vmul.f32 %v3410_v29, %v5583_v59  ;;  %v3472_v22 = vmul.f32 2.1237322e-06, %v5624_v6  ;;  %v3483_v43 = vmul.f32 3.8918573e-05, %v5624_v6  ;;  %v5640_v36 = vadd.f32 %v5559_v48, %v3333_v8 }
 0xf23   : > { %v3436_v20 = vmul.f32 %v3435_v4, %v5600_v49  ;;  %v3447_v30 = vmul.f32 %v3446_v44, %v5600_v49  ;;  %v3385_v21 = vor.u32 1.1754944e-38, %v3384_v3  ;;  %v3400_v50 = vmul.f32 %v3399_v37, %v5583_v59 }
 0xf24   : > { %v4571_v0 = vpop.eup %4570  ;;  %v5632_v27 = vadd.f32 1.0, %v3411_v1  ;;  %v3473_v12 = vadd.f32 0.00028619796, %v3472_v22  ;;  %v3484_v15 = vadd.f32 0.001143296, %v3483_v43  ;;  %vm3383_vm13 = vcmp.eq.f32.partialorder %v3382_v35, 8.507059e+37 }
 0xf25   : > { %v3374_v2 = vmul.f32 %v4571_v0, %v5608_v53  ;;  %v3448_v38 = vadd.f32 0.112945676, %v3447_v30  ;;  %vm3379_vm10 = vweird.f32 %v4571_v0  ;;  %v3437_v32 = vadd.f32 0.05243302, %v3436_v20 }
 0xf26   : > { %4572 = vrcp.f32 %v5632_v27  ;;  %v3474_v41 = vmul.f32 %v3473_v12, %v5624_v6  ;;  %v3485_v42 = vmul.f32 %v3484_v15, %v5624_v6  ;;  %v5649_v16 = vmul.f32 0.70710677, %v5640_v36  ;;  %vm3380_vm12 = vmor %vm3378_vm11, %vm3379_vm10 }
 0xf27   : > { %v3375_v33 = vsub.f32 1.0, %v3374_v2  ;;  %v3449_v51 = vmul.f32 %v3448_v38, %v5600_v49  ;;  %v3362_v62 = vmul.f32 %v3361_v19, %v5565_v63  ;;  %v3438_v4 = vmul.f32 %v3437_v32, %v5600_v49 }
 0xf28   : > { %v3475_v10 = vadd.f32 0.0036580483, %v3474_v41  ;;  %v3486_v57 = vadd.f32 0.014752088, %v3485_v42  ;;  %v3510_v61 = vmul.f32 %v5649_v16, %v5649_v16  ;;  %v3422_v44 = vand.u32 2147483647, %v5632_v27 }
 0xf29   : > { %v3376_v40 = vmul.f32 %v4571_v0, %v3375_v33  ;;  %v3450_v58 = vadd.f32 0.4994258, %v3449_v51  ;;  %v3335_v55 = vpop.f32.mrf.mxu3  ;;  %v3424_v43 = vand.u32 2147483648, %v5632_v27  ;;  %v3439_v20 = vadd.f32 0.18741608, %v3438_v4 }
 0xf2a   : > { %v3487_v53 = vmul.f32 %v3486_v57, %v5624_v6  ;;  %v3476_v5 = vmul.f32 %v3475_v10, %v5624_v6  ;;  %v5661_v1 = vadd.f32 %v5559_v48, %v3335_v55  ;;  %v5664_v22 = vmin.f32 %v3510_v61, 16.0 }
 0xf2b   : > { %v3377_v17 = vadd.f32 %v4571_v0, %v3376_v40  ;;  %v3451_v59 = vmul.f32 %v3450_v58, %v5600_v49  ;;  %vm3418_vm0 = vweird.f32 %v5632_v27  ;;  %v3425_v38 = vor.u32 1.1754944e-38, %v3424_v43 }
 0xf2c   : > { %v4573_v52 = vpop.eup %4572  ;;  %v3488_v8 = vadd.f32 0.112945676, %v3487_v53  ;;  %v3523_v30 = vmul.f32 3.8918573e-05, %v5664_v22  ;;  %v3477_v48 = vadd.f32 0.05243302, %v3476_v5  ;;  %v3440_v42 = vmul.f32 %v3439_v20, %v5600_v49 }
 0xf2d   : > { %v3381_v28 = vsel %vm3380_vm12, %v4571_v0, %v3377_v17  ;;  %v3414_v23 = vmul.f32 %v4573_v52, %v5632_v27  ;;  %v3401_v0 = vadd.f32 1.1283791, %v3400_v50  ;;  %v5667_v25 = vadd.f32 1.0, %v3451_v59 }
 0xf2e   : > { %v3386_v29 = vsel %vm3383_vm13, %v3385_v21, %v3381_v28  ;;  %v3489_v2 = vmul.f32 %v3488_v8, %v5624_v6  ;;  %vm3419_vm14 = vweird.f32 %v4573_v52  ;;  %v5673_v12 = vmul.f32 0.70710677, %v5661_v1 }
 0xf2f   : > { %v3415_v11 = vsub.f32 1.0, %v3414_v23  ;;  %v3387_v63 = vmul.f32 %v3386_v29, %v3362_v62  ;;  %4574 = vrcp.f32 %v5667_v25  ;;  %v3512_v35 = vmul.f32 2.1237322e-06, %v5664_v22  ;;  %vm3420_vm1 = vmor %vm3418_vm0, %vm3419_vm14 }
 0xf30   : > { %v3490_v33 = vadd.f32 0.4994258, %v3489_v2  ;;  %v3402_v37 = vmul.f32 %v3401_v0, %v5577_v9  ;;  %v3524_v40 = vadd.f32 0.001143296, %v3523_v30  ;;  %vm3423_vm2 = vcmp.eq.f32.partialorder %v3422_v44, 8.507059e+37 }
 0xf31   : > { %v3416_v31 = vmul.f32 %v4573_v52, %v3415_v11  ;;  %v4298_v3 = vclamps-f32 %v3387_v63, 1.0  ;;  %v3478_v32 = vmul.f32 %v3477_v48, %v5624_v6  ;;  %v3550_v51 = vmul.f32 %v5673_v12, %v5673_v12 }
 0xf32   : > { %v3491_v13 = vmul.f32 %v3490_v33, %v5624_v6  ;;  %v3525_v27 = vmul.f32 %v3524_v40, %v5664_v22  ;;  %v3513_v9 = vadd.f32 0.00028619796, %v3512_v35  ;;  %v3338_v21 = vmul.f32 0.5, %v5562_v54 }
 0xf33   : > { %v3417_v15 = vadd.f32 %v4573_v52, %v3416_v31  ;;  %v3590_v50 = vadd.f32 1.0, %v4298_v3  ;;  %v5687_v49 = vmin.f32 %v3550_v51, 16.0  ;;  %v3339_v55 = vmul.f32 0.5, %v5574_v60 }
 0xf34   : > { %v5684_v10 = vadd.f32 1.0, %v3491_v13  ;;  %v3526_v58 = vadd.f32 0.014752088, %v3525_v27  ;;  %v3441_v28 = vadd.f32 1.1283791, %v3440_v42  ;;  %vm3458_vm3 = vweird.f32 %v5667_v25 }
 0xf35   : > { %v3421_v41 = vsel %vm3420_vm1, %v4573_v52, %v3417_v15  ;;  %v4575_v57 = vpop.eup %4574  ;;  %v3462_v61 = vand.u32 2147483647, %v5667_v25  ;;  %v3479_v62 = vadd.f32 0.18741608, %v3478_v32  ;;  %v3514_v54 = vmul.f32 %v3513_v9, %v5664_v22 }
 0xf36   : > { %v3426_v19 = vsel %vm3423_vm2, %v3425_v38, %v3421_v41  ;;  %v3454_v53 = vmul.f32 %v4575_v57, %v5667_v25  ;;  %4576 = vrcp.f32 %v5684_v10  ;;  %v3527_v4 = vmul.f32 %v3526_v58, %v5664_v22 }
 0xf37   : > { %v3427_v17 = vmul.f32 %v3426_v19, %v3402_v37  ;;  %v3596_v59 = vmul.f32 %v3590_v50, %v3338_v21  ;;  %v3464_v60 = vand.u32 2147483648, %v5667_v25  ;;  %v3552_v5 = vmul.f32 2.1237322e-06, %v5687_v49 }
 0xf38   : > { %v3455_v23 = vsub.f32 1.0, %v3454_v53  ;;  %v3563_v8 = vmul.f32 3.8918573e-05, %v5687_v49  ;;  %vm3459_vm4 = vweird.f32 %v4575_v57  ;;  %v3528_v44 = vadd.f32 0.112945676, %v3527_v4 }
 0xf39   : > { %v4299_v52 = vclamps-f32 %v3427_v17, 1.0  ;;  %v3480_v63 = vmul.f32 %v3479_v62, %v5624_v6  ;;  %v3553_v43 = vadd.f32 0.00028619796, %v3552_v5  ;;  %v3515_v30 = vadd.f32 0.0036580483, %v3514_v54  ;;  %vm3460_vm6 = vmor %vm3458_vm3, %vm3459_vm4 }
 0xf3a   : > { %v3456_v11 = vmul.f32 %v4575_v57, %v3455_v23  ;;  %v3564_v2 = vadd.f32 0.001143296, %v3563_v8  ;;  %v3529_v48 = vmul.f32 %v3528_v44, %v5664_v22  ;;  %v3465_v33 = vor.u32 1.1754944e-38, %v3464_v60 }
 0xf3b   : > { %v3591_v29 = vadd.f32 1.0, %v4299_v52  ;;  %v3554_v35 = vmul.f32 %v3553_v43, %v5687_v49  ;;  %vm3463_vm7 = vcmp.eq.f32.partialorder %v3462_v61, 8.507059e+37  ;;  %v3442_v42 = vmul.f32 %v3441_v28, %v5593_v39 }
 0xf3c   : > { %v3457_v20 = vadd.f32 %v4575_v57, %v3456_v11  ;;  %v4577_v15 = vpop.eup %4576  ;;  %v3565_v3 = vmul.f32 %v3564_v2, %v5687_v49  ;;  %v3530_v40 = vadd.f32 0.4994258, %v3529_v48  ;;  %v3481_v13 = vadd.f32 1.1283791, %v3480_v63 }
 0xf3d   : > { %v3597_v0 = vmul.f32 %v3591_v29, %v3339_v55  ;;  %v3494_v6 = vmul.f32 %v4577_v15, %v5684_v10  ;;  %v3516_v25 = vmul.f32 %v3515_v30, %v5664_v22  ;;  %v3504_v32 = vand.u32 2147483648, %v5684_v10 }
 0xf3e   : > { %v3461_v37 = vsel %vm3460_vm6, %v4575_v57, %v3457_v20  ;;  %v3566_v41 = vadd.f32 0.014752088, %v3565_v3  ;;  %v3531_v27 = vmul.f32 %v3530_v40, %v5664_v22  ;;  %v3555_v51 = vadd.f32 0.0036580483, %v3554_v35 }
 0xf3f   : > { %v3602_v31 = vpack.c.bf16 %v3597_v0, %v3596_v59  ;;  %v3466_v38 = vsel %vm3463_vm7, %v3465_v33, %v3461_v37  ;;  %v3495_v19 = vsub.f32 1.0, %v3494_v6  ;;  %vm3499_vm8 = vweird.f32 %v4577_v15 }
 0xf40   : > { %v3567_v17 = vmul.f32 %v3566_v41, %v5687_v49  ;;  %v3467_v9 = vmul.f32 %v3466_v38, %v3442_v42  ;;  %v3502_v21 = vand.u32 2147483647, %v5684_v10  ;;  %v3532_v50 = vadd.f32 1.0, %v3531_v27 }
 0xf41   : > { %4320 = vmatmul.msk.bf16.vlgmr.msra.gmra.mxu0 %vm3637_vm5, %v3602_v31  ;;  %v3496_v57 = vmul.f32 %v4577_v15, %v3495_v19  ;;  %vm3498_vm9 = vweird.f32 %v5684_v10  ;;  %v3517_v39 = vadd.f32 0.05243302, %v3516_v25  ;;  %v3482_v52 = vmul.f32 %v3481_v13, %v5613_v56 }
 0xf42   : > { %v3568_v58 = vadd.f32 0.112945676, %v3567_v17  ;;  %vm3500_vm10 = vmor %vm3498_vm9, %vm3499_vm8  ;;  %v3505_v28 = vor.u32 1.1754944e-38, %v3504_v32  ;;  %4578 = vrcp.f32 %v3532_v50  ;;  %v3556_v53 = vmul.f32 %v3555_v51, %v5687_v49 }
 0xf43   : > { %v3497_v55 = vadd.f32 %v4577_v15, %v3496_v57  ;;  %v4300_v61 = vclamps-f32 %v3467_v9, 1.0  ;;  %vm3503_vm11 = vcmp.eq.f32.partialorder %v3502_v21, 8.507059e+37  ;;  %v3518_v4 = vmul.f32 %v3517_v39, %v5664_v22 }
 0xf44   : > { %v3569_v29 = vmul.f32 %v3568_v58, %v5687_v49  ;;  %v3557_v60 = vadd.f32 0.05243302, %v3556_v53  ;;  %v3340_v0 = vmul.f32 0.5, %v5587_v26  ;;  %v3341_v11 = vmul.f32 0.5, %v5604_v7 }
 0xf45   : > { %v3501_v62 = vsel %vm3500_vm10, %v4577_v15, %v3497_v55  ;;  %v3592_v10 = vadd.f32 1.0, %v4300_v61  ;;  %v3519_v63 = vadd.f32 0.18741608, %v3518_v4  ;;  %v3544_v3 = vand.u32 2147483648, %v3532_v50 }
 0xf46   : > { %v3506_v23 = vsel %vm3503_vm11, %v3505_v28, %v3501_v62  ;;  %v3570_v59 = vadd.f32 0.4994258, %v3569_v29  ;;  %v3558_v2 = vmul.f32 %v3557_v60, %v5687_v49  ;;  %vm3538_vm13 = vweird.f32 %v3532_v50 }
 0xf47   : > { %v3507_v54 = vmul.f32 %v3506_v23, %v3482_v52  ;;  %v3598_v20 = vmul.f32 %v3592_v10, %v3340_v0  ;;  %v3520_v33 = vmul.f32 %v3519_v63, %v5664_v22  ;;  %v3542_v7 = vand.u32 2147483647, %v3532_v50 }
 0xf48   : > { %v3571_v56 = vmul.f32 %v3570_v59, %v5687_v49  ;;  %v4579_v8 = vpop.eup %4578  ;;  %v3559_v37 = vadd.f32 0.18741608, %v3558_v2  ;;  %v3545_v41 = vor.u32 1.1754944e-38, %v3544_v3  ;;  %v3342_v28 = vmul.f32 0.5, %v5640_v36 }
 0xf49   : > { %v4301_v5 = vclamps-f32 %v3507_v54, 1.0  ;;  %v3534_v43 = vmul.f32 %v4579_v8, %v3532_v50  ;;  %vm3539_vm12 = vweird.f32 %v4579_v8  ;;  %v3521_v6 = vadd.f32 1.1283791, %v3520_v33 }
 0xf4a   : > { %v3572_v31 = vadd.f32 1.0, %v3571_v56  ;;  %vm3540_vm14 = vmor %vm3538_vm13, %vm3539_vm12  ;;  %v3560_v42 = vmul.f32 %v3559_v37, %v5687_v49  ;;  %vm3543_vm0 = vcmp.eq.f32.partialorder %v3542_v7, 8.507059e+37  ;;  %v3343_v53 = vmul.f32 0.5, %v5661_v1 }
 0xf4b   : > { %v3593_v44 = vadd.f32 1.0, %v4301_v5  ;;  %v3535_v48 = vsub.f32 1.0, %v3534_v43  ;;  %v3522_v22 = vmul.f32 %v3521_v6, %v5649_v16 }
 0xf4c   : > { %4580 = vrcp.f32 %v3572_v31  ;;  %v3561_v32 = vadd.f32 1.1283791, %v3560_v42  ;;  %v3584_v27 = vand.u32 2147483648, %v3572_v31  ;;  %v3582_v9 = vand.u32 2147483647, %v3572_v31 }
 0xf4d   : > { %v3599_v30 = vmul.f32 %v3593_v44, %v3341_v11  ;;  %v3536_v35 = vmul.f32 %v4579_v8, %v3535_v48  ;;  %vm3578_vm2 = vweird.f32 %v3572_v31 }
 0xf4e   : > { %v3585_v21 = vor.u32 1.1754944e-38, %v3584_v27  ;;  %v3562_v49 = vmul.f32 %v3561_v32, %v5673_v12  ;;  %vm3583_vm4 = vcmp.eq.f32.partialorder %v3582_v9, 8.507059e+37  ;;  %v4447_v12 = vld [vmem:[%s1014_s12] ss:$0 sm:$0xff] }
 0xf4f   : > { %v3603_v15 = vpack.c.bf16 %v3599_v30, %v3598_v20  ;;  %v3537_v26 = vadd.f32 %v4579_v8, %v3536_v35 }
 0xf51   : > { %4321 = vmatmul.msk.bf16.gmra.mxu0 %vm3637_vm5, %v3603_v15  ;;  %v3541_v38 = vsel %vm3540_vm14, %v4579_v8, %v3537_v26 }
 0xf52   : > { %v4581_v40 = vpop.eup %4580  ;;  %v3546_v19 = vsel %vm3543_vm0, %v3545_v41, %v3541_v38 }
 0xf53   : > { %v3574_v13 = vmul.f32 %v4581_v40, %v3572_v31  ;;  %v3547_v51 = vmul.f32 %v3546_v19, %v3522_v22  ;;  %vm3579_vm1 = vweird.f32 %v4581_v40 }
 0xf54   : > { %vm3580_vm3 = vmor %vm3578_vm2, %vm3579_vm1 }
 0xf55   : > { %v3575_v25 = vsub.f32 1.0, %v3574_v13  ;;  %v4302_v50 = vclamps-f32 %v3547_v51, 1.0 }
 0xf57   : > { %v3576_v17 = vmul.f32 %v4581_v40, %v3575_v25  ;;  %v3594_v16 = vadd.f32 1.0, %v4302_v50 }
 0xf59   : > { %v3577_v57 = vadd.f32 %v4581_v40, %v3576_v17  ;;  %v3600_v62 = vmul.f32 %v3594_v16, %v3342_v28 }
 0xf5b   : > { %v3581_v58 = vsel %vm3580_vm3, %v4581_v40, %v3577_v57 }
 0xf5c   : > { %v3586_v55 = vsel %vm3583_vm4, %v3585_v21, %v3581_v58 }
 0xf5d   : > { %v3587_v39 = vmul.f32 %v3586_v55, %v3562_v49 }
 0xf5f   : > { %v4303_v52 = vclamps-f32 %v3587_v39, 1.0 }
 0xf61   : > { %v3595_v61 = vadd.f32 1.0, %v4303_v52 }
 0xf63   : > { %v3601_v29 = vmul.f32 %v3595_v61, %v3343_v53 }
 0xf65   : > { %v3604_v23 = vpack.c.bf16 %v3601_v29, %v3600_v62 }
 0xf67   : > { %4322 = vmatmul.msk.bf16.gmra.mxu0 %vm3637_vm5, %v3604_v23 }
 0xfbe   : > { %v3656_v54 = vpop.f32.mrf.mxu0 }
 0xfbf   : > { %v3671_v4 = vadd.f32 %v3656_v54, %v5438_v14 }
 0xfc1   : > { %v3681_v59 = vadd.f32 %v4447_v12, %v3671_v4 }
 0xfc3   : > { %3687 = vst.msk [vmem:[#allocation2] sm:$0xff] %vm1330_vm15, %v3681_v59 }
 0xfc6   : > { %v3658_v36 = vpop.f32.mrf.mxu0 }
 0xfc7   : > { %v3672_v1 = vadd.f32 %v3658_v36, %v5445_v34 }
 0xfc9   : > { %v3682_v60 = vadd.f32 %v4447_v12, %v3672_v1 }
 0xfcb   : > { %3688 = vst.msk [vmem:[#allocation2 + $0x8] sm:$0xff] %vm1330_vm15, %v3682_v60 }
 0xfce   : > { %v3661_v10 = vpop.f32.mrf.mxu0 }
 0xfcf   : > { %v3673_v5 = vadd.f32 %v3661_v10, %v5450_v47 }
 0xfd1   : > { %v3683_v56 = vadd.f32 %v4447_v12, %v3673_v5 }
 0xfd3   : > { %3689 = vst.msk [vmem:[#allocation2 + $0x10] sm:$0xff] %vm1330_vm15, %v3683_v56 }
 0xfd6   : > { %v3663_v8 = vpop.f32.mrf.mxu0 }
 0xfd7   : > { %v3674_v0 = vadd.f32 %v3663_v8, %v5455_v46 }
 0xfd9   : > { %v3684_v11 = vadd.f32 %v4447_v12, %v3674_v0 }
 0xfdb   : > { %3690 = vst.msk [vmem:[#allocation2 + $0x18] sm:$0xff] %vm1330_vm15, %v3684_v11 }
 0xfe4   : > { %v3666_v14 = vpop.f32.mrf.mxu0 }
 0xfe5   : > { %v3675_v44 = vadd.f32 %v3666_v14, %v5460_v45 }
 0xfe7   : > { %v3685_v63 = vadd.f32 %v4447_v12, %v3675_v44 }
 0xfe9   : > { %3691 = vst.msk [vmem:[#allocation2 + $0x20] sm:$0xff] %vm1330_vm15, %v3685_v63 }
 0xfec   : > { %v3668_v34 = vpop.f32.mrf.mxu0 }
 0xfed   : > { %v3676_v43 = vadd.f32 %v3668_v34, %v5465_v18  ;;  %3696 = sbr.rel (%p4323_p6) target bundleno = 4503 (0x1197), region = 132 }
 0xfef   : > { %v3686_v2 = vadd.f32 %v4447_v12, %v3676_v43 }
 0xff1   : > { %3692 = vst.msk [vmem:[#allocation2 + $0x28] sm:$0xff] %vm1330_vm15, %v3686_v2 }
 0xff2   : > { %v3701_v47 = vrot.slane %v3684_v11, 7  ;;  %vm3702_vm5 = vcmask 1041409   ;;  %vm3705_vm6 = vcmask 254976   ;;  %v4377_v26 = vld [vmem:[%s5807_s24 + $0x8] sm:$0xff]  ;;  %v4376_v7 = vld [vmem:[%s5807_s24] sm:$0xff]  ;;  %vm3799_vm10 = vcmask 74752  }
 0xff3   : > { %3792 = vmatpush.bf16.msra.mxu0 %v4377_v26  ;;  %v4588_v32 = vld [vmem:[%s5859_s8] ss:$0 sm:$0xff] }
 0xff4   : > { %v3703_v46 = vsel %vm3702_vm5, %v3701_v47, %v3681_v59  ;;  %v4590_v61 = vld [vmem:[%s5861_s5] ss:$0 sm:$0xff] }
 0xff5   : > { %v3706_v31 = vsel %vm3705_vm6, %v3703_v46, 0.0 }
 0xff6   : > { %3707 = vadd.xlane.f32.xlu0 %v3706_v31 }
 0xff7   : > { %3793 = vmatpush.bf16.msra.mxu0 %v4376_v7 }
0x1069   : > { %v3708_v45 = vpop.xlane.xlu0 %3707 }
0x106a   : > { %v3709_v20 = vmul.f32 %v3708_v45, %v4992_v24 }
0x106c   : > { %v3711_v30 = vrot.slane %v3709_v20, 1  ;;  %v3714_v48 = vsub.f32 %v3681_v59, %v3709_v20 }
0x106e   : > { %v3715_v15 = vsub.f32 %v3684_v11, %v3711_v30  ;;  %v3716_v33 = vmul.f32 %v3714_v48, %v3714_v48 }
0x1070   : > { %v3717_v18 = vmul.f32 %v3715_v15, %v3715_v15 }
0x1072   : > { %v3720_v35 = vrot.slane %v3717_v18, 7 }
0x1074   : > { %v3721_v3 = vsel %vm3702_vm5, %v3720_v35, %v3716_v33 }
0x1075   : > { %v3723_v37 = vsel %vm3705_vm6, %v3721_v3, 0.0 }
0x1076   : > { %3724 = vadd.xlane.f32.xlu0 %v3723_v37 }
0x10e9   : > { %v3725_v6 = vpop.xlane.xlu0 %3724 }
0x10ea   : > { %v3726_v38 = vmul.f32 %v3725_v6, %v4992_v24  ;;  %v4589_v24 = vld [vmem:[%s5860_s7] ss:$0 sm:$0xff] }
0x10ec   : > { %v3727_v40 = vadd.f32 1e-05, %v3726_v38 }
0x10ee   : > { %4591 = vrsqrt.f32 %v3727_v40  ;;  %vm3734_vm8 = vweird.f32 %v3727_v40 }
0x10f4   : > { %v4592_v41 = vpop.eup %4591 }
0x10f5   : > { %v3729_v42 = vmul.f32 %v4592_v41, %v3727_v40  ;;  %vm3735_vm7 = vweird.f32 %v4592_v41 }
0x10f6   : > { %vm3736_vm9 = vmor %vm3734_vm8, %vm3735_vm7 }
0x10f7   : > { %v3730_v13 = vmul.f32 %v4592_v41, %v3729_v42 }
0x10f9   : > { %v3731_v19 = vmul.f32 0.5, %v3730_v13 }
0x10fb   : > { %v3732_v22 = vsub.f32 1.5, %v3731_v19 }
0x10fd   : > { %v3733_v25 = vmul.f32 %v4592_v41, %v3732_v22 }
0x10ff   : > { %v3737_v27 = vsel %vm3736_vm9, %v4592_v41, %v3733_v25 }
0x1100   : > { %v3739_v51 = vrot.slane %v3737_v27, 1  ;;  %v3742_v17 = vmul.f32 %v3737_v27, %v3714_v48 }
0x1102   : > { %v3743_v9 = vmul.f32 %v3739_v51, %v3715_v15  ;;  %v3747_v57 = vmul.f32 %v4588_v32, %v3742_v17 }
0x1104   : > { %v3748_v21 = vmul.f32 %v4588_v32, %v3743_v9  ;;  %v3752_v50 = vadd.f32 %v4589_v24, %v3747_v57 }
0x1106   : > { %v3753_v49 = vadd.f32 %v4589_v24, %v3748_v21  ;;  %v3754_v58 = vpack.c.bf16 %v3752_v50, %v3752_v50 }
0x1108   : > { %v3755_v55 = vpack.c.bf16 %v3753_v49, %v3753_v49  ;;  %v3766_v16 = vunpack.c.l.b16 %v3754_v58 }
0x110a   : > { %v3767_v39 = vunpack.c.l.b16 %v3755_v55 }
0x110c   : > { %v3768_v52 = vrot.slane %v3767_v39, 7 }
0x110e   : > { %v3769_v28 = vsel %vm3702_vm5, %v3768_v52, %v3766_v16 }
0x110f   : > { %v3770_v53 = vpack.c.b16 %v3769_v28, %v3769_v28 }
0x1111   : > { %4332 = vmatmul.msk.bf16.vlgmr.msra.gmra.mxu0 %vm1330_vm15, %v3770_v53 }
0x118e   : > { %v3795_v62 = vpop.f32.mrf.mxu0 }
0x118f   : > { %v3796_v29 = vadd.f32 %v4590_v61, %v3795_v62 }
0x1191   : > { %3800 = vst.msk [vmem:[#allocation3] sm:$0x3] %vm3799_vm10, %v3796_v29 }
0x1196   : > { %v3797_v23 = vpop.f32.mrf.mxu0 }
0x1197 PF: > { %s5862_s1 = sld [smem:[#allocation7_spill]]  ;;  %s4653_s3 = smov [#allocation3]  }
0x1198   : > { %s5864_s26 = sld [smem:[#allocation27_spill]]  ;;  %s3809_s27 = sshll.u32 %s4653_s3, 4  ;;  %s3810_s27 = int_to_ptr.vmem [resolvable:$true] %s3809_s27 }
0x119d   : > { %s5863_s14 = sadd.s32 4294967295, %s5862_s1  }
0x119e   : > { %p4385_p7 = scmp.eq.s32.totalorder %s5863_s14, 1  ;;  %s3811_s13 = sshll.u32 %s5864_s26, 4  ;;  %s3812_s13 = int_to_ptr.hbm [resolvable:$true] %s3811_s13 }
0x11a0   : > { %4382 = dma.vmem_to_hbm [thread:$0]  (%p4385_p7), %s3810_s27, 32, %s3812_s13, [#allocation4]  }
0x11a1   : > { %4634 = dma.done.wait (%p4385_p7), [#allocation4], 32  }
0x11a2   : > { %4636 = vsyncadd (%p4385_p7), [#allocation4], 4294967264 }
0x11a3 PF: > { %s5865_s4 = sld [smem:[#allocation7_spill]] }
0x11a4   : > { %s5866_s27 = sld [smem:[#allocation6_spill]] }
0x11a5   : > { %s5867_s3 = sld [smem:[#allocation8_spill]] }
0x11a9   : > { %s37_s7 = sadd.s32 1, %s5865_s4  }
0x11aa   : > { %p34_p8 = scmp.ge.s32.totalorder %s37_s7, 4  }
0x11ac   :  { %36 = sbr.rel (!%p34_p8) target bundleno = 22 (0x16), region = 211 }
0x11b1   :  { %3825 = vsyncpa [#allocation4], 1 }
0x11b2   :  { %3827 = vsyncpa [#allocation4 + $0x1], 1 }

</bundles_post_ra>
